<compile_context>
chip_gen: v5e
topology: v5e:2x2
jax: 0.10.0
libtpu: 0.0.40
codegen_flags: <defaults>
</compile_context>

<pallas_src>
import functools

import jax
import jax.numpy as jnp
from jax import lax
from jax.experimental import pallas as pl
from jax.experimental.pallas import tpu as pltpu


def _repeat2_axis1(x):
    """Nearest-neighbour 2x repeat along axis 1 (a sublane axis) of a 3-D array.

    broadcast + a reshape that only merges non-minor dims (the lane axis is
    untouched), which lowers cleanly in Mosaic.
    """
    d0, d1, d2 = x.shape
    return jnp.broadcast_to(x[:, :, None, :], (d0, d1, 2, d2)).reshape(d0, 2 * d1, d2)


def _reflect_pad_axis1(x, pad):
    """Reflection pad (torch ReflectionPad2d semantics) along axis 1 of a 3-D array."""
    if pad == 0:
        return x
    n = x.shape[1]
    top = [x[:, j:j + 1, :] for j in range(pad, 0, -1)]
    bot = [x[:, j:j + 1, :] for j in range(n - 2, n - 2 - pad, -1)]
    return jnp.concatenate(top + [x] + bot, axis=1)


def _upsample_cond_conv_kernel(x_ref, w_ref, affine_ref, o_ref, *,
                               kh_size, kw_size, stride, pad,
                               h_out, w_out, eps):
    """One batch element per grid step.

    x_ref:      (1, Cin, H, W)        f32  original (pre-upsample) NCHW input
    w_ref:      (KH, Cout, KW*Cin)    bf16 conv weights, per-kh im2col layout
    affine_ref: (Cout, 2)             f32  col 0 = gamma, col 1 = beta (blended)
    o_ref:      (1, Cout, Hout*Wout)  channels-major (lane-dense) output
    """
    x = x_ref[0]                                    # (Cin, H, W) f32
    c_in, h_in, w_in = x.shape

    # ---- nearest-2x upsample + reflection pad, entirely in VMEM ------------
    # Width first: move W onto the sublane axis so the 2x interleave and the
    # reflection pad are sublane ops (no lane shuffles), then move it back.
    xt = jnp.swapaxes(x, 1, 2)                      # (Cin, W, H)
    xt = _repeat2_axis1(xt)                         # (Cin, 2W, H)
    xt = _reflect_pad_axis1(xt, pad)                # (Cin, 2W+2p, H)
    xw = jnp.swapaxes(xt, 1, 2)                     # (Cin, H, 2W+2p)
    xw = _repeat2_axis1(xw)                         # (Cin, 2H, 2W+2p)
    xw = _reflect_pad_axis1(xw, pad)                # (Cin, 2H+2p, 2W+2p)
    xp = xw.astype(jnp.bfloat16)                    # MXU operand dtype

    # ---- conv: KH partial im2col matmuls, each producing (Cout, HW) --------
    # Keeping the contraction at KW*Cin (instead of a single KH*KW*Cin slab)
    # keeps only a ~KW-wide patch buffer live at a time.
    hw = h_out * w_out
    acc = None
    for kh in range(kh_size):
        cols = []
        for kw in range(kw_size):
            win = xp[:, kh:kh + (h_out - 1) * stride + 1:stride,
                        kw:kw + (w_out - 1) * stride + 1:stride]  # (Cin,h_out,w_out)
            cols.append(win.reshape(c_in, hw))
        patches = jnp.concatenate(cols, axis=0)     # (KW*Cin, HW) bf16
        part = jnp.dot(w_ref[kh], patches,
                       preferred_element_type=jnp.float32)        # (Cout, HW) f32
        acc = part if acc is None else acc + part

    # ---- fused InstanceNorm + conditional affine + ReLU --------------------
    # Conv bias intentionally omitted: a per-channel constant added before
    # InstanceNorm is exactly cancelled by the mean subtraction.  The module's
    # InstanceNorm affine params are init 1/0 (identity) and are folded away.
    inv_n = 1.0 / float(hw)
    mean = jnp.sum(acc, axis=1, keepdims=True) * inv_n            # (Cout, 1)
    centered = acc - mean
    var = jnp.sum(centered * centered, axis=1, keepdims=True) * inv_n
    gamma = affine_ref[:, 0:1]                                    # (Cout, 1)
    beta = affine_ref[:, 1:2]
    scale = gamma * lax.rsqrt(var + eps)
    y = jnp.maximum(centered * scale + beta, 0.0)                 # (Cout, HW)
    o_ref[0] = y.astype(o_ref.dtype)


def _pick_vmem_limit_bytes():
    # Leave headroom below physical VMEM: v7x has only 64 MiB/core -> ~48 MiB;
    # v5e/v6e (128 MiB) get 100 MiB.  Conservative fallback if the query fails.
    try:
        cap = int(pltpu.get_tpu_info().vmem_capacity_bytes)
    except Exception:
        cap = 64 * 1024 * 1024
    return max(32 * 1024 * 1024,
               min(100 * 1024 * 1024, cap - 16 * 1024 * 1024))


def upsampling_forward(x_nchw, params, style_no, style_no2=None, alpha=None,
                       out_dtype=jnp.float32):
    """Forward pass of Upsampling (PyTorch NCHW convention in and out).

    x_nchw: (B, Cin, H, W) float32.
    params: 'weight' (Cout, Cin, KH, KW), 'bias' (Cout,) [unused: cancelled by
            InstanceNorm], 'gamma'/'beta' (num_styles, Cout), 'padding', 'stride'.
    Returns (B, Cout, Hout, Wout) in out_dtype (f32 by default; pass bf16 if
    the downstream layer consumes bf16 to halve the output HBM writeback).
    """
    pad = int(params["padding"])
    stride = int(params["stride"])
    weight = params["weight"]
    gamma_tbl = params["gamma"]
    beta_tbl = params["beta"]

    c_out, c_in, kh_size, kw_size = weight.shape
    b, _, h, w = x_nchw.shape

    hp, wp = 2 * h + 2 * pad, 2 * w + 2 * pad
    h_out = (hp - kh_size) // stride + 1
    w_out = (wp - kw_size) // stride + 1
    hw = h_out * w_out

    # Style-conditioned gamma/beta (optional alpha blend), merged into one op.
    if alpha is not None and style_no2 is not None:
        gamma = alpha * gamma_tbl[style_no] + (1.0 - alpha) * gamma_tbl[style_no2]
        beta = alpha * beta_tbl[style_no] + (1.0 - alpha) * beta_tbl[style_no2]
    else:
        gamma = gamma_tbl[style_no]
        beta = beta_tbl[style_no]
    affine = jnp.stack([gamma, beta], axis=1).astype(jnp.float32)   # (Cout, 2)

    # Conv weights in per-kh im2col order: w_im2col[kh, co, kw*Cin + ci].
    w_im2col = jnp.transpose(weight, (2, 0, 3, 1)).reshape(
        kh_size, c_out, kw_size * c_in).astype(jnp.bfloat16)

    kernel = functools.partial(
        _upsample_cond_conv_kernel,
        kh_size=kh_size, kw_size=kw_size, stride=stride, pad=pad,
        h_out=h_out, w_out=w_out, eps=1e-5,
    )

    out = pl.pallas_call(
        kernel,
        out_shape=jax.ShapeDtypeStruct((b, c_out, hw), out_dtype),
        grid_spec=pltpu.PrefetchScalarGridSpec(
            num_scalar_prefetch=0,
            grid=(b,),
            in_specs=[
                # Original (un-upsampled) image: 4x less HBM than the old path.
                pl.BlockSpec((1, c_in, h, w), lambda i: (i, 0, 0, 0)),
                pl.BlockSpec((kh_size, c_out, kw_size * c_in),
                             lambda i: (0, 0, 0)),
                pl.BlockSpec((c_out, 2), lambda i: (0, 0)),
            ],
            out_specs=pl.BlockSpec((1, c_out, hw), lambda i: (i, 0, 0)),
        ),
        compiler_params=pltpu.CompilerParams(
            # Batch axis is 'parallel' so v7x's two TensorCores split it.
            dimension_semantics=("parallel",),
            vmem_limit_bytes=_pick_vmem_limit_bytes(),
        ),
    )(x_nchw.astype(jnp.float32), w_im2col, affine)

    # Free reshape (same memory layout) — output is already channels-major.
    return out.reshape(b, c_out, h_out, w_out)


def _reference_forward(x_nchw, params, style_no, style_no2, alpha):
    """Pure-JAX reference. Conv inputs are rounded to bf16 to mirror the
    kernel's MXU operand dtype (accumulation is f32 in both); the conv bias is
    kept here to demonstrate it is cancelled by InstanceNorm."""
    pad = int(params["padding"])
    stride = int(params["stride"])
    weight = params["weight"]
    bias = params["bias"]

    x = jnp.repeat(jnp.repeat(x_nchw, 2, axis=2), 2, axis=3)
    x = jnp.pad(x, ((0, 0), (0, 0), (pad, pad), (pad, pad)), mode="reflect")
    x = x.astype(jnp.bfloat16).astype(jnp.float32)
    wq = weight.astype(jnp.bfloat16).astype(jnp.float32)
    y = lax.conv_general_dilated(
        x, wq, window_strides=(stride, stride), padding="VALID",
        dimension_numbers=("NCHW", "OIHW", "NCHW"))
    y = y + bias.reshape(1, -1, 1, 1)
    mean = jnp.mean(y, axis=(2, 3), keepdims=True)
    var = jnp.mean((y - mean) ** 2, axis=(2, 3), keepdims=True)
    y = (y - mean) * lax.rsqrt(var + 1e-5)
    if alpha is not None and style_no2 is not None:
        gamma = alpha * params["gamma"][style_no] + (1 - alpha) * params["gamma"][style_no2]
        beta = alpha * params["beta"][style_no] + (1 - alpha) * params["beta"][style_no2]
    else:
        gamma = params["gamma"][style_no]
        beta = params["beta"][style_no]
    y = y * gamma.reshape(1, -1, 1, 1) + beta.reshape(1, -1, 1, 1)
    return jnp.maximum(y, 0.0)


if __name__ == "__main__":
    key = jax.random.PRNGKey(0)
    k_x, k_w, k_b, k_g, k_be = jax.random.split(key, 5)

    # Small shapes consistent with Upsampling(input_filters, output_filters,
    # kernel_size=3, padding=1, stride=1, num_styles).
    B, C_IN, H, W = 2, 4, 16, 16
    C_OUT, K, PAD, STRIDE, NUM_STYLES = 8, 3, 1, 1, 3

    x = jax.random.normal(k_x, (B, C_IN, H, W), dtype=jnp.float32)

    fan_in = C_IN * K * K
    params = {
        # nn.init.normal_(weight, mean=0, std=0.01)
        "weight": 0.01 * jax.random.normal(k_w, (C_OUT, C_IN, K, K),
                                           dtype=jnp.float32),
        # Conv2d default bias init (mathematically cancelled by InstanceNorm).
        "bias": jax.random.uniform(k_b, (C_OUT,), dtype=jnp.float32,
                                   minval=-1.0 / fan_in ** 0.5,
                                   maxval=1.0 / fan_in ** 0.5),
        # Module init is uniform_(1,1)/(0,0); perturb slightly (as after
        # training) so the conditional-affine path is actually exercised.
        "gamma": 1.0 + 0.1 * jax.random.normal(k_g, (NUM_STYLES, C_OUT),
                                               dtype=jnp.float32),
        "beta": 0.1 * jax.random.normal(k_be, (NUM_STYLES, C_OUT),
                                        dtype=jnp.float32),
        "padding": PAD,
        "stride": STRIDE,
    }

    style_no, style_no2, alpha = 0, 1, 0.7

    out = upsampling_forward(x, params, style_no, style_no2, alpha)
    out = jax.block_until_ready(out)

    ref = _reference_forward(x, params, style_no, style_no2, alpha)
    assert out.shape == (B, C_OUT, 2 * H, 2 * W), out.shape
    err = float(jnp.max(jnp.abs(out - ref)))
    assert err < 2e-3, f"mismatch vs reference: max abs err = {err}"

    print("KERNEL_OK")
</pallas_src>

<mosaic_0001>
module attributes {stable_mosaic.version = 11 : i64} {
  func.func @_upsample_cond_conv_kernel(%arg0: i32, %arg1: memref<1x4x16x16xf32, #tpu.memory_space<vmem>>, %arg2: memref<3x8x12xbf16, #tpu.memory_space<vmem>>, %arg3: memref<8x2xf32, #tpu.memory_space<vmem>>, %arg4: memref<1x8x1024xf32, #tpu.memory_space<vmem>>) attributes {dimension_semantics = [#tpu.dimension_semantics<parallel>], iteration_bounds = array<i64: 2>, scalar_prefetch = 0 : i64, scratch_operands = 0 : i64, tpu.core_type = #tpu.core_type<tc>, window_params = [{transform_indices = @transform_0, window_bounds = array<i64: 1, 4, 16, 16>}, {pipeline_mode = #tpu.pipeline_mode<synchronous>, transform_indices = @transform_1, window_bounds = array<i64: 3, 8, 12>}, {pipeline_mode = #tpu.pipeline_mode<synchronous>, transform_indices = @transform_2, window_bounds = array<i64: 8, 2>}, {transform_indices = @transform_3, window_bounds = array<i64: 1, 8, 1024>}]} {
    %c0 = arith.constant 0 : index
    %c0_0 = arith.constant 0 : index
    %c0_1 = arith.constant 0 : index
    %c0_2 = arith.constant 0 : index
    %0 = vector.load %arg1[%c0, %c0_0, %c0_1, %c0_2] : memref<1x4x16x16xf32, #tpu.memory_space<vmem>>, vector<1x4x16x16xf32>
    %1 = vector.shape_cast %0 : vector<1x4x16x16xf32> to vector<4x16x16xf32>
    %2 = tpu.transpose %1, [0, 2, 1] : vector<4x16x16xf32> -> vector<4x16x16xf32>
    %3 = vector.shape_cast %2 : vector<4x16x16xf32> to vector<4x16x1x16xf32>
    %4 = vector.shape_cast %3 : vector<4x16x1x16xf32> to vector<4x16x1x16xf32>
    %5 = vector.broadcast %4 : vector<4x16x1x16xf32> to vector<4x16x2x16xf32>
    %6 = vector.shape_cast %5 : vector<4x16x2x16xf32> to vector<4x32x16xf32>
    %7 = vector.extract_strided_slice %6 {offsets = [0, 1, 0], sizes = [4, 1, 16], strides = [1, 1, 1]} : vector<4x32x16xf32> to vector<4x1x16xf32>
    %8 = vector.extract_strided_slice %6 {offsets = [0, 30, 0], sizes = [4, 1, 16], strides = [1, 1, 1]} : vector<4x32x16xf32> to vector<4x1x16xf32>
    %9 = tpu.concatenate %7, %6, %8 in 1 : vector<4x1x16xf32>, vector<4x32x16xf32>, vector<4x1x16xf32> -> vector<4x34x16xf32>
    %10 = tpu.transpose %9, [0, 2, 1] : vector<4x34x16xf32> -> vector<4x16x34xf32>
    %11 = vector.shape_cast %10 : vector<4x16x34xf32> to vector<4x16x1x34xf32>
    %12 = vector.shape_cast %11 : vector<4x16x1x34xf32> to vector<4x16x1x34xf32>
    %13 = vector.broadcast %12 : vector<4x16x1x34xf32> to vector<4x16x2x34xf32>
    %14 = vector.shape_cast %13 : vector<4x16x2x34xf32> to vector<4x32x34xf32>
    %15 = vector.extract_strided_slice %14 {offsets = [0, 1, 0], sizes = [4, 1, 34], strides = [1, 1, 1]} : vector<4x32x34xf32> to vector<4x1x34xf32>
    %16 = vector.extract_strided_slice %14 {offsets = [0, 30, 0], sizes = [4, 1, 34], strides = [1, 1, 1]} : vector<4x32x34xf32> to vector<4x1x34xf32>
    %17 = tpu.concatenate %15, %14, %16 in 1 : vector<4x1x34xf32>, vector<4x32x34xf32>, vector<4x1x34xf32> -> vector<4x34x34xf32>
    %18 = arith.truncf %17 : vector<4x34x34xf32> to vector<4x34x34xbf16>
    %19 = vector.extract_strided_slice %18 {offsets = [0, 0, 0], sizes = [4, 32, 32], strides = [1, 1, 1]} : vector<4x34x34xbf16> to vector<4x32x32xbf16>
    %20 = vector.shape_cast %19 : vector<4x32x32xbf16> to vector<4x1024xbf16>
    %21 = vector.extract_strided_slice %18 {offsets = [0, 0, 1], sizes = [4, 32, 32], strides = [1, 1, 1]} : vector<4x34x34xbf16> to vector<4x32x32xbf16>
    %22 = vector.shape_cast %21 : vector<4x32x32xbf16> to vector<4x1024xbf16>
    %23 = vector.extract_strided_slice %18 {offsets = [0, 0, 2], sizes = [4, 32, 32], strides = [1, 1, 1]} : vector<4x34x34xbf16> to vector<4x32x32xbf16>
    %24 = vector.shape_cast %23 : vector<4x32x32xbf16> to vector<4x1024xbf16>
    %25 = tpu.concatenate %20, %22, %24 in 0 : vector<4x1024xbf16>, vector<4x1024xbf16>, vector<4x1024xbf16> -> vector<12x1024xbf16>
    %c0_3 = arith.constant 0 : index
    %c0_4 = arith.constant 0 : index
    %c0_5 = arith.constant 0 : index
    %26 = vector.load %arg2[%c0_3, %c0_4, %c0_5] : memref<3x8x12xbf16, #tpu.memory_space<vmem>>, vector<1x8x12xbf16>
    %27 = vector.shape_cast %26 : vector<1x8x12xbf16> to vector<8x12xbf16>
    %cst = arith.constant dense<0.000000e+00> : vector<8x1024xf32>
    %28 = tpu.matmul %27, %25, %cst {dimension_numbers = #tpu.dot_dimension_numbers<[1], [0], [0], [1], [0, 0, 1, 1], [], []>} : vector<8x12xbf16>, vector<12x1024xbf16>, vector<8x1024xf32> -> vector<8x1024xf32>
    %29 = vector.extract_strided_slice %18 {offsets = [0, 1, 0], sizes = [4, 32, 32], strides = [1, 1, 1]} : vector<4x34x34xbf16> to vector<4x32x32xbf16>
    %30 = vector.shape_cast %29 : vector<4x32x32xbf16> to vector<4x1024xbf16>
    %31 = vector.extract_strided_slice %18 {offsets = [0, 1, 1], sizes = [4, 32, 32], strides = [1, 1, 1]} : vector<4x34x34xbf16> to vector<4x32x32xbf16>
    %32 = vector.shape_cast %31 : vector<4x32x32xbf16> to vector<4x1024xbf16>
    %33 = vector.extract_strided_slice %18 {offsets = [0, 1, 2], sizes = [4, 32, 32], strides = [1, 1, 1]} : vector<4x34x34xbf16> to vector<4x32x32xbf16>
    %34 = vector.shape_cast %33 : vector<4x32x32xbf16> to vector<4x1024xbf16>
    %35 = tpu.concatenate %30, %32, %34 in 0 : vector<4x1024xbf16>, vector<4x1024xbf16>, vector<4x1024xbf16> -> vector<12x1024xbf16>
    %c1 = arith.constant 1 : index
    %c0_6 = arith.constant 0 : index
    %c0_7 = arith.constant 0 : index
    %36 = vector.load %arg2[%c1, %c0_6, %c0_7] : memref<3x8x12xbf16, #tpu.memory_space<vmem>>, vector<1x8x12xbf16>
    %37 = vector.shape_cast %36 : vector<1x8x12xbf16> to vector<8x12xbf16>
    %cst_8 = arith.constant dense<0.000000e+00> : vector<8x1024xf32>
    %38 = tpu.matmul %37, %35, %cst_8 {dimension_numbers = #tpu.dot_dimension_numbers<[1], [0], [0], [1], [0, 0, 1, 1], [], []>} : vector<8x12xbf16>, vector<12x1024xbf16>, vector<8x1024xf32> -> vector<8x1024xf32>
    %39 = arith.addf %28, %38 : vector<8x1024xf32>
    %40 = vector.extract_strided_slice %18 {offsets = [0, 2, 0], sizes = [4, 32, 32], strides = [1, 1, 1]} : vector<4x34x34xbf16> to vector<4x32x32xbf16>
    %41 = vector.shape_cast %40 : vector<4x32x32xbf16> to vector<4x1024xbf16>
    %42 = vector.extract_strided_slice %18 {offsets = [0, 2, 1], sizes = [4, 32, 32], strides = [1, 1, 1]} : vector<4x34x34xbf16> to vector<4x32x32xbf16>
    %43 = vector.shape_cast %42 : vector<4x32x32xbf16> to vector<4x1024xbf16>
    %44 = vector.extract_strided_slice %18 {offsets = [0, 2, 2], sizes = [4, 32, 32], strides = [1, 1, 1]} : vector<4x34x34xbf16> to vector<4x32x32xbf16>
    %45 = vector.shape_cast %44 : vector<4x32x32xbf16> to vector<4x1024xbf16>
    %46 = tpu.concatenate %41, %43, %45 in 0 : vector<4x1024xbf16>, vector<4x1024xbf16>, vector<4x1024xbf16> -> vector<12x1024xbf16>
    %c2 = arith.constant 2 : index
    %c0_9 = arith.constant 0 : index
    %c0_10 = arith.constant 0 : index
    %47 = vector.load %arg2[%c2, %c0_9, %c0_10] : memref<3x8x12xbf16, #tpu.memory_space<vmem>>, vector<1x8x12xbf16>
    %48 = vector.shape_cast %47 : vector<1x8x12xbf16> to vector<8x12xbf16>
    %cst_11 = arith.constant dense<0.000000e+00> : vector<8x1024xf32>
    %49 = tpu.matmul %48, %46, %cst_11 {dimension_numbers = #tpu.dot_dimension_numbers<[1], [0], [0], [1], [0, 0, 1, 1], [], []>} : vector<8x12xbf16>, vector<12x1024xbf16>, vector<8x1024xf32> -> vector<8x1024xf32>
    %50 = arith.addf %39, %49 : vector<8x1024xf32>
    %cst_12 = arith.constant dense<0.000000e+00> : vector<8xf32>
    %51 = vector.multi_reduction <add>, %50, %cst_12 [1] : vector<8x1024xf32> to vector<8xf32>
    %52 = vector.shape_cast %51 : vector<8xf32> to vector<8x1xf32>
    %cst_13 = arith.constant 9.765625E-4 : f32
    %53 = vector.broadcast %cst_13 : f32 to vector<8x1xf32>
    %54 = arith.mulf %52, %53 : vector<8x1xf32>
    %55 = vector.broadcast %54 : vector<8x1xf32> to vector<8x1024xf32>
    %56 = arith.subf %50, %55 : vector<8x1024xf32>
    %57 = arith.mulf %56, %56 : vector<8x1024xf32>
    %cst_14 = arith.constant dense<0.000000e+00> : vector<8xf32>
    %58 = vector.multi_reduction <add>, %57, %cst_14 [1] : vector<8x1024xf32> to vector<8xf32>
    %59 = vector.shape_cast %58 : vector<8xf32> to vector<8x1xf32>
    %cst_15 = arith.constant 9.765625E-4 : f32
    %60 = vector.broadcast %cst_15 : f32 to vector<8x1xf32>
    %61 = arith.mulf %59, %60 : vector<8x1xf32>
    %c0_16 = arith.constant 0 : index
    %c0_17 = arith.constant 0 : index
    %62 = vector.load %arg3[%c0_16, %c0_17] : memref<8x2xf32, #tpu.memory_space<vmem>>, vector<8x1xf32>
    %c0_18 = arith.constant 0 : index
    %c1_19 = arith.constant 1 : index
    %63 = vector.load %arg3[%c0_18, %c1_19] : memref<8x2xf32, #tpu.memory_space<vmem>>, vector<8x1xf32>
    %cst_20 = arith.constant 9.99999974E-6 : f32
    %64 = vector.broadcast %cst_20 : f32 to vector<8x1xf32>
    %65 = arith.addf %61, %64 : vector<8x1xf32>
    %66 = math.rsqrt %65 : vector<8x1xf32>
    %67 = arith.mulf %62, %66 : vector<8x1xf32>
    %68 = vector.broadcast %67 : vector<8x1xf32> to vector<8x1024xf32>
    %69 = arith.mulf %56, %68 : vector<8x1024xf32>
    %70 = vector.broadcast %63 : vector<8x1xf32> to vector<8x1024xf32>
    %71 = arith.addf %69, %70 : vector<8x1024xf32>
    %cst_21 = arith.constant 0.000000e+00 : f32
    %72 = vector.broadcast %cst_21 : f32 to vector<8x1024xf32>
    %73 = arith.maximumf %71, %72 : vector<8x1024xf32>
    %c0_22 = arith.constant 0 : index
    %c0_23 = arith.constant 0 : index
    %c0_24 = arith.constant 0 : index
    %74 = vector.load %arg4[%c0_22, %c0_23, %c0_24] : memref<1x8x1024xf32, #tpu.memory_space<vmem>>, vector<1x8x1024xf32>
    %75 = vector.shape_cast %74 : vector<1x8x1024xf32> to vector<8x1024xf32>
    %76 = vector.shape_cast %73 : vector<8x1024xf32> to vector<1x8x1024xf32>
    tpu.vector_store %arg4[%c0_22, %c0_23, %c0_24], %76 {strides = array<i32>} : memref<1x8x1024xf32, #tpu.memory_space<vmem>>, vector<1x8x1024xf32>,
    return
  }
  func.func @transform_0(%arg0: i32) -> (i32, i32, i32, i32) {
    %c0_i32 = arith.constant 0 : i32
    %c0_i32_0 = arith.constant 0 : i32
    %c0_i32_1 = arith.constant 0 : i32
    %c0_i32_2 = arith.constant 0 : i32
    return %arg0, %c0_i32, %c0_i32_0, %c0_i32_1 : i32, i32, i32, i32
  }
  func.func @transform_1(%arg0: i32) -> (i32, i32, i32) {
    %c0_i32 = arith.constant 0 : i32
    %c0_i32_0 = arith.constant 0 : i32
    %c0_i32_1 = arith.constant 0 : i32
    %c0_i32_2 = arith.constant 0 : i32
    return %c0_i32, %c0_i32_0, %c0_i32_1 : i32, i32, i32
  }
  func.func @transform_2(%arg0: i32) -> (i32, i32) {
    %c0_i32 = arith.constant 0 : i32
    %c0_i32_0 = arith.constant 0 : i32
    %c0_i32_1 = arith.constant 0 : i32
    return %c0_i32, %c0_i32_0 : i32, i32
  }
  func.func @transform_3(%arg0: i32) -> (i32, i32, i32) {
    %c0_i32 = arith.constant 0 : i32
    %c0_i32_0 = arith.constant 0 : i32
    %c0_i32_1 = arith.constant 0 : i32
    return %arg0, %c0_i32, %c0_i32_0 : i32, i32, i32
  }
}

</mosaic_0001>

<bundles_post_ra>
// kernel: tpu_custom_call.1
= control target key start
LH: loop header
LB: loop body
LE: loop exit
PB: predicated region body
PF: predicated region fallthrough
CT: control target
= control target key end

     0   :  { %8 = vsyncpa [#allocation3], 0  ;;  %s9932_s0 = inlined_call_operand.hbm [shape: f32[2,4,16,16], index: 0, kind: input, shape index: {}]   ;;  %s9933_s1 = inlined_call_operand.hbm [shape: bf16[3,8,12], index: 1, kind: input, shape index: {}]   ;;  %s9934_s2 = inlined_call_operand.vmem [shape: f32[8,2], index: 2, kind: input, shape index: {}]   ;;  %s9935_s3 = inlined_call_operand.hbm [shape: f32[2,8,1024], index: 3, kind: output, shape index: {}]  }
   0x1   :  { %10 = vsyncpa [#allocation3 + $0x1], 0 }
   0x2   :  { %11 = vsyncpa [#allocation6], 0 }
   0x3   :  { %12 = vsyncpa [#allocation4], 0 }
   0x4   :  { %14 = vsyncpa [#allocation4 + $0x1], 0  ;;  %s6428_s12 = smov 0   ;;  %s6430_s13 = smov 0  }
   0x5   :  { %s6432_s14 = smov 0   ;;  %s6434_s15 = smov 0  }
   0x6 LB: > { %s6449_s16 = sadd.s32 4294967295, %s6392_s15   ;;  %s6140_s17 = sadd.s32 4294967294, %s6392_s15   ;;  %s6392_s15 = sphi %s6434_s15, %s10378_s15   ;;  %s6388_s14 = sphi %s6432_s14, %s10377_s14   ;;  %s6384_s13 = sphi %s6430_s13, %s10376_s13   ;;  %s6380_s12 = sphi %s6428_s12, %s10375_s12  }
   0x7   : > { %p40_p0 = scmp.ne.s32.totalorder %s6384_s13, %s6380_s12  ;;  %p41_p1 = scmp.eq.s32.totalorder %s6449_s16, 0 }
   0x8   : > { %p106_p2 = scmp.eq.s32.totalorder %s6449_s16, 1  ;;  %p112_p3 = scmp.eq.s32.totalorder %s6140_s17, 1 }
   0x9   : > { %p6458_p4 = por %p41_p1, %p40_p0  ;;  %p6141_p5 = scmp.ge.s32.totalorder %s6392_s15, 1 }
   0xa   : > { %p6463_p6 = por %p112_p3, %p40_p0  ;;  %p119_p7 = scmp.lt.s32.totalorder %s6392_s15, 3 }
   0xb   : > { %s130_s22 = sshll.u32 %s9933_s1, 4  ;;  %s6394_s24 = smov [#allocation5]   ;;  %s131_s22 = int_to_ptr.hbm [resolvable:$true] %s130_s22 }
   0xc   : > { %p6471_p8 = pnand %p6141_p5, %p119_p7  ;;  %s132_s25 = sshll.u32 %s6394_s24, 4  ;;  %s133_s25 = int_to_ptr.vmem [resolvable:$true] %s132_s25 }
   0xd   : > { %s6481_s26 = sadd.s32 1, %s6392_s15   ;;  %s6395_s27 = smov 64  }
   0xe   : > { %p6194_p9 = pneg %p6471_p8  ;;  %s6396_s28 = smov 4  }
   0xf   : > { %s24_s29 = ssub.s32 %s6392_s15, %s6481_s26  ;;  %s27_s30 = sadd.s32 1, %s6388_s14 }
  0x10   : > { %p6195_p10 = pnand %p6194_p9, %p41_p1  ;;  %p25_p12 = scmp.eq.s32.totalorder %s24_s29, 0 }
  0x11   : > { %p34_p13 = scmp.ne.s32.totalorder %s6388_s14, %s6384_s13  ;;  %p35_p0 = scmp.eq.s32.totalorder %s6392_s15, 0 }
  0x12   : > { %6197 = dma.hbm_to_vmem [thread:$0]  (!%p6195_p10), %s131_s22, 192, %s133_s25, [#allocation6], %s6395_s27, %s6395_s27, %s6396_s28  }
  0x13   : > { %p6207_p3 = scmp.lt.s32.totalorder %s6392_s15, 2  ;;  %p36_p5 = por %p35_p0, %p34_p13 }
  0x14   : > { %s6491_s4 = scalar_select %p25_p12, %s6388_s14, %s27_s30  }
  0x15   : > { %p6495_p7 = por %p106_p2, %p34_p13  ;;  %s149_s6 = sand.u32 1, %s6388_s14  }
  0x16   : > { %s6184_s7 = sshll.u32 %s6392_s15, 6  ;;  %s6144_s8 = sshll.u32 %s149_s6, 6 }
  0x17   : > { %s158_s11 = scalar_lea.hbm %s9932_s0, %s6184_s7  ;;  %s153_s20 = scalar_lea.vmem [#allocation2], %s6144_s8 }
  0x18   : > { %s159_s17 = sshll.u32 %s158_s11, 4  ;;  %s161_s21 = sshll.u32 %s153_s20, 4  ;;  %s160_s17 = int_to_ptr.hbm [resolvable:$true] %s159_s17  ;;  %s162_s21 = int_to_ptr.vmem [resolvable:$true] %s161_s21 }
  0x19   : > { %p6506_p9 = pnand %p6207_p3, %p36_p5  ;;  %s150_s24 = scalar_lea.sflag [#allocation3], %s149_s6 }
  0x1a   : > { %s6292_s25 = sshra.s32 %s160_s17, 4  ;;  %s6299_s30 = scalar_lea.hbm %s9932_s0, 128  ;;  %s6293_s25 = int_to_ptr.hbm [resolvable:$true] %s6292_s25 }
  0x1b   : > { %s6294_s27 = scalar_lea.hbm %s6293_s25, 64  ;;  %p6296_p10 = pneg %p6506_p9 }
  0x1c   : > { %p6295_p2 = scmp.ne.s32.totalorder %s6293_s25, %s6294_s27  ;;  %p6300_p0 = scmp.lt.s32.totalorder %s6293_s25, %s9932_s0 }
  0x1d   : > { %p6301_p3 = scmp.lt.s32.totalorder %s6299_s30, %s6294_s27 }
  0x1e   : > { %p6297_p12 = pnand %p6296_p10, %p6295_p2 }
  0x1f   : > { %p6302_p5 = por %p6301_p3, %p6300_p0 }
  0x20   : > { %p6298_p13 = pneg %p6297_p12 }
  0x22   : > { %p6303_p11 = pnand %p6302_p5, %p6298_p13 }
  0x24   : > { %6306 = shalt.err (!%p6303_p11)
}
  0x25   : > { %s6397_s6 = smov 128   ;;  %s6398_s9 = smov 8  }
  0x26   : > { %6201 = dma.hbm_to_vmem [thread:$0]  (!%p6506_p9), %s160_s17, 1024, %s162_s21, %s150_s24, %s6397_s6, %s6397_s6, %s6398_s9  }
  0x27   : > { %173 = sbr.rel (%p6471_p8) target bundleno = 2395 (0x95b), region = 32 }
  0x2c   : > { %s6523_s10 = sand.u32 1, %s6384_s13  }
  0x2d   : > { %s6148_s11 = sshll.u32 %s6523_s10, 6  ;;  %s176_s20 = scalar_lea.sflag [#allocation3], %s6523_s10 }
  0x2e   : > { %s179_s25 = scalar_lea.vmem [#allocation2], %s6148_s11 }
  0x2f   : > { %6367 = dma.done.wait (%p6458_p4), %s176_s20, 1024  }
  0x30   : > { %6369 = vsyncadd (%p6458_p4), %s176_s20, 4294966272 }
  0x31   : > { %6371 = dma.done.wait (%p41_p1), [#allocation6], 192  }
  0x32   : > { %6373 = vsyncadd (%p41_p1), [#allocation6], 4294967104  ;;  %v209_v0 = vld [vmem:[%s179_s25] sm:$0xff]  ;;  %v211_v1 = vld [vmem:[%s179_s25 + $0x10] sm:$0xff]  ;;  %vm568_vm0 = vcmask 1040384   ;;  %s6399_s18 = smov 127  }
  0x33   : > { %217 = vxpose.xlu0.b32.start [1/2] (short) (narrow) %v209_v0, 16  ;;  %249 = vxpose.xlu1.b32.start [1/2] (short) (narrow) %v211_v1, 16  ;;  %v213_v2 = vld [vmem:[%s179_s25 + $0x20] sm:$0xff]  ;;  %v210_v3 = vld [vmem:[%s179_s25 + $0x8] sm:$0xff]  ;;  %v212_v4 = vld [vmem:[%s179_s25 + $0x18] sm:$0xff]  ;;  %vm1127_vm1 = vcmask 1047556  }
  0x34   : > { %281 = vxpose.xlu2.b32.start [1/2] (short) (narrow) %v213_v2, 16  ;;  %v214_v5 = vld [vmem:[%s179_s25 + $0x28] sm:$0xff]  ;;  %v215_v6 = vld [vmem:[%s179_s25 + $0x30] sm:$0xff]  ;;  %v216_v7 = vld [vmem:[%s179_s25 + $0x38] sm:$0xff]  ;;  %s6402_s23 = smov 32   ;;  %s6403_s17 = smov 64  }
  0x35   : > { %s6404_s21 = smov 96   ;;  %vm2515_vm2 = vsmask.f32 3328  ;;  %vm2516_vm3 = vsmask.f32 7440  ;;  %vm4340_vm5 = vcmask 1042432  }
  0x36   : > { %vm7003_vm4 = vmor %vm2515_vm2, %vm2516_vm3  ;;  %vm4341_vm6 = vcmask 1046532   ;;  %s6405_s22 = smov 126   ;;  %vm1445_vm8 = vcmask 261120   ;;  %vm1449_vm9 = vcmask 523264   ;;  %vm1452_vm10 = vcmask 785408   ;;  %s6185_s28 = sshll.u32 %s6449_s16, 6 }
  0x37   : > { %vm7043_vm7 = vmor %vm4340_vm5, %vm4341_vm6  ;;  %vm2480_vm11 = vcmask 1041408   ;;  %vm2497_vm12 = vcmask 1043456   ;;  %vm4092_vm13 = vcmask 1045504   ;;  %vm4088_vm14 = vcmask 97280   ;;  %s6055_s7 = scalar_lea.hbm %s9935_s3, %s6185_s28  ;;  %s207_s8 = scalar_lea.vmem [#allocation7], %s6148_s11 }
  0x38   : > { %s6057_s16 = sshll.u32 %s207_s8, 4  ;;  %s6059_s6 = sshll.u32 %s6055_s7, 4  ;;  %s6058_s16 = int_to_ptr.vmem [resolvable:$true] %s6057_s16  ;;  %s6060_s6 = int_to_ptr.hbm [resolvable:$true] %s6059_s6 }
  0x39   : > { %s6044_s9 = scalar_lea.sflag [#allocation4], %s6523_s10  ;;  %s6336_s20 = sshra.s32 %s6060_s6, 4  ;;  %s6337_s20 = int_to_ptr.hbm [resolvable:$true] %s6336_s20 }
  0x3a   : > { %s6338_s11 = scalar_lea.hbm %s6337_s20, 64  ;;  %p6343_p11 = scmp.lt.s32.totalorder %s6337_s20, %s9935_s3 }
  0x3b   : > { %218 = vxpose.xlu0.b32.end [2/2] (short) (narrow) %v210_v3, 16  ;;  %250 = vxpose.xlu1.b32.end [2/2] (short) (narrow) %v212_v4, 16  ;;  %p6339_p1 = scmp.ne.s32.totalorder %s6337_s20, %s6338_s11 }
  0x3c   : > { %282 = vxpose.xlu2.b32.end [2/2] (short) (narrow) %v214_v5, 16 }
  0x3d   : > { %p6340_p4 = pnand %p6339_p1, %p6495_p7 }
  0x3f   : > { %p6341_p8 = pneg %p6340_p4 }
  0x43   : > { %313 = vxpose.xlu0.b32.start [1/2] (short) (narrow) %v215_v6, 16 }
  0x4b   : > { %314 = vxpose.xlu0.b32.end [2/2] (short) (narrow) %v216_v7, 16 }
  0xd7   : > { %v233_v8 = vpop.trf.xlu0  ;;  %v6537_v36 = vpop.trf.xlu1 }
  0xd8   : > { %v353_v9 = vrot.slane %v233_v8, 1  ;;  %v354_v10 = vrot.slane %v233_v8, 2  ;;  %v355_v11 = vrot.slane %v233_v8, 3  ;;  %v356_v12 = vrot.slane %v233_v8, 4 }
  0xd9   : > { %v357_v13 = vrot.slane %v233_v8, 5  ;;  %v358_v14 = vrot.slane %v233_v8, 6  ;;  %v409_v15 = vperm.slane %v233_v8, 0  ;;  %v359_v16 = vrot.slane %v233_v8, 7 }
  0xda   : > { %v410_v17 = vperm.slane %v353_v9, 0  ;;  %v411_v18 = vperm.slane %v354_v10, 0  ;;  %v412_v19 = vperm.slane %v355_v11, 0  ;;  %v413_v20 = vperm.slane %v356_v12, 0 }
  0xdb   : > { %481 = vst [vmem:[#allocation1] ss:$4 sm:$0xff] %v409_v15  ;;  %v414_v21 = vperm.slane %v357_v13, 0  ;;  %v415_v22 = vperm.slane %v358_v14, 0  ;;  %v416_v23 = vperm.slane %v359_v16, 0  ;;  %v473_v38 = vperm.slane %v409_v15, 1  ;;  %v6555_v15 = vpop.trf.xlu2 }
  0xdc   : > { %483 = vst [vmem:[#allocation1 + $0x1] ss:$4 sm:$0xff] %v410_v17  ;;  %v367_v44 = vrot.slane %v6537_v36, 1  ;;  %v368_v47 = vrot.slane %v6537_v36, 2  ;;  %v369_v48 = vrot.slane %v6537_v36, 3  ;;  %v370_v50 = vrot.slane %v6537_v36, 4 }
  0xdd   : > { %485 = vst [vmem:[#allocation1 + $0x2] ss:$4 sm:$0xff] %v411_v18  ;;  %v371_v52 = vrot.slane %v6537_v36, 5  ;;  %v372_v54 = vrot.slane %v6537_v36, 6  ;;  %v373_v55 = vrot.slane %v6537_v36, 7  ;;  %v425_v62 = vperm.slane %v6537_v36, 0 }
  0xde   : > { %487 = vst [vmem:[#allocation1 + $0x3] ss:$4 sm:$0xff] %v412_v19  ;;  %v426_v51 = vperm.slane %v367_v44, 0  ;;  %v427_v53 = vperm.slane %v368_v47, 0  ;;  %v428_v56 = vperm.slane %v369_v48, 0  ;;  %v429_v60 = vperm.slane %v370_v50, 0 }
  0xdf   : > { %489 = vst [vmem:[#allocation1 + $0x20] ss:$4 sm:$0xff] %v413_v20  ;;  %v234_v24 = vpop.trf.xlu0  ;;  %v266_v58 = vpop.trf.xlu1  ;;  %v430_v61 = vperm.slane %v371_v52, 0  ;;  %v431_v63 = vperm.slane %v372_v54, 0  ;;  %v432_v0 = vperm.slane %v373_v55, 0  ;;  %v474_v17 = vperm.slane %v425_v62, 1 }
  0xe0   : > { %491 = vst [vmem:[#allocation1 + $0x21] ss:$4 sm:$0xff] %v414_v21  ;;  %v360_v25 = vrot.slane %v234_v24, 1  ;;  %v361_v26 = vrot.slane %v234_v24, 2  ;;  %v362_v27 = vrot.slane %v234_v24, 3  ;;  %v363_v28 = vrot.slane %v234_v24, 4 }
  0xe1   : > { %493 = vst [vmem:[#allocation1 + $0x22] ss:$4 sm:$0xff] %v415_v22  ;;  %v364_v30 = vrot.slane %v234_v24, 5  ;;  %v365_v32 = vrot.slane %v234_v24, 6  ;;  %v366_v33 = vrot.slane %v234_v24, 7  ;;  %v417_v41 = vperm.slane %v234_v24, 0 }
  0xe2   : > { %495 = vst [vmem:[#allocation1 + $0x23] ss:$4 sm:$0xff] %v416_v23  ;;  %v418_v29 = vperm.slane %v360_v25, 0  ;;  %v419_v31 = vperm.slane %v361_v26, 0  ;;  %v420_v34 = vperm.slane %v362_v27, 0  ;;  %v421_v37 = vperm.slane %v363_v28, 0 }
  0xe3   : > { %v422_v40 = vperm.slane %v364_v30, 0  ;;  %v423_v42 = vperm.slane %v365_v32, 0  ;;  %v6539_v43 = vperm.slane %v366_v33, 0  ;;  %v374_v1 = vrot.slane %v266_v58, 1 }
  0xe4   : > { %v375_v4 = vrot.slane %v266_v58, 2  ;;  %v376_v5 = vrot.slane %v266_v58, 3  ;;  %v377_v6 = vrot.slane %v266_v58, 4  ;;  %v378_v9 = vrot.slane %v266_v58, 5 }
  0xe5   : > { %v496_v35 = vld.sshfl [vmem:[#allocation1] sm:$0xff pattern:$0x73625140]  ;;  %v434_v7 = vperm.slane %v374_v1, 0  ;;  %v379_v11 = vrot.slane %v266_v58, 6  ;;  %v380_v12 = vrot.slane %v266_v58, 7 }
  0xe6   : > { %499 = vst [vmem:[#allocation1 + $0x1] ss:$4 sm:$0xff] %v418_v29  ;;  %v569_v39 = vrot.slane %v496_v35, 7  ;;  %v435_v10 = vperm.slane %v375_v4, 0  ;;  %v436_v13 = vperm.slane %v376_v5, 0  ;;  %v437_v16 = vperm.slane %v377_v6, 0 }
  0xe7   : > { %500 = vst [vmem:[#allocation1 + $0x2] ss:$4 sm:$0xff] %v419_v31  ;;  %v433_v20 = vperm.slane %v266_v58, 0  ;;  %v438_v21 = vperm.slane %v378_v9, 0  ;;  %v439_v22 = vperm.slane %v379_v11, 0  ;;  %v6558_v23 = vperm.slane %v380_v12, 0 }
  0xe8   : > { %501 = vst [vmem:[#allocation1 + $0x3] ss:$4 sm:$0xff] %v420_v34  ;;  %v625_v45 = vsel %vm568_vm0, %v473_v38, %v569_v39  ;;  %v381_v24 = vrot.slane %v6555_v15, 1  ;;  %v382_v27 = vrot.slane %v6555_v15, 2  ;;  %v383_v29 = vrot.slane %v6555_v15, 3 }
  0xe9   : > { %v497_v46 = vld.sshfl [vmem:[#allocation1 + $0x20] sm:$0xff pattern:$0x73625140]  ;;  %498 = vst [vmem:[#allocation1] ss:$4 sm:$0xff] %v417_v41  ;;  %633 = vxpose.xlu1.b32.start [1/5] (short) (narrow) %v625_v45, 16 }
  0xea   : > { %502 = vst [vmem:[#allocation1 + $0x20] ss:$4 sm:$0xff] %v421_v37  ;;  %v570_v49 = vrot.slane %v497_v46, 7  ;;  %v384_v31 = vrot.slane %v6555_v15, 4  ;;  %v442_v32 = vperm.slane %v381_v24, 0  ;;  %v385_v33 = vrot.slane %v6555_v15, 5 }
  0xeb   : > { %503 = vst [vmem:[#allocation1 + $0x21] ss:$4 sm:$0xff] %v422_v40  ;;  %v443_v34 = vperm.slane %v382_v27, 0  ;;  %v386_v35 = vrot.slane %v6555_v15, 6  ;;  %v387_v36 = vrot.slane %v6555_v15, 7  ;;  %v444_v37 = vperm.slane %v383_v29, 0 }
  0xec   : > { %504 = vst [vmem:[#allocation1 + $0x22] ss:$4 sm:$0xff] %v423_v42  ;;  %v571_v59 = vsel %vm568_vm0, %v569_v39, %v570_v49  ;;  %v298_v39 = vpop.trf.xlu2  ;;  %v617_v41 = vperm.slane %v6539_v43, 0  ;;  %v445_v42 = vperm.slane %v384_v31, 0  ;;  %v446_v44 = vperm.slane %v385_v33, 0 }
  0xed   : > { %505 = vst [vmem:[#allocation1 + $0x23] ss:$4 sm:$0xff] %v6539_v43  ;;  %v441_v45 = vperm.slane %v6555_v15, 0  ;;  %v447_v47 = vperm.slane %v386_v35, 0  ;;  %v448_v48 = vperm.slane %v387_v36, 0  ;;  %v389_v43 = vrot.slane %v298_v39, 2 }
  0xee   : > { %v390_v52 = vrot.slane %v298_v39, 3  ;;  %v393_v58 = vrot.slane %v298_v39, 6 }
  0xf0   : > { %v506_v57 = vld.sshfl [vmem:[#allocation1] sm:$0xff pattern:$0x73625140]  ;;  %v455_v5 = vperm.slane %v393_v58, 0 }
  0xf1   : > { %509 = vst [vmem:[#allocation1 + $0x1] ss:$4 sm:$0xff] %v426_v51  ;;  %634 = vxpose.xlu1.b32.cont [2/5] (short) (narrow) %v571_v59, 16  ;;  %v572_v3 = vrot.slane %v506_v57, 7  ;;  %v451_v57 = vperm.slane %v389_v43, 0  ;;  %v394_v59 = vrot.slane %v298_v39, 7 }
  0xf2   : > { %510 = vst [vmem:[#allocation1 + $0x2] ss:$4 sm:$0xff] %v427_v53  ;;  %v391_v53 = vrot.slane %v298_v39, 4 }
  0xf3   : > { %511 = vst [vmem:[#allocation1 + $0x3] ss:$4 sm:$0xff] %v428_v56  ;;  %v573_v8 = vsel %vm568_vm0, %v570_v49, %v572_v3  ;;  %v388_v49 = vrot.slane %v298_v39, 1  ;;  %v392_v56 = vrot.slane %v298_v39, 5  ;;  %v6580_v6 = vperm.slane %v394_v59, 0 }
  0xf4   : > { %v6552_v2 = vld.sshfl [vmem:[#allocation1 + $0x20] sm:$0xff pattern:$0x73625140]  ;;  %508 = vst [vmem:[#allocation1] ss:$4 sm:$0xff] %v425_v62  ;;  %v6577_v62 = vpop.trf.xlu0 }
  0xf5   : > { %512 = vst [vmem:[#allocation1 + $0x20] ss:$4 sm:$0xff] %v429_v60  ;;  %v574_v19 = vrot.slane %v6552_v2, 7  ;;  %v450_v54 = vperm.slane %v388_v49, 0  ;;  %v452_v60 = vperm.slane %v390_v52, 0  ;;  %v454_v4 = vperm.slane %v392_v56, 0 }
  0xf6   : > { %513 = vst [vmem:[#allocation1 + $0x21] ss:$4 sm:$0xff] %v430_v61  ;;  %v397_v12 = vrot.slane %v6577_v62, 3  ;;  %v619_v58 = vperm.slane %v6580_v6, 0 }
  0xf7   : > { %514 = vst [vmem:[#allocation1 + $0x22] ss:$4 sm:$0xff] %v431_v63  ;;  %v575_v28 = vsel %vm568_vm0, %v572_v3, %v574_v19  ;;  %v629_v46 = vsel %vm568_vm0, %v574_v19, %v617_v41  ;;  %v453_v63 = vperm.slane %v391_v53, 0  ;;  %v449_v3 = vperm.slane %v298_v39, 0 }
  0xf8   : > { %515 = vst [vmem:[#allocation1 + $0x23] ss:$4 sm:$0xff] %v432_v0  ;;  %v475_v0 = vperm.slane %v441_v45, 1  ;;  %v401_v19 = vrot.slane %v6577_v62, 7 }
  0xf9   : > { %635 = vxpose.xlu1.b32.cont [3/5] (short) (narrow) %v573_v8, 16  ;;  %v395_v8 = vrot.slane %v6577_v62, 1 }
  0xfa   : > { %v464_v31 = vperm.slane %v401_v19, 0 }
  0xfb   : > { %v516_v14 = vld.sshfl [vmem:[#allocation1] sm:$0xff pattern:$0x73625140]  ;;  %v458_v15 = vperm.slane %v395_v8, 0 }
  0xfc   : > { %519 = vst [vmem:[#allocation1 + $0x1] ss:$4 sm:$0xff] %v434_v7  ;;  %v576_v18 = vrot.slane %v516_v14, 7  ;;  %v398_v14 = vrot.slane %v6577_v62, 4  ;;  %v330_v24 = vpop.trf.xlu0 }
  0xfd   : > { %520 = vst [vmem:[#allocation1 + $0x2] ss:$4 sm:$0xff] %v435_v10  ;;  %v396_v10 = vrot.slane %v6577_v62, 2  ;;  %v403_v35 = vrot.slane %v330_v24, 2  ;;  %v405_v36 = vrot.slane %v330_v24, 4  ;;  %v406_v39 = vrot.slane %v330_v24, 5 }
  0xfe   : > { %521 = vst [vmem:[#allocation1 + $0x3] ss:$4 sm:$0xff] %v436_v13  ;;  %v626_v25 = vsel %vm568_vm0, %v474_v17, %v576_v18  ;;  %v407_v41 = vrot.slane %v330_v24, 6 }
  0xff   : > { %v517_v26 = vld.sshfl [vmem:[#allocation1 + $0x20] sm:$0xff pattern:$0x73625140]  ;;  %518 = vst [vmem:[#allocation1] ss:$4 sm:$0xff] %v433_v20  ;;  %665 = vxpose.xlu2.b32.start [1/5] (short) (narrow) %v626_v25, 16 }
 0x100   : > { %522 = vst [vmem:[#allocation1 + $0x20] ss:$4 sm:$0xff] %v437_v16  ;;  %v577_v30 = vrot.slane %v517_v26, 7  ;;  %v399_v16 = vrot.slane %v6577_v62, 5  ;;  %v459_v17 = vperm.slane %v396_v10, 0  ;;  %v460_v20 = vperm.slane %v397_v12, 0 }
 0x101   : > { %523 = vst [vmem:[#allocation1 + $0x21] ss:$4 sm:$0xff] %v438_v21  ;;  %636 = vxpose.xlu1.b32.cont [4/5] (short) (narrow) %v575_v28, 16  ;;  %v618_v25 = vperm.slane %v6558_v23, 0  ;;  %v461_v26 = vperm.slane %v398_v14, 0  ;;  %v457_v28 = vperm.slane %v6577_v62, 0 }
 0x102   : > { %524 = vst [vmem:[#allocation1 + $0x22] ss:$4 sm:$0xff] %v439_v22  ;;  %v578_v40 = vsel %vm568_vm0, %v576_v18, %v577_v30  ;;  %v400_v18 = vrot.slane %v6577_v62, 6  ;;  %v462_v27 = vperm.slane %v399_v16, 0  ;;  %v471_v43 = vperm.slane %v407_v41, 0 }
 0x103   : > { %525 = vst [vmem:[#allocation1 + $0x23] ss:$4 sm:$0xff] %v6558_v23  ;;  %v404_v23 = vrot.slane %v330_v24, 3 }
 0x106   : > { %v526_v38 = vld.sshfl [vmem:[#allocation1] sm:$0xff pattern:$0x73625140] }
 0x107   : > { %529 = vst [vmem:[#allocation1 + $0x1] ss:$4 sm:$0xff] %v442_v32  ;;  %666 = vxpose.xlu2.b32.cont [2/5] (short) (narrow) %v578_v40, 16  ;;  %v579_v51 = vrot.slane %v526_v38, 7  ;;  %v402_v32 = vrot.slane %v330_v24, 1  ;;  %v467_v40 = vperm.slane %v403_v35, 0 }
 0x108   : > { %530 = vst [vmem:[#allocation1 + $0x2] ss:$4 sm:$0xff] %v443_v34 }
 0x109   : > { %531 = vst [vmem:[#allocation1 + $0x3] ss:$4 sm:$0xff] %v444_v37  ;;  %637 = vxpose.xlu1.b32.end [5/5] (short) (narrow) %v629_v46, 16  ;;  %v580_v55 = vsel %vm568_vm0, %v577_v30, %v579_v51  ;;  %v463_v30 = vperm.slane %v400_v18, 0  ;;  %v466_v37 = vperm.slane %v402_v32, 0  ;;  %v465_v46 = vperm.slane %v330_v24, 0 }
 0x10a   : > { %v6574_v50 = vld.sshfl [vmem:[#allocation1 + $0x20] sm:$0xff pattern:$0x73625140]  ;;  %528 = vst [vmem:[#allocation1] ss:$4 sm:$0xff] %v441_v45 }
 0x10b   : > { %532 = vst [vmem:[#allocation1 + $0x20] ss:$4 sm:$0xff] %v445_v42  ;;  %v581_v2 = vrot.slane %v6574_v50, 7  ;;  %v408_v42 = vrot.slane %v330_v24, 7 }
 0x10c   : > { %533 = vst [vmem:[#allocation1 + $0x21] ss:$4 sm:$0xff] %v446_v44  ;;  %v468_v44 = vperm.slane %v404_v23, 0 }
 0x10d   : > { %534 = vst [vmem:[#allocation1 + $0x22] ss:$4 sm:$0xff] %v447_v47  ;;  %v582_v11 = vsel %vm568_vm0, %v579_v51, %v581_v2  ;;  %v630_v29 = vsel %vm568_vm0, %v581_v2, %v618_v25  ;;  %v469_v47 = vperm.slane %v405_v36, 0  ;;  %v470_v51 = vperm.slane %v406_v39, 0 }
 0x10e   : > { %535 = vst [vmem:[#allocation1 + $0x23] ss:$4 sm:$0xff] %v448_v48  ;;  %v476_v48 = vperm.slane %v457_v28, 1  ;;  %v472_v52 = vperm.slane %v408_v42, 0 }
 0x10f   : > { %667 = vxpose.xlu2.b32.cont [3/5] (short) (narrow) %v580_v55, 16 }
 0x110   : > { %v620_v2 = vperm.slane %v472_v52, 0 }
 0x111   : > { %v536_v61 = vld.sshfl [vmem:[#allocation1] sm:$0xff pattern:$0x73625140] }
 0x112   : > { %539 = vst [vmem:[#allocation1 + $0x1] ss:$4 sm:$0xff] %v450_v54  ;;  %v583_v1 = vrot.slane %v536_v61, 7 }
 0x113   : > { %540 = vst [vmem:[#allocation1 + $0x2] ss:$4 sm:$0xff] %v451_v57 }
 0x114   : > { %541 = vst [vmem:[#allocation1 + $0x3] ss:$4 sm:$0xff] %v452_v60  ;;  %v627_v7 = vsel %vm568_vm0, %v475_v0, %v583_v1 }
 0x115   : > { %v537_v9 = vld.sshfl [vmem:[#allocation1 + $0x20] sm:$0xff pattern:$0x73625140]  ;;  %538 = vst [vmem:[#allocation1] ss:$4 sm:$0xff] %v449_v3  ;;  %697 = vxpose.xlu0.b32.start [1/5] (short) (narrow) %v627_v7, 16 }
 0x116   : > { %542 = vst [vmem:[#allocation1 + $0x20] ss:$4 sm:$0xff] %v453_v63  ;;  %v584_v13 = vrot.slane %v537_v9, 7 }
 0x117   : > { %543 = vst [vmem:[#allocation1 + $0x21] ss:$4 sm:$0xff] %v454_v4  ;;  %668 = vxpose.xlu2.b32.cont [4/5] (short) (narrow) %v582_v11, 16 }
 0x118   : > { %544 = vst [vmem:[#allocation1 + $0x22] ss:$4 sm:$0xff] %v455_v5  ;;  %v585_v22 = vsel %vm568_vm0, %v583_v1, %v584_v13 }
 0x119   : > { %545 = vst [vmem:[#allocation1 + $0x23] ss:$4 sm:$0xff] %v6580_v6 }
 0x11c   : > { %v546_v21 = vld.sshfl [vmem:[#allocation1] sm:$0xff pattern:$0x73625140] }
 0x11d   : > { %549 = vst [vmem:[#allocation1 + $0x1] ss:$4 sm:$0xff] %v458_v15  ;;  %698 = vxpose.xlu0.b32.cont [2/5] (short) (narrow) %v585_v22, 16  ;;  %v586_v34 = vrot.slane %v546_v21, 7 }
 0x11e   : > { %550 = vst [vmem:[#allocation1 + $0x2] ss:$4 sm:$0xff] %v459_v17 }
 0x11f   : > { %551 = vst [vmem:[#allocation1 + $0x3] ss:$4 sm:$0xff] %v460_v20  ;;  %669 = vxpose.xlu2.b32.end [5/5] (short) (narrow) %v630_v29, 16  ;;  %v587_v38 = vsel %vm568_vm0, %v584_v13, %v586_v34 }
 0x120   : > { %v547_v33 = vld.sshfl [vmem:[#allocation1 + $0x20] sm:$0xff pattern:$0x73625140]  ;;  %548 = vst [vmem:[#allocation1] ss:$4 sm:$0xff] %v457_v28 }
 0x121   : > { %552 = vst [vmem:[#allocation1 + $0x20] ss:$4 sm:$0xff] %v461_v26  ;;  %v588_v50 = vrot.slane %v547_v33, 7 }
 0x122   : > { %553 = vst [vmem:[#allocation1 + $0x21] ss:$4 sm:$0xff] %v462_v27 }
 0x123   : > { %554 = vst [vmem:[#allocation1 + $0x22] ss:$4 sm:$0xff] %v463_v30  ;;  %v589_v55 = vsel %vm568_vm0, %v586_v34, %v588_v50  ;;  %v631_v60 = vsel %vm568_vm0, %v588_v50, %v619_v58 }
 0x124   : > { %555 = vst [vmem:[#allocation1 + $0x23] ss:$4 sm:$0xff] %v464_v31 }
 0x125   : > { %699 = vxpose.xlu0.b32.cont [3/5] (short) (narrow) %v587_v38, 16 }
 0x127   : > { %v556_v45 = vld.sshfl [vmem:[#allocation1] sm:$0xff pattern:$0x73625140] }
 0x128   : > { %559 = vst [vmem:[#allocation1 + $0x1] ss:$4 sm:$0xff] %v466_v37  ;;  %v590_v49 = vrot.slane %v556_v45, 7 }
 0x129   : > { %560 = vst [vmem:[#allocation1 + $0x2] ss:$4 sm:$0xff] %v467_v40 }
 0x12a   : > { %561 = vst [vmem:[#allocation1 + $0x3] ss:$4 sm:$0xff] %v468_v44  ;;  %v628_v53 = vsel %vm568_vm0, %v476_v48, %v590_v49 }
 0x12b   : > { %v557_v54 = vld.sshfl [vmem:[#allocation1 + $0x20] sm:$0xff pattern:$0x73625140]  ;;  %558 = vst [vmem:[#allocation1] ss:$4 sm:$0xff] %v465_v46  ;;  %729 = vxpose.xlu1.b32.start [1/5] (short) (narrow) %v628_v53, 16 }
 0x12c   : > { %562 = vst [vmem:[#allocation1 + $0x20] ss:$4 sm:$0xff] %v469_v47  ;;  %v591_v56 = vrot.slane %v557_v54, 7 }
 0x12d   : > { %563 = vst [vmem:[#allocation1 + $0x21] ss:$4 sm:$0xff] %v470_v51  ;;  %700 = vxpose.xlu0.b32.cont [4/5] (short) (narrow) %v589_v55, 16 }
 0x12e   : > { %564 = vst [vmem:[#allocation1 + $0x22] ss:$4 sm:$0xff] %v471_v43  ;;  %v592_v57 = vsel %vm568_vm0, %v590_v49, %v591_v56 }
 0x12f   : > { %565 = vst [vmem:[#allocation1 + $0x23] ss:$4 sm:$0xff] %v472_v52 }
 0x132   : > { %v566_v59 = vld.sshfl [vmem:[#allocation1] sm:$0xff pattern:$0x73625140] }
 0x133   : > { %730 = vxpose.xlu1.b32.cont [2/5] (short) (narrow) %v592_v57, 16  ;;  %v593_v61 = vrot.slane %v566_v59, 7 }
 0x135   : > { %701 = vxpose.xlu0.b32.end [5/5] (short) (narrow) %v631_v60, 16  ;;  %v594_v62 = vsel %vm568_vm0, %v591_v56, %v593_v61 }
 0x136   : > { %v567_v63 = vld.sshfl [vmem:[#allocation1 + $0x20] sm:$0xff pattern:$0x73625140] }
 0x137   : > { %v595_v0 = vrot.slane %v567_v63, 7 }
 0x139   : > { %v596_v1 = vsel %vm568_vm0, %v593_v61, %v595_v0  ;;  %v632_v3 = vsel %vm568_vm0, %v595_v0, %v620_v2 }
 0x13b   : > { %731 = vxpose.xlu1.b32.cont [3/5] (short) (narrow) %v594_v62, 16 }
 0x143   : > { %732 = vxpose.xlu1.b32.cont [4/5] (short) (narrow) %v596_v1, 16 }
 0x14b   : > { %733 = vxpose.xlu1.b32.end [5/5] (short) (narrow) %v632_v3, 16 }
 0x18d   : > { %v649_v4 = vpop.trf.xlu1 }
 0x18e   : > { %v769_v5 = vrot.slane %v649_v4, 1  ;;  %v770_v6 = vrot.slane %v649_v4, 2  ;;  %v771_v7 = vrot.slane %v649_v4, 3  ;;  %v772_v8 = vrot.slane %v649_v4, 4 }
 0x18f   : > { %v773_v9 = vrot.slane %v649_v4, 5  ;;  %v774_v10 = vrot.slane %v649_v4, 6  ;;  %v825_v11 = vperm.slane %v649_v4, 0  ;;  %v775_v12 = vrot.slane %v649_v4, 7 }
 0x190   : > { %v826_v13 = vperm.slane %v769_v5, 0  ;;  %v827_v14 = vperm.slane %v770_v6, 0  ;;  %v828_v15 = vperm.slane %v771_v7, 0  ;;  %v829_v16 = vperm.slane %v772_v8, 0 }
 0x191   : > { %897 = vst [vmem:[#allocation1] ss:$4 sm:$0xff] %v825_v11  ;;  %v830_v17 = vperm.slane %v773_v9, 0  ;;  %v831_v18 = vperm.slane %v774_v10, 0  ;;  %v832_v19 = vperm.slane %v775_v12, 0  ;;  %v889_v36 = vperm.slane %v825_v11, 1 }
 0x192   : > { %899 = vst [vmem:[#allocation1 + $0x1] ss:$4 sm:$0xff] %v826_v13 }
 0x193   : > { %901 = vst [vmem:[#allocation1 + $0x2] ss:$4 sm:$0xff] %v827_v14 }
 0x194   : > { %903 = vst [vmem:[#allocation1 + $0x3] ss:$4 sm:$0xff] %v828_v15 }
 0x195   : > { %905 = vst [vmem:[#allocation1 + $0x20] ss:$4 sm:$0xff] %v829_v16  ;;  %v650_v20 = vpop.trf.xlu1 }
 0x196   : > { %907 = vst [vmem:[#allocation1 + $0x21] ss:$4 sm:$0xff] %v830_v17  ;;  %v776_v21 = vrot.slane %v650_v20, 1  ;;  %v777_v22 = vrot.slane %v650_v20, 2  ;;  %v778_v24 = vrot.slane %v650_v20, 3  ;;  %v779_v25 = vrot.slane %v650_v20, 4 }
 0x197   : > { %909 = vst [vmem:[#allocation1 + $0x22] ss:$4 sm:$0xff] %v831_v18  ;;  %v780_v27 = vrot.slane %v650_v20, 5  ;;  %v781_v29 = vrot.slane %v650_v20, 6  ;;  %v782_v30 = vrot.slane %v650_v20, 7  ;;  %v833_v35 = vperm.slane %v650_v20, 0 }
 0x198   : > { %911 = vst [vmem:[#allocation1 + $0x23] ss:$4 sm:$0xff] %v832_v19  ;;  %v834_v26 = vperm.slane %v776_v21, 0  ;;  %v835_v28 = vperm.slane %v777_v22, 0  ;;  %v836_v31 = vperm.slane %v778_v24, 0  ;;  %v837_v33 = vperm.slane %v779_v25, 0  ;;  %v6605_v34 = vpop.trf.xlu2 }
 0x199   : > { %v838_v23 = vperm.slane %v780_v27, 0  ;;  %v839_v38 = vperm.slane %v781_v29, 0  ;;  %v840_v39 = vperm.slane %v782_v30, 0  ;;  %v783_v41 = vrot.slane %v6605_v34, 1 }
 0x19a   : > { %v784_v44 = vrot.slane %v6605_v34, 2  ;;  %v785_v47 = vrot.slane %v6605_v34, 3  ;;  %v786_v49 = vrot.slane %v6605_v34, 4  ;;  %v787_v43 = vrot.slane %v6605_v34, 5 }
 0x19b   : > { %v912_v32 = vld.sshfl [vmem:[#allocation1] sm:$0xff pattern:$0x73625140]  ;;  %v842_v50 = vperm.slane %v783_v41, 0  ;;  %v788_v53 = vrot.slane %v6605_v34, 6  ;;  %v789_v55 = vrot.slane %v6605_v34, 7 }
 0x19c   : > { %915 = vst [vmem:[#allocation1 + $0x1] ss:$4 sm:$0xff] %v834_v26  ;;  %v984_v37 = vrot.slane %v912_v32, 7  ;;  %v843_v52 = vperm.slane %v784_v44, 0  ;;  %v844_v54 = vperm.slane %v785_v47, 0  ;;  %v845_v57 = vperm.slane %v786_v49, 0 }
 0x19d   : > { %916 = vst [vmem:[#allocation1 + $0x2] ss:$4 sm:$0xff] %v835_v28  ;;  %v846_v59 = vperm.slane %v787_v43, 0  ;;  %v841_v61 = vperm.slane %v6605_v34, 0  ;;  %v847_v62 = vperm.slane %v788_v53, 0  ;;  %v848_v1 = vperm.slane %v789_v55, 0 }
 0x19e   : > { %917 = vst [vmem:[#allocation1 + $0x3] ss:$4 sm:$0xff] %v836_v31  ;;  %v1040_v42 = vsel %vm568_vm0, %v889_v36, %v984_v37  ;;  %v1032_v3 = vperm.slane %v840_v39, 0 }
 0x19f   : > { %v913_v40 = vld.sshfl [vmem:[#allocation1 + $0x20] sm:$0xff pattern:$0x73625140]  ;;  %914 = vst [vmem:[#allocation1] ss:$4 sm:$0xff] %v833_v35  ;;  %v6610_v45 = vpack.c.bf16 %v1040_v42, %v1040_v42  ;;  %v890_v21 = vperm.slane %v841_v61, 1 }
 0x1a0   : > { %918 = vst [vmem:[#allocation1 + $0x20] ss:$4 sm:$0xff] %v837_v33  ;;  %v985_v46 = vrot.slane %v913_v40, 7  ;;  %v682_v60 = vpop.trf.xlu2 }
 0x1a1   : > { %919 = vst [vmem:[#allocation1 + $0x21] ss:$4 sm:$0xff] %v838_v23  ;;  %v790_v4 = vrot.slane %v682_v60, 1  ;;  %v791_v6 = vrot.slane %v682_v60, 2  ;;  %v792_v7 = vrot.slane %v682_v60, 3  ;;  %v793_v10 = vrot.slane %v682_v60, 4 }
 0x1a2   : > { %920 = vst [vmem:[#allocation1 + $0x22] ss:$4 sm:$0xff] %v839_v38  ;;  %v986_v48 = vsel %vm568_vm0, %v984_v37, %v985_v46  ;;  %v794_v12 = vrot.slane %v682_v60, 5  ;;  %v795_v14 = vrot.slane %v682_v60, 6  ;;  %v849_v15 = vperm.slane %v682_v60, 0 }
 0x1a3   : > { %921 = vst [vmem:[#allocation1 + $0x23] ss:$4 sm:$0xff] %v840_v39  ;;  %1520 = vrot.lane.b32.xlu0 %v6610_v45, %s6399_s18  ;;  %v6617_v51 = vpack.c.bf16 %v986_v48, %v986_v48  ;;  %v850_v13 = vperm.slane %v790_v4, 0  ;;  %v851_v16 = vperm.slane %v791_v6, 0  ;;  %v796_v17 = vrot.slane %v682_v60, 7 }
 0x1a4   : > { %v852_v18 = vperm.slane %v792_v7, 0  ;;  %v853_v20 = vperm.slane %v793_v10, 0  ;;  %v854_v24 = vperm.slane %v794_v12, 0  ;;  %v855_v25 = vperm.slane %v795_v14, 0 }
 0x1a5   : > { %1522 = vrot.lane.b32.xlu2 %v6617_v51, %s6399_s18  ;;  %v6639_v28 = vperm.slane %v796_v17, 0 }
 0x1a6   : > { %v922_v56 = vld.sshfl [vmem:[#allocation1] sm:$0xff pattern:$0x73625140] }
 0x1a7   : > { %925 = vst [vmem:[#allocation1 + $0x1] ss:$4 sm:$0xff] %v842_v50  ;;  %v987_v58 = vrot.slane %v922_v56, 7 }
 0x1a8   : > { %926 = vst [vmem:[#allocation1 + $0x2] ss:$4 sm:$0xff] %v843_v52 }
 0x1a9   : > { %927 = vst [vmem:[#allocation1 + $0x3] ss:$4 sm:$0xff] %v844_v54  ;;  %v988_v63 = vsel %vm568_vm0, %v985_v46, %v987_v58 }
 0x1aa   : > { %v923_v0 = vld.sshfl [vmem:[#allocation1 + $0x20] sm:$0xff pattern:$0x73625140]  ;;  %v6626_v2 = vpack.c.bf16 %v988_v63, %v988_v63  ;;  %924 = vst [vmem:[#allocation1] ss:$4 sm:$0xff] %v841_v61 }
 0x1ab   : > { %928 = vst [vmem:[#allocation1 + $0x20] ss:$4 sm:$0xff] %v845_v57  ;;  %v989_v5 = vrot.slane %v923_v0, 7 }
 0x1ac   : > { %929 = vst [vmem:[#allocation1 + $0x21] ss:$4 sm:$0xff] %v846_v59  ;;  %1524 = vrot.lane.b32.xlu1 %v6626_v2, %s6399_s18 }
 0x1ad   : > { %930 = vst [vmem:[#allocation1 + $0x22] ss:$4 sm:$0xff] %v847_v62  ;;  %v990_v8 = vsel %vm568_vm0, %v987_v58, %v989_v5  ;;  %v6632_v9 = vsel %vm568_vm0, %v989_v5, %v1032_v3 }
 0x1ae   : > { %931 = vst [vmem:[#allocation1 + $0x23] ss:$4 sm:$0xff] %v848_v1  ;;  %v6634_v11 = vpack.c.bf16 %v990_v8, %v990_v8 }
 0x1b0   : > { %1526 = vrot.lane.b32.xlu0 %v6634_v11, %s6399_s18 }
 0x1b1   : > { %v932_v19 = vld.sshfl [vmem:[#allocation1] sm:$0xff pattern:$0x73625140] }
 0x1b2   : > { %v991_v22 = vrot.slane %v932_v19, 7  ;;  %934 = vst [vmem:[#allocation1] ss:$4 sm:$0xff] %v849_v15 }
 0x1b3   : > { %935 = vst [vmem:[#allocation1 + $0x1] ss:$4 sm:$0xff] %v850_v13 }
 0x1b4   : > { %v1041_v26 = vsel %vm568_vm0, %v890_v21, %v991_v22  ;;  %936 = vst [vmem:[#allocation1 + $0x2] ss:$4 sm:$0xff] %v851_v16 }
 0x1b5   : > { %v933_v27 = vld.sshfl [vmem:[#allocation1 + $0x20] sm:$0xff pattern:$0x73625140]  ;;  %v6641_v29 = vpack.c.bf16 %v1041_v26, %v1041_v26  ;;  %937 = vst [vmem:[#allocation1 + $0x3] ss:$4 sm:$0xff] %v852_v18 }
 0x1b6   : > { %938 = vst [vmem:[#allocation1 + $0x20] ss:$4 sm:$0xff] %v853_v20  ;;  %v992_v30 = vrot.slane %v933_v27, 7 }
 0x1b7   : > { %939 = vst [vmem:[#allocation1 + $0x21] ss:$4 sm:$0xff] %v854_v24  ;;  %1528 = vrot.lane.b32.xlu2 %v6641_v29, %s6399_s18 }
 0x1b8   : > { %940 = vst [vmem:[#allocation1 + $0x22] ss:$4 sm:$0xff] %v855_v25  ;;  %v993_v31 = vsel %vm568_vm0, %v991_v22, %v992_v30 }
 0x1b9   : > { %941 = vst [vmem:[#allocation1 + $0x23] ss:$4 sm:$0xff] %v6639_v28  ;;  %v6647_v32 = vpop.trf.xlu0  ;;  %v6649_v33 = vpack.c.bf16 %v993_v31, %v993_v31 }
 0x1ba   : > { %v797_v34 = vrot.slane %v6647_v32, 1  ;;  %v798_v35 = vrot.slane %v6647_v32, 2  ;;  %v799_v23 = vrot.slane %v6647_v32, 3  ;;  %v800_v36 = vrot.slane %v6647_v32, 4 }
 0x1bb   : > { %1530 = vrot.lane.b32.xlu1 %v6649_v33, %s6399_s18  ;;  %v801_v37 = vrot.slane %v6647_v32, 5  ;;  %v802_v39 = vrot.slane %v6647_v32, 6  ;;  %v857_v40 = vperm.slane %v6647_v32, 0  ;;  %v803_v42 = vrot.slane %v6647_v32, 7 }
 0x1bc   : > { %v858_v38 = vperm.slane %v797_v34, 0  ;;  %v859_v41 = vperm.slane %v798_v35, 0  ;;  %v860_v44 = vperm.slane %v799_v23, 0  ;;  %v6661_v46 = vld.sshfl [vmem:[#allocation1] sm:$0xff pattern:$0x73625140]  ;;  %v1070_v32 = vpack.i.b16 %v6641_v29, %v6610_v45 }
 0x1bd   : > { %v861_v47 = vperm.slane %v800_v36, 0  ;;  %v994_v48 = vrot.slane %v6661_v46, 7  ;;  %944 = vst [vmem:[#allocation1] ss:$4 sm:$0xff] %v857_v40  ;;  %v862_v49 = vperm.slane %v801_v37, 0  ;;  %v863_v43 = vperm.slane %v802_v39, 0 }
 0x1be   : > { %945 = vst [vmem:[#allocation1 + $0x1] ss:$4 sm:$0xff] %v858_v38  ;;  %v864_v54 = vperm.slane %v803_v42, 0  ;;  %v9945_v23 = vshrl.u32 %v6641_v29, 16  ;;  %v6400_v36 = vmov 1983009808  }
 0x1bf   : > { %v6671_v52 = vsel %vm568_vm0, %v992_v30, %v994_v48  ;;  %946 = vst [vmem:[#allocation1 + $0x2] ss:$4 sm:$0xff] %v859_v41  ;;  %v1118_v37 = vunpack.c.l.s4 %v6400_v36  ;;  %v891_v38 = vperm.slane %v857_v40, 1 }
 0x1c0   : > { %v6666_v50 = vld.sshfl [vmem:[#allocation1 + $0x20] sm:$0xff pattern:$0x73625140]  ;;  %947 = vst [vmem:[#allocation1 + $0x3] ss:$4 sm:$0xff] %v860_v44 }
 0x1c1   : > { %v714_v53 = vpop.trf.xlu0  ;;  %948 = vst [vmem:[#allocation1 + $0x20] ss:$4 sm:$0xff] %v861_v47 }
 0x1c2   : > { %v804_v55 = vrot.slane %v714_v53, 1  ;;  %949 = vst [vmem:[#allocation1 + $0x21] ss:$4 sm:$0xff] %v862_v49  ;;  %v805_v56 = vrot.slane %v714_v53, 2  ;;  %v806_v57 = vrot.slane %v714_v53, 3  ;;  %v807_v58 = vrot.slane %v714_v53, 4 }
 0x1c3   : > { %950 = vst [vmem:[#allocation1 + $0x22] ss:$4 sm:$0xff] %v863_v43  ;;  %v808_v59 = vrot.slane %v714_v53, 5  ;;  %v809_v61 = vrot.slane %v714_v53, 6  ;;  %v865_v62 = vperm.slane %v714_v53, 0  ;;  %v810_v0 = vrot.slane %v714_v53, 7 }
 0x1c4   : > { %951 = vst [vmem:[#allocation1 + $0x23] ss:$4 sm:$0xff] %v864_v54  ;;  %v866_v60 = vperm.slane %v804_v55, 0  ;;  %v867_v63 = vperm.slane %v805_v56, 0  ;;  %v868_v1 = vperm.slane %v806_v57, 0  ;;  %v869_v4 = vperm.slane %v807_v58, 0 }
 0x1c5   : > { %v870_v5 = vperm.slane %v808_v59, 0  ;;  %v871_v6 = vperm.slane %v809_v61, 0  ;;  %v6675_v7 = vperm.slane %v810_v0, 0  ;;  %v9951_v43 = vshrl.u32 %v6610_v45, 16 }
 0x1c6   : > { %v6696_v55 = vunpack.c.0.s8 %v1118_v37  ;;  %v6401_v61 = vmov 1934713408  }
 0x1c7   : > { %v6673_v3 = vld.sshfl [vmem:[#allocation1] sm:$0xff pattern:$0x73625140]  ;;  %v1073_v58 = vpack.i.b16 %v9945_v23, %v9951_v43 }
 0x1c8   : > { %954 = vst [vmem:[#allocation1] ss:$4 sm:$0xff] %v865_v62  ;;  %v998_v31 = vrot.slane %v6673_v3, 7  ;;  %v1132_v62 = vunpack.c.l.s4 %v6401_v61  ;;  %v6710_v0 = vperm.slane %v1070_v32, %v6696_v55 }
 0x1c9   : > { %955 = vst [vmem:[#allocation1 + $0x1] ss:$4 sm:$0xff] %v866_v60  ;;  %v1147_v3 = vperm.slane %v1073_v58, %v6696_v55 }
 0x1ca   : > { %956 = vst [vmem:[#allocation1 + $0x2] ss:$4 sm:$0xff] %v867_v63  ;;  %v1042_v49 = vsel %vm568_vm0, %v891_v38, %v998_v31 }
 0x1cb   : > { %957 = vst [vmem:[#allocation1 + $0x3] ss:$4 sm:$0xff] %v868_v1  ;;  %v6677_v8 = vld.sshfl [vmem:[#allocation1 + $0x20] sm:$0xff pattern:$0x73625140]  ;;  %v6704_v59 = vpack.c.bf16 %v1042_v49, %v1042_v49 }
 0x1cc   : > { %958 = vst [vmem:[#allocation1 + $0x20] ss:$4 sm:$0xff] %v869_v4 }
 0x1cd   : > { %959 = vst [vmem:[#allocation1 + $0x21] ss:$4 sm:$0xff] %v870_v5  ;;  %v9944_v5 = vshrl.u32 %v6704_v59, 16 }
 0x1ce   : > { %960 = vst [vmem:[#allocation1 + $0x22] ss:$4 sm:$0xff] %v871_v6 }
 0x1cf   : > { %v745_v10 = vpop.trf.xlu1  ;;  %961 = vst [vmem:[#allocation1 + $0x23] ss:$4 sm:$0xff] %v6675_v7 }
 0x1d0   : > { %v811_v12 = vrot.slane %v745_v10, 1  ;;  %v812_v13 = vrot.slane %v745_v10, 2  ;;  %v813_v14 = vrot.slane %v745_v10, 3  ;;  %v873_v16 = vperm.slane %v745_v10, 0 }
 0x1d1   : > { %v814_v20 = vrot.slane %v745_v10, 4  ;;  %v815_v21 = vrot.slane %v745_v10, 5  ;;  %v816_v22 = vrot.slane %v745_v10, 6  ;;  %v817_v39 = vrot.slane %v745_v10, 7 }
 0x1d2   : > { %v874_v15 = vperm.slane %v811_v12, 0  ;;  %v875_v17 = vperm.slane %v812_v13, 0  ;;  %v876_v18 = vperm.slane %v813_v14, 0  ;;  %v6680_v19 = vld.sshfl [vmem:[#allocation1] sm:$0xff pattern:$0x73625140]  ;;  %v6721_v14 = vunpack.c.0.s8 %v1132_v62 }
 0x1d3   : > { %964 = vst [vmem:[#allocation1] ss:$4 sm:$0xff] %v873_v16  ;;  %v877_v25 = vperm.slane %v814_v20, 0  ;;  %v878_v27 = vperm.slane %v815_v21, 0  ;;  %v879_v34 = vperm.slane %v816_v22, 0  ;;  %v880_v40 = vperm.slane %v817_v39, 0 }
 0x1d4   : > { %965 = vst [vmem:[#allocation1 + $0x1] ss:$4 sm:$0xff] %v874_v15  ;;  %v892_v56 = vperm.slane %v873_v16, 1  ;;  %v999_v15 = vrot.slane %v6677_v8, 7  ;;  %v9950_v21 = vshrl.u32 %v6617_v51, 16  ;;  %v9942_v22 = vshrl.u32 %v6649_v33, 16 }
 0x1d5   : > { %966 = vst [vmem:[#allocation1 + $0x2] ss:$4 sm:$0xff] %v875_v17  ;;  %v1001_v58 = vrot.slane %v6680_v19, 7 }
 0x1d6   : > { %967 = vst [vmem:[#allocation1 + $0x3] ss:$4 sm:$0xff] %v876_v18  ;;  %v6692_v42 = vld.sshfl [vmem:[#allocation1 + $0x20] sm:$0xff pattern:$0x73625140]  ;;  %v1129_v18 = vrot.slane %v6710_v0, 4 }
 0x1d7   : > { %v6682_v24 = vpop.trf.xlu1  ;;  %968 = vst [vmem:[#allocation1 + $0x20] ss:$4 sm:$0xff] %v877_v25 }
 0x1d8   : > { %v818_v26 = vrot.slane %v6682_v24, 1  ;;  %v819_v30 = vrot.slane %v6682_v24, 2  ;;  %v820_v35 = vrot.slane %v6682_v24, 3  ;;  %v881_v41 = vperm.slane %v6682_v24, 0  ;;  %969 = vst [vmem:[#allocation1 + $0x21] ss:$4 sm:$0xff] %v878_v27 }
 0x1d9   : > { %970 = vst [vmem:[#allocation1 + $0x22] ss:$4 sm:$0xff] %v879_v34  ;;  %v821_v1 = vrot.slane %v6682_v24, 4  ;;  %v822_v4 = vrot.slane %v6682_v24, 5  ;;  %v823_v12 = vrot.slane %v6682_v24, 6  ;;  %v824_v13 = vrot.slane %v6682_v24, 7 }
 0x1da   : > { %v882_v44 = vperm.slane %v818_v26, 0  ;;  %v883_v47 = vperm.slane %v819_v30, 0  ;;  %v884_v54 = vperm.slane %v820_v35, 0  ;;  %971 = vst [vmem:[#allocation1 + $0x23] ss:$4 sm:$0xff] %v880_v40  ;;  %v1155_v26 = vrot.slane %v1147_v3, 4 }
 0x1db   : > { %v885_v20 = vperm.slane %v821_v1, 0  ;;  %v886_v24 = vperm.slane %v822_v4, 0  ;;  %v887_v27 = vperm.slane %v823_v12, 0  ;;  %v6737_v30 = vperm.slane %v824_v13, 0 }
 0x1dc   : > { %v1000_v34 = vsel %vm568_vm0, %v998_v31, %v999_v15  ;;  %v1085_v31 = vpack.i.b16 %v9942_v22, %v9950_v21  ;;  %v6763_v40 = vpack.c.bf16 %v6671_v52, %v6671_v52 }
 0x1dd   : > { %v972_v53 = vld.sshfl [vmem:[#allocation1] sm:$0xff pattern:$0x73625140] }
 0x1de   : > { %v1005_v57 = vrot.slane %v972_v53, 7  ;;  %974 = vst [vmem:[#allocation1] ss:$4 sm:$0xff] %v881_v41  ;;  %v1199_v52 = vperm.slane %v1085_v31, %v6696_v55 }
 0x1df   : > { %975 = vst [vmem:[#allocation1 + $0x1] ss:$4 sm:$0xff] %v882_v44  ;;  %v1082_v44 = vpack.i.b16 %v6649_v33, %v6617_v51 }
 0x1e0   : > { %v1043_v60 = vsel %vm568_vm0, %v892_v56, %v1005_v57  ;;  %976 = vst [vmem:[#allocation1 + $0x2] ss:$4 sm:$0xff] %v883_v47  ;;  %v6751_v47 = vpack.c.bf16 %v1000_v34, %v1000_v34  ;;  %v1207_v34 = vrot.slane %v1199_v52, 4 }
 0x1e1   : > { %v6707_v63 = vpack.c.bf16 %v1043_v60, %v1043_v60  ;;  %977 = vst [vmem:[#allocation1 + $0x3] ss:$4 sm:$0xff] %v884_v54  ;;  %v973_v37 = vld.sshfl [vmem:[#allocation1 + $0x20] sm:$0xff pattern:$0x73625140]  ;;  %v996_v60 = vrot.slane %v6666_v50, 7  ;;  %v6771_v1 = vperm.slane %v1082_v44, %v6696_v55 }
 0x1e2   : > { %v1006_v41 = vrot.slane %v973_v37, 7  ;;  %978 = vst [vmem:[#allocation1 + $0x20] ss:$4 sm:$0xff] %v885_v20  ;;  %v9936_v20 = vshrl.u32 %v6763_v40, 16  ;;  %v1003_v44 = vrot.slane %v6692_v42, 7 }
 0x1e3   : > { %v9943_v6 = vshrl.u32 %v6707_v63, 16  ;;  %v1076_v10 = vpack.i.b16 %v6707_v63, %v6704_v59  ;;  %979 = vst [vmem:[#allocation1 + $0x21] ss:$4 sm:$0xff] %v886_v24 }
 0x1e4   : > { %v1007_v54 = vsel %vm568_vm0, %v1005_v57, %v1006_v41  ;;  %980 = vst [vmem:[#allocation1 + $0x22] ss:$4 sm:$0xff] %v887_v27  ;;  %v9940_v57 = vshrl.u32 %v6751_v47, 16  ;;  %v997_v27 = vsel %vm568_vm0, %v994_v48, %v996_v60 }
 0x1e5   : > { %v1079_v16 = vpack.i.b16 %v9943_v6, %v9944_v5  ;;  %v6729_v17 = vperm.slane %v1076_v10, %v6696_v55  ;;  %v6765_v56 = vpack.c.bf16 %v1007_v54, %v1007_v54  ;;  %981 = vst [vmem:[#allocation1 + $0x23] ss:$4 sm:$0xff] %v6737_v30 }
 0x1e7   : > { %v1152_v25 = vperm.slane %v1079_v16, %v6696_v55  ;;  %v1130_v8 = vsel %vm1127_vm1, %v6729_v17, %v1129_v18  ;;  %v9941_v4 = vshrl.u32 %v6765_v56, 16  ;;  %v1088_v19 = vpack.i.b16 %v6765_v56, %v6751_v47 }
 0x1e8   : > { %v6741_v35 = vperm.slane %v1130_v8, %v6721_v14  ;;  %v6744_v38 = vld.sshfl [vmem:[#allocation1] sm:$0xff pattern:$0x73625140]  ;;  %v1002_v16 = vsel %vm568_vm0, %v999_v15, %v1001_v58  ;;  %v9939_v18 = vshrl.u32 %v6626_v2, 16  ;;  %v1181_v8 = vrot.slane %v6771_v1, 4 }
 0x1e9   : > { %v1156_v36 = vsel %vm1127_vm1, %v1152_v25, %v1155_v26  ;;  %v1008_v32 = vrot.slane %v6744_v38, 7  ;;  %v1153_v62 = vrot.slane %v1152_v25, 4  ;;  %v1091_v13 = vpack.i.b16 %v9941_v4, %v9940_v57 }
 0x1ea   : > { %10021 = vst [vmem:[#allocation11_spill] sm:$0xff] %v6741_v35  ;;  %v6747_v39 = vperm.slane %v1156_v36, %v6721_v14  ;;  %v1141_v49 = vrot.slane %v6741_v35, 4  ;;  %v6792_v26 = vperm.slane %v1088_v19, %v6696_v55  ;;  %v1126_v37 = vrot.slane %v6729_v17, 4 }
 0x1eb   : > { %v1009_v12 = vsel %vm568_vm0, %v1006_v41, %v1008_v32  ;;  %v1154_v25 = vsel %vm1127_vm1, %v1153_v62, %v1147_v3  ;;  %v1204_v15 = vperm.slane %v1091_v13, %v6696_v55  ;;  %v6806_v41 = vpack.c.bf16 %v1002_v16, %v1002_v16 }
 0x1ec   : > { %v1341_v53 = vunpack.c.l.b16 %v6747_v39  ;;  %v1142_v10 = vsel %vm1127_vm1, 0, %v1141_v49  ;;  %v6801_v36 = vpack.c.bf16 %v1009_v12, %v1009_v12  ;;  %v1182_v3 = vsel %vm1127_vm1, %v6792_v26, %v1181_v8 }
 0x1ed   : > { %v1346_v24 = vunpack.c.l.b16 %v1142_v10  ;;  %v1208_v31 = vsel %vm1127_vm1, %v1204_v15, %v1207_v34  ;;  %v1205_v49 = vrot.slane %v1204_v15, 4  ;;  %v6811_v46 = vperm.slane %v1154_v25, %v6721_v14 }
 0x1ee   : > { %v1342_v61 = vpack.c.b16 %v1341_v53, %v1341_v53  ;;  %v6814_v48 = vperm.slane %v1182_v3, %v6721_v14  ;;  %v6816_v53 = vld.sshfl [vmem:[#allocation1 + $0x20] sm:$0xff pattern:$0x73625140]  ;;  %v1216_v17 = vperm.slane %v1208_v31, %v6721_v14  ;;  %v9938_v19 = vshrl.u32 %v6801_v36, 16 }
 0x1ef   : > { %v1347_v54 = vpack.c.b16 %v1346_v24, %v1346_v24  ;;  %v1206_v62 = vsel %vm1127_vm1, %v1205_v49, %v1199_v52  ;;  %v6826_v12 = vpack.c.bf16 %v997_v27, %v997_v27  ;;  %v1128_v24 = vsel %vm1127_vm1, %v1126_v37, %v6710_v0 }
 0x1f0   : > { %1343 = vrot.lane.b32.xlu2 %v1342_v61, %s6402_s23  ;;  %10022 = vst [vmem:[#allocation12_spill] sm:$0xff] %v6814_v48  ;;  %v1097_v61 = vpack.i.b16 %v9936_v20, %v9939_v18  ;;  %v1193_v10 = vrot.slane %v6814_v48, 4  ;;  %v1371_v13 = vunpack.c.l.b16 %v1216_v17  ;;  %v1219_v16 = vrot.slane %v1216_v17, 4 }
 0x1f1   : > { %v1010_v25 = vrot.slane %v6816_v53, 7  ;;  %v1165_v8 = vrot.slane %v6811_v46, 4  ;;  %v9937_v15 = vshrl.u32 %v6806_v41, 16  ;;  %v1004_v27 = vsel %vm568_vm0, %v1001_v58, %v1003_v44 }
 0x1f2   : > { %v1194_v52 = vsel %vm1127_vm1, 0, %v1193_v10  ;;  %v1372_v34 = vpack.c.b16 %v1371_v13, %v1371_v13  ;;  %v1220_v3 = vsel %vm1127_vm1, 0, %v1219_v16  ;;  %v1212_v31 = vperm.slane %v1206_v62, %v6721_v14 }
 0x1f3   : > { %v1376_v49 = vunpack.c.l.b16 %v1194_v52  ;;  %v1381_v17 = vunpack.c.l.b16 %v1220_v3  ;;  %v6841_v0 = vperm.slane %v1128_v24, %v6721_v14  ;;  %v1103_v37 = vpack.i.b16 %v9938_v19, %v9937_v15 }
 0x1f4   : > { %1373 = vrot.lane.b32.xlu0 %v1372_v34, %s6402_s23  ;;  %v1011_v58 = vsel %vm568_vm0, %v1008_v32, %v1010_v25  ;;  %v6854_v62 = vperm.slane %v1097_v61, %v6696_v55  ;;  %v6856_v10 = vpack.c.bf16 %v1004_v27, %v1004_v27  ;;  %v1108_v13 = vshrl.u32 %v6826_v12, 16 }
 0x1f5   : > { %10023 = vst [vmem:[#allocation13_spill] sm:$0xff] %v6841_v0  ;;  %v1356_v16 = vunpack.c.l.b16 %v1212_v31  ;;  %v1166_v24 = vsel %vm1127_vm1, 0, %v1165_v8  ;;  %v1377_v52 = vpack.c.b16 %v1376_v49, %v1376_v49  ;;  %v6860_v3 = vpack.c.bf16 %v1011_v58, %v1011_v58 }
 0x1f6   : > { %v1139_v38 = vrot.slane %v6841_v0, 4  ;;  %v6865_v32 = vperm.slane %v1103_v37, %v6696_v55  ;;  %v1107_v61 = vshrl.u32 %v6634_v11, 16  ;;  %v1179_v34 = vrot.slane %v6792_v26, 4 }
 0x1f7   : > { %v1114_v27 = vshrl.u32 %v6860_v3, 16  ;;  %v1094_v8 = vpack.i.b16 %v6763_v40, %v6626_v2  ;;  %v1336_v49 = vunpack.c.l.b16 %v1166_v24  ;;  %v1113_v58 = vshrl.u32 %v6856_v10, 16 }
 0x1f8   : > { %1348 = vrot.lane.b32.xlu2 %v1347_v54, %s6403_s17  ;;  %v1382_v54 = vpack.c.b16 %v1381_v17, %v1381_v17  ;;  %v1259_v17 = vrot.slane %v6854_v62, 4  ;;  %v1109_v37 = vpack.i.b16 %v1108_v13, %v1107_v61  ;;  %v1217_v20 = vrot.slane %v1212_v31, 4 }
 0x1f9   : > { %v1140_v15 = vsel %vm1127_vm1, 0, %v1139_v38  ;;  %v1167_v24 = vrot.slane %v6747_v39, 4  ;;  %v1115_v19 = vpack.i.b16 %v1114_v27, %v1113_v58  ;;  %v1337_v31 = vpack.c.b16 %v1336_v49, %v1336_v49 }
 0x1fa   : > { %1383 = vrot.lane.b32.xlu1 %v1382_v54, %s6404_s21  ;;  %v1357_v54 = vpack.c.b16 %v1356_v16, %v1356_v16  ;;  %v1260_v26 = vsel %vm1127_vm1, %v6865_v32, %v1259_v17  ;;  %v1180_v16 = vsel %vm1127_vm1, %v1179_v34, %v6771_v1  ;;  %v1303_v38 = vperm.slane %v1109_v37, %v6696_v55 }
 0x1fb   : > { %v6895_v17 = vperm.slane %v1094_v8, %v6696_v55  ;;  %v1331_v39 = vunpack.c.l.b16 %v1140_v15  ;;  %v1218_v18 = vsel %vm1127_vm1, 0, %v1217_v20  ;;  %v1268_v4 = vperm.slane %v1260_v26, %v6721_v14 }
 0x1fc   : > { %1358 = vrot.lane.b32.xlu0 %v1357_v54, %s6402_s23  ;;  %v1168_v54 = vsel %vm1127_vm1, 0, %v1167_v24  ;;  %v1308_v1 = vperm.slane %v1115_v19, %v6696_v55  ;;  %v6903_v34 = vperm.slane %v1180_v16, %v6721_v14  ;;  %v1366_v49 = vunpack.c.l.b16 %v1218_v18 }
 0x1fd   : > { %v1311_v15 = vrot.slane %v1303_v38, 4  ;;  %v1106_v20 = vpack.i.b16 %v6826_v12, %v6634_v11  ;;  %v1332_v37 = vpack.c.b16 %v1331_v39, %v1331_v39  ;;  %v1351_v26 = vunpack.c.l.b16 %v1168_v54 }
 0x1fe   : > { %10024 = vst [vmem:[#allocation14_spill] sm:$0xff] %v6903_v34  ;;  %v1191_v19 = vrot.slane %v6903_v34, 4  ;;  %v1112_v18 = vpack.i.b16 %v6860_v3, %v6856_v10  ;;  %v1367_v16 = vpack.c.b16 %v1366_v49, %v1366_v49  ;;  %v1401_v22 = vunpack.c.l.b16 %v1268_v4 }
 0x1ff   : > { %v1312_v24 = vsel %vm1127_vm1, %v1308_v1, %v1311_v15  ;;  %v1352_v54 = vpack.c.b16 %v1351_v26, %v1351_v26  ;;  %v2618_v50 = vrot.slane %v1113_v58, 4 }
 0x200   : > { %1378 = vrot.lane.b32.xlu2 %v1377_v52, %s6403_s17  ;;  %v1326_v52 = vunpack.c.l.b16 %v6811_v46  ;;  %v1100_v46 = vpack.i.b16 %v6801_v36, %v6806_v41  ;;  %v1320_v6 = vperm.slane %v1312_v24, %v6721_v14  ;;  %v1192_v15 = vsel %vm1127_vm1, 0, %v1191_v19 }
 0x201   : > { %v1282_v49 = vperm.slane %v1112_v18, %v6696_v55 }
 0x202   : > { %v1327_v57 = vpack.c.b16 %v1326_v52, %v1326_v52  ;;  %1338 = vrot.lane.b32.xlu1 %v1337_v31, %s6404_s21  ;;  %v1230_v8 = vperm.slane %v1100_v46, %v6696_v55  ;;  %v1271_v52 = vrot.slane %v1268_v4, 4  ;;  %v1233_v31 = vrot.slane %v6895_v17, 4 }
 0x203   : > { %v1277_v46 = vperm.slane %v1106_v20, %v6696_v55  ;;  %v1402_v4 = vpack.c.b16 %v1401_v22, %v1401_v22  ;;  %v1323_v5 = vrot.slane %v1320_v6, 4  ;;  %v1309_v22 = vrot.slane %v1308_v1, 4 }
 0x204   : > { %1333 = vrot.lane.b32.xlu0 %v1332_v37, %s6403_s17  ;;  %v1272_v39 = vsel %vm1127_vm1, 0, %v1271_v52  ;;  %v1257_v37 = vrot.slane %v6865_v32, 4  ;;  %v1361_v52 = vunpack.c.l.b16 %v1192_v15  ;;  %v1231_v15 = vrot.slane %v1230_v8, 4 }
 0x205   : > { %v1411_v20 = vunpack.c.l.b16 %v1272_v39  ;;  %v1285_v26 = vrot.slane %v1277_v46, 4 }
 0x206   : > { %v1258_v24 = vsel %vm1127_vm1, %v1257_v37, %v6854_v62  ;;  %v1362_v23 = vpack.c.b16 %v1361_v52, %v1361_v52  ;;  %v1232_v1 = vsel %vm1127_vm1, %v1231_v15, %v6895_v17 }
 0x207   : > { %v1286_v32 = vsel %vm1127_vm1, %v1282_v49, %v1285_v26  ;;  %v1412_v19 = vpack.c.b16 %v1411_v20, %v1411_v20  ;;  %v1264_v18 = vperm.slane %v1258_v24, %v6721_v14 }
 0x208   : > { %1328 = vrot.lane.b32.xlu2 %v1327_v57, %s6402_s23  ;;  %v1234_v57 = vsel %vm1127_vm1, %v1230_v8, %v1233_v31  ;;  %v6937_v62 = vperm.slane %v1286_v32, %v6721_v14 }
 0x209   : > { %v6923_v31 = vperm.slane %v1234_v57, %v6721_v14  ;;  %v1431_v57 = vunpack.c.l.b16 %v1320_v6  ;;  %v1269_v20 = vrot.slane %v1264_v18, 4  ;;  %v1386_v24 = vunpack.c.l.b16 %v1264_v18 }
 0x20a   : > { %1368 = vrot.lane.b32.xlu1 %v1367_v16, %s6404_s21  ;;  %10026 = vst [vmem:[#allocation16_spill] sm:$0xff] %v6937_v62  ;;  %v1297_v52 = vrot.slane %v6937_v62, 4 }
 0x20b   : > { %10025 = vst [vmem:[#allocation15_spill] sm:$0xff] %v6923_v31  ;;  %v1245_v16 = vrot.slane %v6923_v31, 4 }
 0x20c   : > { %1403 = vrot.lane.b32.xlu0 %v1402_v4, %s6402_s23  ;;  %v1432_v4 = vpack.c.b16 %v1431_v57, %v1431_v57  ;;  %v1298_v32 = vsel %vm1127_vm1, 0, %v1297_v52  ;;  %v2541_v57 = vshll.u32 %v6634_v11, 16  ;;  %v1035_v52 = vperm.slane %v6737_v30, 0 }
 0x20d   : > { %v1246_v39 = vsel %vm1127_vm1, 0, %v1245_v16  ;;  %v1270_v16 = vsel %vm1127_vm1, 0, %v1269_v20  ;;  %v2546_v20 = vrot.slane %v1107_v61, 4 }
 0x20e   : > { %v1406_v6 = vunpack.c.l.b16 %v1246_v39  ;;  %v1396_v17 = vunpack.c.l.b16 %v1270_v16  ;;  %v2613_v16 = vshll.u32 %v6856_v10, 16 }
 0x210   : > { %1353 = vrot.lane.b32.xlu2 %v1352_v54, %s6404_s21  ;;  %v1324_v54 = vsel %vm1127_vm1, 0, %v1323_v5  ;;  %v1310_v5 = vsel %vm1127_vm1, %v1309_v22, %v1303_v38  ;;  %v1407_v8 = vpack.c.b16 %v1406_v6, %v1406_v6  ;;  %v6950_v38 = vperm.slane %v1232_v1, %v6721_v14 }
 0x211   : > { %v1441_v37 = vunpack.c.l.b16 %v1324_v54  ;;  %v1387_v54 = vpack.c.b16 %v1386_v24, %v1386_v24  ;;  %v1436_v22 = vunpack.c.l.b16 %v1298_v32  ;;  %v2577_v1 = vshll.u32 %v6826_v12, 16 }
 0x212   : > { %1413 = vrot.lane.b32.xlu1 %v1412_v19, %s6404_s21  ;;  %10027 = vst [vmem:[#allocation17_spill] sm:$0xff] %v6950_v38  ;;  %v1283_v19 = vrot.slane %v1282_v49, 4  ;;  %v1243_v39 = vrot.slane %v6950_v38, 4  ;;  %v1033_v24 = vperm.slane %v6639_v28, 0  ;;  %v2582_v28 = vrot.slane %v1108_v13, 4 }
 0x213   : > { %v1442_v26 = vpack.c.b16 %v1441_v37, %v1441_v37  ;;  %v6957_v37 = vrot.slane %v2541_v57, 5  ;;  %v6980_v57 = vrot.slane %v2577_v1, 5  ;;  %v2649_v1 = vshll.u32 %v6860_v3, 16 }
 0x214   : > { %1433 = vrot.lane.b32.xlu0 %v1432_v4, %s6402_s23  ;;  %v1284_v15 = vsel %vm1127_vm1, %v1283_v19, %v1277_v46  ;;  %v1397_v4 = vpack.c.b16 %v1396_v17, %v1396_v17  ;;  %v1045_v19 = vsel %vm568_vm0, %v996_v60, %v1033_v24 }
 0x215   : > { %v6967_v46 = vperm.slane %v1284_v15, %v6721_v14  ;;  %v2547_v30 = vor.u32 %v2546_v20, %v6957_v37 }
 0x217   : > { %10028 = vst [vmem:[#allocation18_spill] sm:$0xff] %v6967_v46  ;;  %v1295_v17 = vrot.slane %v6967_v46, 4  ;;  %v2548_v13 = vrot.slane %v2547_v30, 4 }
 0x218   : > { %1363 = vrot.lane.b32.xlu2 %v1362_v23, %s6403_s17  ;;  %v1316_v23 = vperm.slane %v1310_v5, %v6721_v14  ;;  %v1437_v5 = vpack.c.b16 %v1436_v22, %v1436_v22  ;;  %v1057_v22 = vpack.c.bf16 %v1045_v19, %v1045_v19 }
 0x21a   : > { %1443 = vrot.lane.b32.xlu1 %v1442_v26, %s6404_s21  ;;  %v1321_v18 = vrot.slane %v1316_v23, 4  ;;  %v1416_v6 = vunpack.c.l.b16 %v1316_v23  ;;  %v1244_v26 = vsel %vm1127_vm1, 0, %v1243_v39  ;;  %v6974_v23 = vpack.c.bf16 %v6632_v9, %v6632_v9 }
 0x21b   : > { %v1391_v32 = vunpack.c.l.b16 %v1244_v26  ;;  %v1047_v9 = vsel %vm568_vm0, %v1010_v25, %v1035_v52  ;;  %v2583_v25 = vor.u32 %v2582_v28, %v6980_v57  ;;  %v7029_v28 = vpop.permute.xlu2 %1522 }
 0x21c   : > { %1388 = vrot.lane.b32.xlu0 %v1387_v54, %s6402_s23  ;;  %v1322_v49 = vsel %vm1127_vm1, 0, %v1321_v18  ;;  %v1034_v54 = vperm.slane %v6675_v7, 0  ;;  %v6989_v18 = vrot.slane %v2613_v16, 5  ;;  %v2550_v39 = vshll.u32 %v6974_v23, 16 }
 0x21d   : > { %v1426_v61 = vunpack.c.l.b16 %v1322_v49  ;;  %v1392_v15 = vpack.c.b16 %v1391_v32, %v1391_v32  ;;  %v1296_v7 = vsel %vm1127_vm1, 0, %v1295_v17  ;;  %v2654_v32 = vrot.slane %v1114_v27, 4 }
 0x21e   : > { %v1046_v53 = vsel %vm568_vm0, %v1003_v44, %v1034_v54  ;;  %v2619_v58 = vor.u32 %v2618_v50, %v6989_v18  ;;  %v2552_v20 = vrot.slane %v2550_v39, 5  ;;  %v1421_v49 = vunpack.c.l.b16 %v1296_v7 }
 0x21f   : > { %v1427_v60 = vpack.c.b16 %v1426_v61, %v1426_v61  ;;  %v2584_v44 = vrot.slane %v2583_v25, 4  ;;  %v4351_v54 = vrot.slane %v6634_v11, 5  ;;  %v1067_v50 = vpack.c.bf16 %v1047_v9, %v1047_v9 }
 0x220   : > { %1408 = vrot.lane.b32.xlu2 %v1407_v8, %s6403_s17  ;;  %v1417_v8 = vpack.c.b16 %v1416_v6, %v1416_v6  ;;  %v2586_v6 = vshll.u32 %v1057_v22, 16  ;;  %v2620_v52 = vrot.slane %v2619_v58, 4  ;;  %v1422_v16 = vpack.c.b16 %v1421_v49, %v1421_v49 }
 0x221   : > { %v2658_v39 = vshll.u32 %v1067_v50, 16  ;;  %v4367_v7 = vrot.slane %v1057_v22, 5  ;;  %v4377_v22 = vrot.slane %v6856_v10, 5 }
 0x222   : > { %1398 = vrot.lane.b32.xlu1 %v1397_v4, %s6404_s21  ;;  %v1062_v4 = vpack.c.bf16 %v1046_v53, %v1046_v53  ;;  %v2588_v26 = vrot.slane %v2586_v6, 5  ;;  %v4354_v53 = vrot.slane %v6974_v23, 5 }
 0x223   : > { %v2660_v58 = vrot.slane %v2658_v39, 5 }
 0x224   : > { %1418 = vrot.lane.b32.xlu0 %v1417_v8, %s6402_s23  ;;  %v2622_v24 = vshll.u32 %v1062_v4, 16  ;;  %v7018_v61 = vsel %vm7003_vm4, %v2584_v44, %v2588_v26  ;;  %v7021_v8 = vrot.slane %v2649_v1, 5  ;;  %v4379_v44 = vrot.slane %v4377_v22, 4 }
 0x225   : > { %v9949_v26 = vrot.slane %v6806_v41, 5 }
 0x226   : > { %v2624_v30 = vrot.slane %v2622_v24, 5  ;;  %v2655_v17 = vor.u32 %v2654_v32, %v7021_v8  ;;  %v4390_v32 = vrot.slane %v6860_v3, 5 }
 0x228   : > { %1438 = vrot.lane.b32.xlu2 %v1437_v5, %s6403_s17  ;;  %v7009_v5 = vsel %vm7003_vm4, %v2548_v13, %v2552_v20  ;;  %v7027_v19 = vsel %vm7003_vm4, %v2620_v52, %v2624_v30  ;;  %v2656_v27 = vrot.slane %v2655_v17, 4  ;;  %v4353_v13 = vrot.slane %v4351_v54, 4 }
 0x229   : > { %v4380_v52 = vrot.slane %v1062_v4, 5  ;;  %v9946_v30 = vrot.slane %v6763_v40, 5  ;;  %v9948_v4 = vrot.slane %v6801_v36, 5  ;;  %v4376_v17 = vrot.slane %v9949_v26, 4 }
 0x22a   : > { %1428 = vrot.lane.b32.xlu1 %v1427_v60, %s6404_s21  ;;  %v4364_v60 = vrot.slane %v6826_v12, 5  ;;  %v7051_v9 = vsel %vm7043_vm7, %v4353_v13, %v4354_v53  ;;  %v7059_v23 = vsel %vm7003_vm4, %v2656_v27, %v2660_v58  ;;  %v4392_v13 = vrot.slane %v4390_v32, 4 }
 0x22b   : > { %10033 = vst [vmem:[#allocation19_spill] sm:$0xff] %v7051_v9  ;;  %v7072_v1 = vsel %vm7043_vm7, %v4379_v44, %v4380_v52  ;;  %v4363_v39 = vrot.slane %v9946_v30, 4  ;;  %v4393_v53 = vrot.slane %v1067_v50, 5 }
 0x22c   : > { %1532 = vrot.lane.b32.xlu0 %v6763_v40, %s6399_s18  ;;  %v4366_v25 = vrot.slane %v4364_v60, 4  ;;  %10036 = vst [vmem:[#allocation22_spill] sm:$0xff] %v7072_v1 }
 0x22d   : > { %v7109_v44 = vsel %vm7043_vm7, %v4392_v13, %v4393_v53 }
 0x22e   : > { %v7055_v6 = vsel %vm7043_vm7, %v4366_v25, %v4367_v7  ;;  %v7097_v25 = vsel %vm7043_vm7, %v4376_v17, %v4377_v22  ;;  %v4389_v7 = vrot.slane %v9948_v4, 4  ;;  %10040 = vst [vmem:[#allocation26_spill] sm:$0xff] %v7109_v44  ;;  %v7117_v22 = vsel %vm7043_vm7, %v4363_v39, %v4364_v60  ;;  %v1521_v17 = vpop.permute.xlu0 %1520 }
 0x22f   : > { %10034 = vst [vmem:[#allocation20_spill] sm:$0xff] %v7055_v6 }
 0x230   : > { %1393 = vrot.lane.b32.xlu2 %v1392_v15, %s6403_s17  ;;  %v7040_v15 = vpop.permute.xlu2 %1528  ;;  %10038 = vst [vmem:[#allocation24_spill] sm:$0xff] %v7097_v25  ;;  %v7113_v50 = vsel %vm7043_vm7, %v4389_v7, %v4390_v32  ;;  %v10105_v25 = vshrl.u32 %v6707_v63, 16 }
 0x231   : > { %10041 = vst [vmem:[#allocation27_spill] sm:$0xff] %v7113_v50 }
 0x232   : > { %1536 = vrot.lane.b32.xlu1 %v6704_v59, %s6399_s18  ;;  %10042 = vst [vmem:[#allocation28_spill] sm:$0xff] %v7117_v22 }
 0x234   : > { %1538 = vrot.lane.b32.xlu0 %v6751_v47, %s6399_s18 }
 0x236   : > { %v7133_v60 = vpop.permute.xlu0 %1526 }
 0x238   : > { %1423 = vrot.lane.b32.xlu2 %v1422_v16, %s6403_s17  ;;  %v9947_v16 = vrot.slane %v6626_v2, 5 }
 0x23a   : > { %1542 = vrot.lane.b32.xlu1 %v6856_v10, %s6399_s18  ;;  %v4350_v27 = vrot.slane %v9947_v16, 4 }
 0x23c   : > { %1544 = vrot.lane.b32.xlu0 %v6707_v63, %s6399_s18  ;;  %v7105_v58 = vsel %vm7043_vm7, %v4350_v27, %v4351_v54  ;;  %v7123_v54 = vpop.permute.xlu1 %1524 }
 0x23d   : > { %10039 = vst [vmem:[#allocation25_spill] sm:$0xff] %v7105_v58 }
 0x240   : > { %1534 = vrot.lane.b32.xlu2 %v6826_v12, %s6399_s18 }
 0x242   : > { %1548 = vrot.lane.b32.xlu1 %v6801_v36, %s6399_s18 }
 0x244   : > { %1550 = vrot.lane.b32.xlu0 %v6860_v3, %s6399_s18  ;;  %v1531_v27 = vpop.permute.xlu1 %1530 }
 0x248   : > { %1540 = vrot.lane.b32.xlu2 %v6806_v41, %s6399_s18 }
 0x24a   : > { %v7066_v49 = vpop.permute.xlu2 %1343  ;;  %1986 = vrot.lane.b32.xlu1 %v6617_v51, %s6405_s22 }
 0x24b   : > { %10035 = vst [vmem:[#allocation21_spill] sm:$0xff] %v7066_v49 }
 0x24c   : > { %1988 = vrot.lane.b32.xlu0 %v6626_v2, %s6405_s22 }
 0x250   : > { %1546 = vrot.lane.b32.xlu2 %v6765_v56, %s6399_s18 }
 0x252   : > { %v7079_v24 = vpop.permute.xlu2 %1348  ;;  %1992 = vrot.lane.b32.xlu1 %v6641_v29, %s6405_s22 }
 0x253   : > { %10037 = vst [vmem:[#allocation23_spill] sm:$0xff] %v7079_v24 }
 0x254   : > { %1994 = vrot.lane.b32.xlu0 %v6649_v33, %s6405_s22 }
 0x258   : > { %1984 = vrot.lane.b32.xlu2 %v6610_v45, %s6405_s22 }
 0x25a   : > { %v7119_v52 = vpop.permute.xlu2 %1378  ;;  %1998 = vrot.lane.b32.xlu1 %v6826_v12, %s6405_s22 }
 0x25b   : > { %10043 = vst [vmem:[#allocation29_spill] sm:$0xff] %v7119_v52 }
 0x25c   : > { %2000 = vrot.lane.b32.xlu0 %v6704_v59, %s6405_s22 }
 0x260   : > { %1990 = vrot.lane.b32.xlu2 %v6634_v11, %s6405_s22 }
 0x262   : > { %v7129_v32 = vpop.permute.xlu2 %1328 }
 0x263   : > { %10044 = vst [vmem:[#allocation30_spill] sm:$0xff] %v7129_v32 }
 0x266   : > { %v7139_v13 = vpop.permute.xlu0 %1373 }
 0x267   : > { %10046 = vst [vmem:[#allocation32_spill] sm:$0xff] %v7139_v13 }
 0x268   : > { %1996 = vrot.lane.b32.xlu2 %v6763_v40, %s6405_s22 }
 0x26a   : > { %v7137_v39 = vpop.permute.xlu2 %1353 }
 0x26b   : > { %10045 = vst [vmem:[#allocation31_spill] sm:$0xff] %v7137_v39 }
 0x26c   : > { %v7141_v53 = vpop.permute.xlu1 %1383 }
 0x26d   : > { %10047 = vst [vmem:[#allocation33_spill] sm:$0xff] %v7141_v53 }
 0x26e   : > { %v7145_v11 = vpop.permute.xlu0 %1358 }
 0x26f   : > { %10049 = vst [vmem:[#allocation35_spill] sm:$0xff] %v7145_v11  ;;  %v1556_v11 = vshrl.u32 %v7040_v15, 16 }
 0x272   : > { %v7143_v12 = vpop.permute.xlu2 %1363 }
 0x273   : > { %10048 = vst [vmem:[#allocation34_spill] sm:$0xff] %v7143_v12  ;;  %v1555_v12 = vshrl.u32 %v1521_v17, 16 }
 0x274   : > { %v7147_v7 = vpop.permute.xlu1 %1338 }
 0x275   : > { %10050 = vst [vmem:[#allocation36_spill] sm:$0xff] %v7147_v7 }
 0x276   : > { %v7151_v16 = vpop.permute.xlu0 %1333 }
 0x277   : > { %10052 = vst [vmem:[#allocation38_spill] sm:$0xff] %v7151_v16 }
 0x27a   : > { %v7149_v30 = vpop.permute.xlu2 %1408 }
 0x27b   : > { %10051 = vst [vmem:[#allocation37_spill] sm:$0xff] %v7149_v30 }
 0x27c   : > { %v7153_v4 = vpop.permute.xlu1 %1368 }
 0x27d   : > { %10053 = vst [vmem:[#allocation39_spill] sm:$0xff] %v7153_v4 }
 0x27e   : > { %v7157_v21 = vpop.permute.xlu0 %1403 }
 0x27f   : > { %10055 = vst [vmem:[#allocation41_spill] sm:$0xff] %v7157_v21 }
 0x282   : > { %v7155_v26 = vpop.permute.xlu2 %1438 }
 0x283   : > { %10054 = vst [vmem:[#allocation40_spill] sm:$0xff] %v7155_v26 }
 0x284   : > { %v7159_v43 = vpop.permute.xlu1 %1413 }
 0x285   : > { %10056 = vst [vmem:[#allocation42_spill] sm:$0xff] %v7159_v43 }
 0x286   : > { %v7163_v38 = vpop.permute.xlu0 %1433 }
 0x287   : > { %10058 = vst [vmem:[#allocation44_spill] sm:$0xff] %v7163_v38  ;;  %v1568_v38 = vshrl.u32 %v1531_v27, 16 }
 0x28a   : > { %v7161_v46 = vpop.permute.xlu2 %1393 }
 0x28b   : > { %10057 = vst [vmem:[#allocation43_spill] sm:$0xff] %v7161_v46 }
 0x28c   : > { %v7165_v62 = vpop.permute.xlu1 %1443 }
 0x28d   : > { %10059 = vst [vmem:[#allocation45_spill] sm:$0xff] %v7165_v62  ;;  %v1566_v62 = vpack.i.b16 %v1531_v27, %v7029_v28 }
 0x28e   : > { %v7169_v7 = vpop.permute.xlu0 %1388 }
 0x28f   : > { %10061 = vst [vmem:[#allocation47_spill] sm:$0xff] %v7169_v7  ;;  %v1567_v7 = vshrl.u32 %v7029_v28, 16  ;;  %v7188_v0 = vperm.slane %v1566_v62, %v6696_v55 }
 0x291   : > { %v1569_v53 = vpack.i.b16 %v1568_v38, %v1567_v7 }
 0x292   : > { %v7167_v31 = vpop.permute.xlu2 %1423 }
 0x293   : > { %10060 = vst [vmem:[#allocation46_spill] sm:$0xff] %v7167_v31  ;;  %v7192_v27 = vperm.slane %v1569_v53, %v6696_v55 }
 0x294   : > { %v7173_v16 = vpop.permute.xlu1 %1398 }
 0x295   : > { %10062 = vst [vmem:[#allocation48_spill] sm:$0xff] %v7173_v16  ;;  %v1554_v16 = vpack.i.b16 %v7040_v15, %v1521_v17  ;;  %v1664_v15 = vrot.slane %v7188_v0, 4 }
 0x296   : > { %v7175_v4 = vpop.permute.xlu0 %1418 }
 0x297   : > { %10063 = vst [vmem:[#allocation49_spill] sm:$0xff] %v7175_v4  ;;  %v1604_v22 = vperm.slane %v1554_v16, %v6696_v55 }
 0x29a   : > { %v7171_v30 = vpop.permute.xlu2 %1534 }
 0x29c   : > { %v7179_v21 = vpop.permute.xlu1 %1428 }
 0x29d   : > { %10064 = vst [vmem:[#allocation50_spill] sm:$0xff] %v7179_v21  ;;  %v1557_v21 = vpack.i.b16 %v1556_v11, %v1555_v12  ;;  %v1612_v12 = vrot.slane %v1604_v22, 4 }
 0x29e   : > { %v7181_v43 = vpop.permute.xlu0 %1532 }
 0x29f   : > { %v1630_v24 = vperm.slane %v1557_v21, %v6696_v55 }
 0x2a1   : > { %v1638_v21 = vrot.slane %v1630_v24, 4 }
 0x2a2   : > { %v7177_v26 = vpop.permute.xlu2 %1540 }
 0x2a4   : > { %v1537_v4 = vpop.permute.xlu1 %1536 }
 0x2a5   : > { %v1561_v38 = vshrl.u32 %v1537_v4, 16 }
 0x2a6   : > { %v1539_v31 = vpop.permute.xlu0 %1538 }
 0x2a7   : > { %v1573_v39 = vshrl.u32 %v1539_v31, 16 }
 0x2aa   : > { %v1547_v46 = vpop.permute.xlu2 %1546 }
 0x2ab   : > { %v1574_v34 = vshrl.u32 %v1547_v46, 16  ;;  %v1572_v52 = vpack.i.b16 %v1547_v46, %v1539_v31 }
 0x2ad   : > { %v1575_v32 = vpack.i.b16 %v1574_v34, %v1573_v39  ;;  %v1661_v28 = vperm.slane %v1572_v52, %v6696_v55  ;;  %v1690_v34 = vrot.slane %v7192_v27, 4  ;;  %v7203_v52 = vpop.permute.xlu1 %1542 }
 0x2ae   : > { %v1545_v17 = vpop.permute.xlu0 %1544 }
 0x2af   : > { %v7198_v31 = vperm.slane %v1575_v32, %v6696_v55  ;;  %v1560_v46 = vpack.i.b16 %v1545_v17, %v1537_v4  ;;  %v1562_v62 = vshrl.u32 %v1545_v17, 16  ;;  %v1665_v53 = vsel %vm1127_vm1, %v1661_v28, %v1664_v15 }
 0x2b0   : > { %v7213_v17 = vperm.slane %v1665_v53, %v6721_v14 }
 0x2b1   : > { %v1563_v16 = vpack.i.b16 %v1562_v62, %v1561_v38  ;;  %v1609_v39 = vperm.slane %v1560_v46, %v6696_v55  ;;  %v1691_v32 = vsel %vm1127_vm1, %v7198_v31, %v1690_v34 }
 0x2b2   : > { %10066 = vst [vmem:[#allocation52_spill] sm:$0xff] %v7213_v17 }
 0x2b3   : > { %v1635_v11 = vperm.slane %v1563_v16, %v6696_v55  ;;  %v1613_v7 = vsel %vm1127_vm1, %v1609_v39, %v1612_v12  ;;  %v1610_v38 = vrot.slane %v1609_v39, 4  ;;  %v1699_v16 = vperm.slane %v1691_v32, %v6721_v14 }
 0x2b4   : > { %v7210_v4 = vperm.slane %v1613_v7, %v6721_v14  ;;  %v1676_v7 = vrot.slane %v7213_v17, 4  ;;  %v1580_v32 = vshrl.u32 %v7181_v43, 16 }
 0x2b5   : > { %v1639_v46 = vsel %vm1127_vm1, %v1635_v11, %v1638_v21  ;;  %v1636_v58 = vrot.slane %v1635_v11, 4  ;;  %v1611_v53 = vsel %vm1127_vm1, %v1610_v38, %v1604_v22  ;;  %v1702_v21 = vrot.slane %v1699_v16, 4  ;;  %v1549_v11 = vpop.permute.xlu1 %1548 }
 0x2b6   : > { %10065 = vst [vmem:[#allocation51_spill] sm:$0xff] %v7210_v4  ;;  %v1647_v15 = vperm.slane %v1639_v46, %v6721_v14  ;;  %v1624_v62 = vrot.slane %v7210_v4, 4  ;;  %v1579_v38 = vshrl.u32 %v7123_v54, 16 }
 0x2b7   : > { %v1637_v4 = vsel %vm1127_vm1, %v1636_v58, %v1630_v24  ;;  %v1578_v58 = vpack.i.b16 %v7181_v43, %v7123_v54 }
 0x2b8   : > { %v1824_v12 = vunpack.c.l.b16 %v1647_v15  ;;  %v1625_v35 = vsel %vm1127_vm1, 0, %v1624_v62  ;;  %v1650_v34 = vrot.slane %v1647_v15, 4  ;;  %v1677_v15 = vsel %vm1127_vm1, 0, %v1676_v7 }
 0x2b9   : > { %v1829_v49 = vunpack.c.l.b16 %v1625_v35  ;;  %v7228_v62 = vperm.slane %v1611_v53, %v6721_v14  ;;  %v1662_v35 = vrot.slane %v1661_v28, 4  ;;  %v1643_v24 = vperm.slane %v1637_v4, %v6721_v14 }
 0x2ba   : > { %v1825_v48 = vpack.c.b16 %v1824_v12, %v1824_v12  ;;  %v1651_v39 = vsel %vm1127_vm1, 0, %v1650_v34  ;;  %v1703_v12 = vsel %vm1127_vm1, 0, %v1702_v21  ;;  %v1586_v34 = vshrl.u32 %v1549_v11, 16 }
 0x2bb   : > { %v1830_v13 = vpack.c.b16 %v1829_v49, %v1829_v49  ;;  %v1834_v46 = vunpack.c.l.b16 %v1651_v39  ;;  %10067 = vst [vmem:[#allocation53_spill] sm:$0xff] %v7228_v62  ;;  %v1854_v49 = vunpack.c.l.b16 %v1699_v16  ;;  %v1859_v7 = vunpack.c.l.b16 %v1677_v15 }
 0x2bc   : > { %1826 = vrot.lane.b32.xlu2 %v1825_v48, %s6402_s23  ;;  %v1688_v48 = vrot.slane %v7198_v31, 4  ;;  %v1581_v28 = vpack.i.b16 %v1580_v32, %v1579_v38  ;;  %v1585_v53 = vshrl.u32 %v7177_v26, 16  ;;  %v1584_v16 = vpack.i.b16 %v1549_v11, %v7177_v26  ;;  %v1551_v26 = vpop.permute.xlu0 %1550 }
 0x2bd   : > { %1831 = vrot.lane.b32.xlu1 %v1830_v13, %s6403_s17  ;;  %v1835_v22 = vpack.c.b16 %v1834_v46, %v1834_v46  ;;  %v1622_v13 = vrot.slane %v7228_v62, 4  ;;  %v1864_v39 = vunpack.c.l.b16 %v1703_v12  ;;  %v1663_v4 = vsel %vm1127_vm1, %v1662_v35, %v7188_v0 }
 0x2be   : > { %v1855_v21 = vpack.c.b16 %v1854_v49, %v1854_v49  ;;  %v1648_v46 = vrot.slane %v1643_v24, 4  ;;  %v7244_v43 = vperm.slane %v1578_v58, %v6696_v55  ;;  %v1587_v54 = vpack.i.b16 %v1586_v34, %v1585_v53 }
 0x2bf   : > { %1836 = vrot.lane.b32.xlu0 %v1835_v22, %s6404_s21  ;;  %v1860_v31 = vpack.c.b16 %v1859_v7, %v1859_v7  ;;  %v1689_v32 = vsel %vm1127_vm1, %v1688_v48, %v7192_v27  ;;  %v1592_v15 = vshrl.u32 %v7171_v30, 16  ;;  %v7250_v22 = vperm.slane %v1581_v28, %v6696_v55 }
 0x2c0   : > { %v1623_v0 = vsel %vm1127_vm1, 0, %v1622_v13  ;;  %v7255_v11 = vperm.slane %v1663_v4, %v6721_v14  ;;  %v1591_v35 = vshrl.u32 %v7133_v60, 16  ;;  %v7259_v38 = vperm.slane %v1584_v16, %v6696_v55 }
 0x2c1   : > { %v1865_v27 = vpack.c.b16 %v1864_v39, %v1864_v39  ;;  %v1590_v49 = vpack.i.b16 %v7171_v30, %v7133_v60  ;;  %v1809_v12 = vunpack.c.l.b16 %v1643_v24  ;;  %v1649_v58 = vsel %vm1127_vm1, 0, %v1648_v46 }
 0x2c2   : > { %10068 = vst [vmem:[#allocation54_spill] sm:$0xff] %v7255_v11  ;;  %v1695_v48 = vperm.slane %v1689_v32, %v6721_v14  ;;  %v1716_v34 = vrot.slane %v7244_v43, 4  ;;  %v1739_v7 = vperm.slane %v1587_v54, %v6696_v55  ;;  %v1598_v28 = vshrl.u32 %v1551_v26, 16 }
 0x2c3   : > { %v1814_v13 = vunpack.c.l.b16 %v1623_v0  ;;  %v1593_v53 = vpack.i.b16 %v1592_v15, %v1591_v35  ;;  %v1742_v16 = vrot.slane %v7250_v22, 4  ;;  %v1674_v39 = vrot.slane %v7255_v11, 4 }
 0x2c4   : > { %1856 = vrot.lane.b32.xlu2 %v1855_v21, %s6402_s23  ;;  %v1597_v30 = vshrl.u32 %v7203_v52, 16  ;;  %v1596_v60 = vpack.i.b16 %v1551_v26, %v7203_v52  ;;  %v1819_v24 = vunpack.c.l.b16 %v1649_v58  ;;  %v1717_v4 = vsel %vm1127_vm1, %v7259_v38, %v1716_v34 }
 0x2c5   : > { %1861 = vrot.lane.b32.xlu1 %v1860_v31, %s6403_s17  ;;  %v1810_v21 = vpack.c.b16 %v1809_v12, %v1809_v12  ;;  %v1700_v46 = vrot.slane %v1695_v48, 4  ;;  %v1760_v54 = vperm.slane %v1590_v49, %v6696_v55  ;;  %v1815_v32 = vpack.c.b16 %v1814_v13, %v1814_v13 }
 0x2c6   : > { %v1599_v31 = vpack.i.b16 %v1598_v28, %v1597_v30  ;;  %v1743_v15 = vsel %vm1127_vm1, %v1739_v7, %v1742_v16  ;;  %v1675_v0 = vsel %vm1127_vm1, 0, %v1674_v39  ;;  %v7280_v35 = vperm.slane %v1717_v4, %v6721_v14 }
 0x2c7   : > { %1866 = vrot.lane.b32.xlu0 %v1865_v27, %s6404_s21  ;;  %v1786_v52 = vperm.slane %v1593_v53, %v6696_v55  ;;  %v1765_v26 = vperm.slane %v1596_v60, %v6696_v55  ;;  %v1820_v27 = vpack.c.b16 %v1819_v24, %v1819_v24  ;;  %v1839_v12 = vunpack.c.l.b16 %v1695_v48 }
 0x2c8   : > { %10069 = vst [vmem:[#allocation55_spill] sm:$0xff] %v7280_v35  ;;  %v1701_v49 = vsel %vm1127_vm1, 0, %v1700_v46  ;;  %v1751_v58 = vperm.slane %v1743_v15, %v6721_v14  ;;  %v1768_v34 = vrot.slane %v1760_v54, 4  ;;  %v1791_v28 = vperm.slane %v1599_v31, %v6696_v55 }
 0x2c9   : > { %v1844_v13 = vunpack.c.l.b16 %v1675_v0  ;;  %v1728_v16 = vrot.slane %v7280_v35, 4  ;;  %v1794_v39 = vrot.slane %v1786_v52, 4  ;;  %v1849_v53 = vunpack.c.l.b16 %v1701_v49 }
 0x2ca   : > { %v1769_v30 = vsel %vm1127_vm1, %v1765_v26, %v1768_v34  ;;  %v1840_v60 = vpack.c.b16 %v1839_v12, %v1839_v12  ;;  %v1754_v4 = vrot.slane %v1751_v58, 4  ;;  %v1714_v31 = vrot.slane %v7259_v38, 4 }
 0x2cb   : > { %v1845_v24 = vpack.c.b16 %v1844_v13, %v1844_v13  ;;  %v1795_v48 = vsel %vm1127_vm1, %v1791_v28, %v1794_v39  ;;  %v7295_v46 = vperm.slane %v1769_v30, %v6721_v14  ;;  %v1884_v15 = vunpack.c.l.b16 %v1751_v58 }
 0x2cc   : > { %1811 = vrot.lane.b32.xlu2 %v1810_v21, %s6402_s23  ;;  %v1729_v21 = vsel %vm1127_vm1, 0, %v1728_v16  ;;  %v1755_v0 = vsel %vm1127_vm1, 0, %v1754_v4  ;;  %v1740_v12 = vrot.slane %v1739_v7, 4  ;;  %v1715_v16 = vsel %vm1127_vm1, %v1714_v31, %v7244_v43 }
 0x2cd   : > { %1816 = vrot.lane.b32.xlu1 %v1815_v32, %s6403_s17  ;;  %10070 = vst [vmem:[#allocation56_spill] sm:$0xff] %v7295_v46  ;;  %v1850_v32 = vpack.c.b16 %v1849_v53, %v1849_v53  ;;  %v1889_v49 = vunpack.c.l.b16 %v1729_v21  ;;  %v1780_v34 = vrot.slane %v7295_v46, 4  ;;  %v1894_v13 = vunpack.c.l.b16 %v1755_v0 }
 0x2ce   : > { %v1885_v39 = vpack.c.b16 %v1884_v15, %v1884_v15  ;;  %v1741_v58 = vsel %vm1127_vm1, %v1740_v12, %v7250_v22  ;;  %v7310_v7 = vperm.slane %v1715_v16, %v6721_v14  ;;  %v1792_v21 = vrot.slane %v1791_v28, 4 }
 0x2cf   : > { %1821 = vrot.lane.b32.xlu0 %v1820_v27, %s6404_s21  ;;  %v1803_v27 = vperm.slane %v1795_v48, %v6721_v14  ;;  %v1890_v30 = vpack.c.b16 %v1889_v49, %v1889_v49  ;;  %v1781_v53 = vsel %vm1127_vm1, 0, %v1780_v34  ;;  %v1895_v4 = vpack.c.b16 %v1894_v13, %v1894_v13 }
 0x2d0   : > { %10071 = vst [vmem:[#allocation57_spill] sm:$0xff] %v7310_v7  ;;  %v1747_v48 = vperm.slane %v1741_v58, %v6721_v14  ;;  %v1919_v22 = vunpack.c.l.b16 %v1781_v53  ;;  %v1726_v31 = vrot.slane %v7310_v7, 4  ;;  %v1793_v49 = vsel %vm1127_vm1, %v1792_v21, %v1786_v52 }
 0x2d1   : > { %v1806_v38 = vrot.slane %v1803_v27, 4 }
 0x2d2   : > { %v1752_v12 = vrot.slane %v1747_v48, 4  ;;  %v1869_v13 = vunpack.c.l.b16 %v1747_v48 }
 0x2d3   : > { %v1807_v43 = vsel %vm1127_vm1, 0, %v1806_v38 }
 0x2d4   : > { %1841 = vrot.lane.b32.xlu2 %v1840_v60, %s6402_s23  ;;  %v1766_v60 = vrot.slane %v1765_v26, 4  ;;  %v1920_v26 = vpack.c.b16 %v1919_v22, %v1919_v22  ;;  %v1753_v16 = vsel %vm1127_vm1, 0, %v1752_v12 }
 0x2d5   : > { %1846 = vrot.lane.b32.xlu1 %v1845_v24, %s6403_s17  ;;  %v1914_v24 = vunpack.c.l.b16 %v1803_v27  ;;  %v1727_v27 = vsel %vm1127_vm1, 0, %v1726_v31  ;;  %v1879_v38 = vunpack.c.l.b16 %v1753_v16 }
 0x2d6   : > { %v1767_v15 = vsel %vm1127_vm1, %v1766_v60, %v1760_v54  ;;  %v1799_v54 = vperm.slane %v1793_v49, %v6721_v14  ;;  %v7357_v49 = vpop.permute.xlu0 %1988 }
 0x2d7   : > { %1851 = vrot.lane.b32.xlu0 %v1850_v32, %s6404_s21  ;;  %v1924_v32 = vunpack.c.l.b16 %v1807_v43  ;;  %v1915_v0 = vpack.c.b16 %v1914_v24, %v1914_v24  ;;  %v7322_v34 = vperm.slane %v1767_v15, %v6721_v14  ;;  %v1985_v15 = vpop.permute.xlu2 %1984 }
 0x2d8   : > { %v1804_v58 = vrot.slane %v1799_v54, 4  ;;  %v1899_v24 = vunpack.c.l.b16 %v1799_v54 }
 0x2d9   : > { %10072 = vst [vmem:[#allocation58_spill] sm:$0xff] %v7322_v34  ;;  %v1925_v28 = vpack.c.b16 %v1924_v32, %v1924_v32  ;;  %v1778_v52 = vrot.slane %v7322_v34, 4 }
 0x2da   : > { %v1805_v43 = vsel %vm1127_vm1, 0, %v1804_v58  ;;  %v1900_v22 = vpack.c.b16 %v1899_v24, %v1899_v24 }
 0x2db   : > { %v1779_v60 = vsel %vm1127_vm1, 0, %v1778_v52  ;;  %v1909_v21 = vunpack.c.l.b16 %v1805_v43 }
 0x2dc   : > { %1886 = vrot.lane.b32.xlu2 %v1885_v39, %s6402_s23  ;;  %v1874_v39 = vunpack.c.l.b16 %v1727_v27  ;;  %v1904_v48 = vunpack.c.l.b16 %v1779_v60 }
 0x2dd   : > { %1891 = vrot.lane.b32.xlu1 %v1890_v30, %s6403_s17  ;;  %v1870_v30 = vpack.c.b16 %v1869_v13, %v1869_v13  ;;  %v1910_v32 = vpack.c.b16 %v1909_v21, %v1909_v21 }
 0x2de   : > { %v1875_v53 = vpack.c.b16 %v1874_v39, %v1874_v39  ;;  %v1905_v31 = vpack.c.b16 %v1904_v48, %v1904_v48  ;;  %v7363_v13 = vpop.permute.xlu0 %1994 }
 0x2df   : > { %1896 = vrot.lane.b32.xlu0 %v1895_v4, %s6404_s21  ;;  %v1880_v4 = vpack.c.b16 %v1879_v38, %v1879_v38 }
 0x2e4   : > { %1916 = vrot.lane.b32.xlu2 %v1915_v0, %s6402_s23  ;;  %v7343_v0 = vpop.permute.xlu2 %1990 }
 0x2e5   : > { %1921 = vrot.lane.b32.xlu1 %v1920_v26, %s6403_s17  ;;  %v7355_v26 = vpop.permute.xlu1 %1986 }
 0x2e6   : > { %v2001_v39 = vpop.permute.xlu0 %2000 }
 0x2e7   : > { %1926 = vrot.lane.b32.xlu0 %v1925_v28, %s6404_s21 }
 0x2ec   : > { %1871 = vrot.lane.b32.xlu2 %v1870_v30, %s6402_s23  ;;  %v7353_v12 = vpop.permute.xlu2 %1996 }
 0x2ed   : > { %1876 = vrot.lane.b32.xlu1 %v1875_v53, %s6403_s17  ;;  %v1993_v27 = vpop.permute.xlu1 %1992 }
 0x2ee   : > { %v2020_v7 = vshrl.u32 %v1993_v27, 16  ;;  %v2018_v35 = vpack.i.b16 %v1993_v27, %v1985_v15 }
 0x2ef   : > { %1881 = vrot.lane.b32.xlu0 %v1880_v4, %s6404_s21 }
 0x2f4   : > { %1901 = vrot.lane.b32.xlu2 %v1900_v22, %s6402_s23 }
 0x2f5   : > { %1906 = vrot.lane.b32.xlu1 %v1905_v31, %s6403_s17  ;;  %v7367_v54 = vpop.permute.xlu1 %1998 }
 0x2f7   : > { %1911 = vrot.lane.b32.xlu0 %v1910_v32, %s6404_s21 }
 0x2fc   : > { %2002 = vrot.lane.b32.xlu2 %v6751_v47, %s6405_s22 }
 0x2fd   : > { %2004 = vrot.lane.b32.xlu1 %v6806_v41, %s6405_s22 }
 0x2ff   : > { %2006 = vrot.lane.b32.xlu0 %v6856_v10, %s6405_s22 }
 0x304   : > { %2008 = vrot.lane.b32.xlu2 %v6707_v63, %s6405_s22 }
 0x305   : > { %2010 = vrot.lane.b32.xlu1 %v6765_v56, %s6405_s22 }
 0x307   : > { %2012 = vrot.lane.b32.xlu0 %v6801_v36, %s6405_s22 }
 0x30c   : > { %2014 = vrot.lane.b32.xlu2 %v6860_v3, %s6405_s22 }
 0x316   : > { %v7359_v10 = vpop.permute.xlu2 %1826 }
 0x317   : > { %10073 = vst [vmem:[#allocation59_spill] sm:$0xff] %v7359_v10 }
 0x31e   : > { %v7361_v28 = vpop.permute.xlu2 %1856 }
 0x31f   : > { %10074 = vst [vmem:[#allocation60_spill] sm:$0xff] %v7361_v28 }
 0x326   : > { %v7365_v16 = vpop.permute.xlu2 %1811 }
 0x327   : > { %10075 = vst [vmem:[#allocation61_spill] sm:$0xff] %v7365_v16 }
 0x32e   : > { %v7369_v52 = vpop.permute.xlu2 %1841 }
 0x32f   : > { %10076 = vst [vmem:[#allocation62_spill] sm:$0xff] %v7369_v52  ;;  %v7371_v3 = vpop.permute.xlu1 %1831 }
 0x330   : > { %10077 = vst [vmem:[#allocation63_spill] sm:$0xff] %v7371_v3 }
 0x331   : > { %v7373_v38 = vpop.permute.xlu0 %1836 }
 0x332   : > { %10078 = vst [vmem:[#allocation64_spill] sm:$0xff] %v7373_v38 }
 0x336   : > { %v7375_v30 = vpop.permute.xlu2 %1886 }
 0x337   : > { %10079 = vst [vmem:[#allocation65_spill] sm:$0xff] %v7375_v30  ;;  %v7377_v58 = vpop.permute.xlu1 %1861 }
 0x338   : > { %10080 = vst [vmem:[#allocation66_spill] sm:$0xff] %v7377_v58 }
 0x339   : > { %v7379_v53 = vpop.permute.xlu0 %1866 }
 0x33a   : > { %10081 = vst [vmem:[#allocation67_spill] sm:$0xff] %v7379_v53 }
 0x33e   : > { %v7381_v60 = vpop.permute.xlu2 %1916 }
 0x33f   : > { %10082 = vst [vmem:[#allocation68_spill] sm:$0xff] %v7381_v60  ;;  %v7383_v4 = vpop.permute.xlu1 %1816  ;;  %v2019_v60 = vshrl.u32 %v1985_v15, 16 }
 0x340   : > { %10083 = vst [vmem:[#allocation69_spill] sm:$0xff] %v7383_v4 }
 0x341   : > { %v7385_v24 = vpop.permute.xlu0 %1821 }
 0x342   : > { %10084 = vst [vmem:[#allocation70_spill] sm:$0xff] %v7385_v24  ;;  %v2068_v24 = vperm.slane %v2018_v35, %v6696_v55 }
 0x346   : > { %v7387_v43 = vpop.permute.xlu2 %1871 }
 0x347   : > { %10085 = vst [vmem:[#allocation71_spill] sm:$0xff] %v7387_v43  ;;  %v7389_v48 = vpop.permute.xlu1 %1846  ;;  %v2021_v43 = vpack.i.b16 %v2020_v7, %v2019_v60 }
 0x348   : > { %10086 = vst [vmem:[#allocation72_spill] sm:$0xff] %v7389_v48 }
 0x349   : > { %v7391_v21 = vpop.permute.xlu0 %1851 }
 0x34a   : > { %10087 = vst [vmem:[#allocation73_spill] sm:$0xff] %v7391_v21  ;;  %v2094_v21 = vperm.slane %v2021_v43, %v6696_v55 }
 0x34c   : > { %v2102_v15 = vrot.slane %v2094_v21, 4 }
 0x34e   : > { %v7393_v22 = vpop.permute.xlu2 %1901 }
 0x34f   : > { %10088 = vst [vmem:[#allocation74_spill] sm:$0xff] %v7393_v22  ;;  %v7395_v31 = vpop.permute.xlu1 %1891  ;;  %v2025_v22 = vshrl.u32 %v2001_v39, 16 }
 0x350   : > { %10089 = vst [vmem:[#allocation75_spill] sm:$0xff] %v7395_v31 }
 0x351   : > { %v7397_v32 = vpop.permute.xlu0 %1896 }
 0x352   : > { %10090 = vst [vmem:[#allocation76_spill] sm:$0xff] %v7397_v32  ;;  %v2076_v32 = vrot.slane %v2068_v24, 4 }
 0x356   : > { %v7399_v34 = vpop.permute.xlu2 %2002 }
 0x357   : > { %v7401_v46 = vpop.permute.xlu1 %1921 }
 0x358   : > { %10091 = vst [vmem:[#allocation77_spill] sm:$0xff] %v7401_v46 }
 0x359   : > { %v7403_v30 = vpop.permute.xlu0 %1926 }
 0x35a   : > { %10092 = vst [vmem:[#allocation78_spill] sm:$0xff] %v7403_v30 }
 0x35e   : > { %v2009_v48 = vpop.permute.xlu2 %2008 }
 0x35f   : > { %v2024_v4 = vpack.i.b16 %v2009_v48, %v2001_v39  ;;  %v2026_v31 = vshrl.u32 %v2009_v48, 16  ;;  %v7407_v53 = vpop.permute.xlu1 %1876 }
 0x360   : > { %10093 = vst [vmem:[#allocation79_spill] sm:$0xff] %v7407_v53 }
 0x361   : > { %v2027_v38 = vpack.i.b16 %v2026_v31, %v2025_v22  ;;  %v2073_v11 = vperm.slane %v2024_v4, %v6696_v55  ;;  %v7410_v46 = vpop.permute.xlu0 %1881 }
 0x362   : > { %10094 = vst [vmem:[#allocation80_spill] sm:$0xff] %v7410_v46 }
 0x363   : > { %v2074_v27 = vrot.slane %v2073_v11, 4  ;;  %v2099_v7 = vperm.slane %v2027_v38, %v6696_v55  ;;  %v2077_v35 = vsel %vm1127_vm1, %v2073_v11, %v2076_v32 }
 0x364   : > { %v7420_v22 = vperm.slane %v2077_v35, %v6721_v14 }
 0x365   : > { %v2100_v60 = vrot.slane %v2099_v7, 4  ;;  %v2075_v43 = vsel %vm1127_vm1, %v2074_v27, %v2068_v24  ;;  %v2103_v39 = vsel %vm1127_vm1, %v2099_v7, %v2102_v15 }
 0x366   : > { %v7417_v48 = vperm.slane %v2075_v43, %v6721_v14  ;;  %10096 = vst [vmem:[#allocation82_spill] sm:$0xff] %v7420_v22  ;;  %v2111_v11 = vperm.slane %v2103_v39, %v6721_v14  ;;  %v2088_v7 = vrot.slane %v7420_v22, 4  ;;  %v2037_v22 = vshrl.u32 %v7399_v34, 16  ;;  %v2015_v28 = vpop.permute.xlu2 %2014 }
 0x367   : > { %v7422_v4 = vpop.permute.xlu1 %1906  ;;  %v2101_v31 = vsel %vm1127_vm1, %v2100_v60, %v2094_v21 }
 0x368   : > { %10095 = vst [vmem:[#allocation81_spill] sm:$0xff] %v7417_v48  ;;  %v2107_v46 = vperm.slane %v2101_v31, %v6721_v14  ;;  %v2086_v38 = vrot.slane %v7417_v48, 4  ;;  %v2114_v30 = vrot.slane %v2111_v11, 4  ;;  %v2089_v31 = vsel %vm1127_vm1, 0, %v2088_v7 }
 0x369   : > { %10097 = vst [vmem:[#allocation83_spill] sm:$0xff] %v7422_v4  ;;  %v7428_v32 = vpop.permute.xlu0 %1911 }
 0x36a   : > { %10098 = vst [vmem:[#allocation84_spill] sm:$0xff] %v7428_v32  ;;  %v2273_v24 = vunpack.c.l.b16 %v2107_v46  ;;  %v2087_v15 = vsel %vm1127_vm1, 0, %v2086_v38  ;;  %v2112_v27 = vrot.slane %v2107_v46, 4  ;;  %v2288_v32 = vunpack.c.l.b16 %v2111_v11 }
 0x36b   : > { %v2278_v35 = vunpack.c.l.b16 %v2087_v15  ;;  %v2115_v46 = vsel %vm1127_vm1, 0, %v2114_v30  ;;  %v2032_v38 = vshrl.u32 %v7363_v13, 16  ;;  %v2293_v15 = vunpack.c.l.b16 %v2089_v31 }
 0x36c   : > { %v2274_v43 = vpack.c.b16 %v2273_v24, %v2273_v24  ;;  %v2113_v53 = vsel %vm1127_vm1, 0, %v2112_v27  ;;  %v2030_v27 = vpack.i.b16 %v7363_v13, %v7355_v26  ;;  %v2298_v7 = vunpack.c.l.b16 %v2115_v46 }
 0x36d   : > { %v2279_v21 = vpack.c.b16 %v2278_v35, %v2278_v35  ;;  %v2283_v60 = vunpack.c.l.b16 %v2113_v53  ;;  %v2031_v53 = vshrl.u32 %v7355_v26, 16  ;;  %v2289_v35 = vpack.c.b16 %v2288_v32, %v2288_v32 }
 0x36e   : > { %2275 = vrot.lane.b32.xlu1 %v2274_v43, %s6402_s23  ;;  %v2520_v43 = vshll.u32 %v6610_v45, 16  ;;  %v2294_v11 = vpack.c.b16 %v2293_v15, %v2293_v15  ;;  %v2525_v30 = vshll.u32 %v6617_v51, 16  ;;  %v2299_v31 = vpack.c.b16 %v2298_v7, %v2298_v7 }
 0x36f   : > { %v2005_v39 = vpop.permute.xlu1 %2004  ;;  %2280 = vrot.lane.b32.xlu0 %v2279_v21, %s6403_s17  ;;  %v2284_v48 = vpack.c.b16 %v2283_v60, %v2283_v60  ;;  %v2033_v21 = vpack.i.b16 %v2032_v38, %v2031_v53  ;;  %v10099_v32 = vshrl.u32 %v6610_v45, 16 }
 0x370   : > { %v7455_v38 = vrot.slane %v2520_v43, 5  ;;  %v2049_v53 = vshrl.u32 %v2005_v39, 16  ;;  %v7460_v52 = vrot.slane %v2525_v30, 5  ;;  %v2044_v43 = vshrl.u32 %v7353_v12, 16 }
 0x371   : > { %2285 = vrot.lane.b32.xlu2 %v2284_v48, %s6404_s21  ;;  %v7439_v24 = vpop.permute.xlu0 %2006  ;;  %v2120_v48 = vperm.slane %v2030_v27, %v6696_v55  ;;  %v7453_v46 = vrot.slane %v10099_v32, 4  ;;  %v2146_v15 = vperm.slane %v2033_v21, %v6696_v55 }
 0x372   : > { %v2061_v50 = vshrl.u32 %v7439_v24, 16 }
 0x373   : > { %v2128_v32 = vrot.slane %v2120_v48, 4  ;;  %v2154_v30 = vrot.slane %v2146_v15, 4 }
 0x376   : > { %2290 = vrot.lane.b32.xlu1 %v2289_v35, %s6402_s23 }
 0x377   : > { %v2011_v60 = vpop.permute.xlu1 %2010  ;;  %2295 = vrot.lane.b32.xlu0 %v2294_v11, %s6403_s17 }
 0x378   : > { %v2036_v26 = vpack.i.b16 %v2011_v60, %v7399_v34  ;;  %v2038_v13 = vshrl.u32 %v2011_v60, 16  ;;  %v10100_v34 = vshrl.u32 %v6617_v51, 16 }
 0x379   : > { %2300 = vrot.lane.b32.xlu2 %v2299_v31, %s6404_s21  ;;  %v2013_v27 = vpop.permute.xlu0 %2012 }
 0x37a   : > { %v2039_v35 = vpack.i.b16 %v2038_v13, %v2037_v22  ;;  %v2125_v7 = vperm.slane %v2036_v26, %v6696_v55  ;;  %v2048_v11 = vpack.i.b16 %v2013_v27, %v2005_v39  ;;  %v2050_v4 = vshrl.u32 %v2013_v27, 16 }
 0x37b   : > { %v7464_v60 = vrot.slane %v10100_v34, 4  ;;  %v2556_v22 = vshll.u32 %v6641_v29, 16  ;;  %v2043_v39 = vshrl.u32 %v7357_v49, 16  ;;  %v2042_v13 = vpack.i.b16 %v7353_v12, %v7357_v49 }
 0x37c   : > { %v2126_v62 = vrot.slane %v2125_v7, 4  ;;  %v2151_v21 = vperm.slane %v2039_v35, %v6696_v55  ;;  %v2051_v16 = vpack.i.b16 %v2050_v4, %v2049_v53  ;;  %v7469_v31 = vperm.slane %v2048_v11, %v6696_v55 }
 0x37d   : > { %v2129_v26 = vsel %vm1127_vm1, %v2125_v7, %v2128_v32  ;;  %v10103_v7 = vshrl.u32 %v6641_v29, 16  ;;  %v2045_v49 = vpack.i.b16 %v2044_v43, %v2043_v39 }
 0x37e   : > { %v2152_v27 = vrot.slane %v2151_v21, 4  ;;  %v7477_v34 = vperm.slane %v2051_v16, %v6696_v55  ;;  %v2127_v35 = vsel %vm1127_vm1, %v2126_v62, %v2120_v48  ;;  %v2155_v11 = vsel %vm1127_vm1, %v2151_v21, %v2154_v30 }
 0x37f   : > { %v7483_v53 = vperm.slane %v2127_v35, %v6721_v14  ;;  %v7487_v58 = vperm.slane %v2129_v26, %v6721_v14  ;;  %v7491_v12 = vrot.slane %v10103_v7, 4  ;;  %v2178_v16 = vrot.slane %v7469_v31, 4 }
 0x380   : > { %v2153_v62 = vsel %vm1127_vm1, %v2152_v27, %v2146_v15  ;;  %v2592_v48 = vshll.u32 %v6704_v59, 16  ;;  %v2163_v21 = vperm.slane %v2155_v11, %v6721_v14  ;;  %v7499_v30 = vrot.slane %v2556_v22, 5 }
 0x381   : > { %10101 = vst [vmem:[#allocation85_spill] sm:$0xff] %v7483_v53  ;;  %v2159_v32 = vperm.slane %v2153_v62, %v6721_v14  ;;  %v2138_v35 = vrot.slane %v7483_v53, 4  ;;  %v2628_v26 = vshll.u32 %v6707_v63, 16  ;;  %v2172_v7 = vperm.slane %v2042_v13, %v6696_v55 }
 0x382   : > { %10102 = vst [vmem:[#allocation86_spill] sm:$0xff] %v7487_v58  ;;  %v2204_v43 = vrot.slane %v7477_v34, 4  ;;  %v2140_v27 = vrot.slane %v7487_v58, 4  ;;  %v10104_v62 = vshrl.u32 %v6704_v59, 16  ;;  %v2198_v53 = vperm.slane %v2045_v49, %v6696_v55 }
 0x383   : > { %v2303_v39 = vunpack.c.l.b16 %v2159_v32  ;;  %v2139_v4 = vsel %vm1127_vm1, 0, %v2138_v35  ;;  %v2164_v15 = vrot.slane %v2159_v32, 4  ;;  %v2179_v22 = vsel %vm1127_vm1, %v2178_v16, %v2172_v7 }
 0x384   : > { %v2591_v3 = vrot.slane %v10104_v62, 4  ;;  %v2308_v11 = vunpack.c.l.b16 %v2139_v4  ;;  %v2594_v17 = vrot.slane %v2592_v48, 5  ;;  %v2166_v6 = vrot.slane %v2163_v21, 4 }
 0x385   : > { %v2304_v10 = vpack.c.b16 %v2303_v39, %v2303_v39  ;;  %v2165_v13 = vsel %vm1127_vm1, 0, %v2164_v15  ;;  %v2205_v58 = vsel %vm1127_vm1, %v2204_v43, %v2198_v53  ;;  %v2627_v62 = vrot.slane %v10105_v25, 4 }
 0x386   : > { %v2309_v35 = vpack.c.b16 %v2308_v11, %v2308_v11  ;;  %v2313_v32 = vunpack.c.l.b16 %v2165_v13  ;;  %v2630_v9 = vrot.slane %v2628_v26, 5  ;;  %v2141_v4 = vsel %vm1127_vm1, 0, %v2140_v27 }
 0x387   : > { %2305 = vrot.lane.b32.xlu1 %v2304_v10, %s6402_s23  ;;  %v7518_v49 = vperm.slane %v2179_v22, %v6721_v14  ;;  %v2062_v48 = vshrl.u32 %v2015_v28, 16  ;;  %v2060_v39 = vpack.i.b16 %v2015_v28, %v7439_v24  ;;  %v2559_v25 = vor.u32 %v7499_v30, %v7491_v12 }
 0x388   : > { %2310 = vrot.lane.b32.xlu0 %v2309_v35, %s6403_s17  ;;  %v2314_v43 = vpack.c.b16 %v2313_v32, %v2313_v32  ;;  %v2318_v26 = vunpack.c.l.b16 %v2163_v21  ;;  %v2167_v10 = vsel %vm1127_vm1, 0, %v2166_v6  ;;  %v2211_v15 = vperm.slane %v2205_v58, %v6721_v14 }
 0x389   : > { %10106 = vst [vmem:[#allocation87_spill] sm:$0xff] %v7518_v49  ;;  %v2561_v27 = vshll.u32 %v6649_v33, 16  ;;  %v2180_v11 = vrot.slane %v2172_v7, 4  ;;  %v2063_v22 = vpack.i.b16 %v2062_v48, %v2061_v50  ;;  %v2323_v13 = vunpack.c.l.b16 %v2141_v4 }
 0x38a   : > { %2315 = vrot.lane.b32.xlu2 %v2314_v43, %s6404_s21  ;;  %v2595_v16 = vor.u32 %v2594_v17, %v2591_v3  ;;  %v2631_v28 = vor.u32 %v2630_v9, %v2627_v62  ;;  %v2206_v24 = vrot.slane %v2198_v53, 4  ;;  %v2190_v35 = vrot.slane %v7518_v49, 4 }
 0x38b   : > { %v2056_v32 = vshrl.u32 %v7367_v54, 16  ;;  %v7533_v12 = vperm.slane %v2060_v39, %v6696_v55  ;;  %v2328_v6 = vunpack.c.l.b16 %v2167_v10  ;;  %v2181_v58 = vsel %vm1127_vm1, %v7469_v31, %v2180_v11 }
 0x38c   : > { %v2633_v21 = vshll.u32 %v6765_v56, 16  ;;  %v2055_v50 = vshrl.u32 %v7343_v0, 16  ;;  %v2319_v30 = vpack.c.b16 %v2318_v26, %v2318_v26  ;;  %v2216_v7 = vrot.slane %v2211_v15, 4 }
 0x38d   : > { %v2054_v9 = vpack.i.b16 %v7367_v54, %v7343_v0  ;;  %v7542_v17 = vperm.slane %v2063_v22, %v6696_v55  ;;  %v2324_v3 = vpack.c.b16 %v2323_v13, %v2323_v13  ;;  %v2207_v53 = vsel %vm1127_vm1, %v7477_v34, %v2206_v24 }
 0x38e   : > { %v2632_v62 = vrot.slane %v2631_v28, 4  ;;  %v2597_v4 = vshll.u32 %v6751_v47, 16  ;;  %v2191_v31 = vsel %vm1127_vm1, 0, %v2190_v35  ;;  %v7550_v48 = vperm.slane %v2181_v58, %v6721_v14 }
 0x38f   : > { %2320 = vrot.lane.b32.xlu1 %v2319_v30, %s6402_s23  ;;  %v2596_v39 = vrot.slane %v2595_v16, 4  ;;  %v2057_v43 = vpack.i.b16 %v2056_v32, %v2055_v50  ;;  %v2230_v0 = vrot.slane %v7533_v12, 4  ;;  %v2329_v54 = vpack.c.b16 %v2328_v6, %v2328_v6 }
 0x390   : > { %10107 = vst [vmem:[#allocation88_spill] sm:$0xff] %v7550_v48  ;;  %2325 = vrot.lane.b32.xlu0 %v2324_v3, %s6403_s17  ;;  %v7554_v26 = vrot.slane %v2633_v21, 5  ;;  %v2333_v34 = vunpack.c.l.b16 %v2211_v15  ;;  %v2217_v10 = vsel %vm1127_vm1, 0, %v2216_v7  ;;  %v2215_v11 = vperm.slane %v2207_v53, %v6721_v14 }
 0x391   : > { %v10108_v22 = vor.u32 %v7455_v38, %v7453_v46  ;;  %v2224_v28 = vperm.slane %v2054_v9, %v6696_v55  ;;  %v2256_v16 = vrot.slane %v7542_v17, 4  ;;  %v2338_v24 = vunpack.c.l.b16 %v2191_v31 }
 0x392   : > { %2330 = vrot.lane.b32.xlu2 %v2329_v54, %s6404_s21  ;;  %v7564_v35 = vrot.slane %v2597_v4, 5  ;;  %v2192_v15 = vrot.slane %v7550_v48, 4  ;;  %v7571_v6 = vsel %vm7003_vm4, %v2632_v62, %v7554_v26  ;;  %v2560_v46 = vrot.slane %v2559_v25, 4 }
 0x393   : > { %v2524_v13 = vrot.slane %v10108_v22, 4  ;;  %v2250_v38 = vperm.slane %v2057_v43, %v6696_v55  ;;  %v2343_v58 = vunpack.c.l.b16 %v2217_v10  ;;  %v2231_v21 = vsel %vm1127_vm1, %v2230_v0, %v2224_v28 }
 0x394   : > { %v7575_v50 = vrot.slane %v2561_v27, 5  ;;  %v2334_v30 = vpack.c.b16 %v2333_v34, %v2333_v34  ;;  %v2218_v7 = vrot.slane %v2215_v11, 4  ;;  %v7580_v9 = vsel %vm7003_vm4, %v2596_v39, %v7564_v35 }
 0x395   : > { %v10109_v3 = vshrl.u32 %v6649_v33, 16  ;;  %v2339_v62 = vpack.c.b16 %v2338_v24, %v2338_v24  ;;  %v2257_v25 = vsel %vm1127_vm1, %v2256_v16, %v2250_v38  ;;  %v2672_v4 = vshrl.u32 %v7571_v6, 16 }
 0x396   : > { %v2569_v31 = vshll.u32 %v6763_v40, 16  ;;  %v2193_v27 = vsel %vm1127_vm1, 0, %v2192_v15  ;;  %v7592_v43 = vperm.slane %v2231_v21, %v6721_v14  ;;  %v7597_v39 = vsel %vm7003_vm4, %v2524_v13, %v7460_v52 }
 0x397   : > { %v7584_v53 = vrot.slane %v10109_v3, 4  ;;  %2335 = vrot.lane.b32.xlu1 %v2334_v30, %s6402_s23  ;;  %v2344_v0 = vpack.c.b16 %v2343_v58, %v2343_v58  ;;  %v7603_v54 = vsel %vm7003_vm4, %v2560_v46, %v7575_v50  ;;  %v2671_v34 = vshrl.u32 %v7580_v9, 16 }
 0x398   : > { %10110 = vst [vmem:[#allocation89_spill] sm:$0xff] %v7592_v43  ;;  %2340 = vrot.lane.b32.xlu0 %v2339_v62, %s6403_s17  ;;  %v2670_v10 = vpack.i.b16 %v7571_v6, %v7580_v9  ;;  %v10111_v22 = vshrl.u32 %v6765_v56, 16  ;;  %v2348_v24 = vunpack.c.l.b16 %v2215_v11  ;;  %v2219_v13 = vsel %vm1127_vm1, 0, %v2218_v7 }
 0x399   : > { %v2263_v15 = vperm.slane %v2257_v25, %v6721_v14  ;;  %v10112_v58 = vshrl.u32 %v6751_v47, 16  ;;  %v2232_v30 = vrot.slane %v2224_v28, 4  ;;  %v2353_v46 = vunpack.c.l.b16 %v2193_v27 }
 0x39a   : > { %v2638_v16 = vrot.slane %v10111_v22, 4  ;;  %2345 = vrot.lane.b32.xlu2 %v2344_v0, %s6404_s21  ;;  %v2673_v3 = vpack.i.b16 %v2672_v4, %v2671_v34  ;;  %v2605_v62 = vshll.u32 %v6806_v41, 16  ;;  %v2641_v32 = vshll.u32 %v6801_v36, 16 }
 0x39b   : > { %v2602_v21 = vrot.slane %v10112_v58, 4  ;;  %v2242_v48 = vrot.slane %v7592_v43, 4  ;;  %v2666_v11 = vshrl.u32 %v7603_v54, 16  ;;  %v2258_v22 = vrot.slane %v2250_v38, 4 }
 0x39c   : > { %v2358_v7 = vunpack.c.l.b16 %v2219_v13  ;;  %v2233_v25 = vsel %vm1127_vm1, %v7533_v12, %v2232_v30  ;;  %v7622_v58 = vperm.slane %v2670_v10, %v6696_v55  ;;  %v2639_v28 = vor.u32 %v2638_v16, %v7554_v26 }
 0x39d   : > { %v2349_v27 = vpack.c.b16 %v2348_v24, %v2348_v24  ;;  %v2268_v4 = vrot.slane %v2263_v15, 4  ;;  %v2665_v0 = vshrl.u32 %v7597_v39, 16  ;;  %v2354_v34 = vpack.c.b16 %v2353_v46, %v2353_v46 }
 0x39e   : > { %v2259_v49 = vsel %vm1127_vm1, %v7542_v17, %v2258_v22  ;;  %v7629_v43 = vperm.slane %v2673_v3, %v6696_v55  ;;  %v2664_v38 = vpack.i.b16 %v7603_v54, %v7597_v39  ;;  %v2603_v12 = vor.u32 %v2602_v21, %v7564_v35 }
 0x39f   : > { %v7634_v10 = vrot.slane %v2641_v32, 5  ;;  %2350 = vrot.lane.b32.xlu1 %v2349_v27, %s6402_s23  ;;  %v2243_v26 = vsel %vm1127_vm1, 0, %v2242_v48  ;;  %v7639_v16 = vperm.slane %v2233_v25, %v6721_v14  ;;  %v7641_v24 = vrot.slane %v2605_v62, 5 }
 0x3a0   : > { %2355 = vrot.lane.b32.xlu0 %v2354_v34, %s6403_s17  ;;  %v2359_v17 = vpack.c.b16 %v2358_v7, %v2358_v7  ;;  %v2667_v13 = vpack.i.b16 %v2666_v11, %v2665_v0  ;;  %v2720_v30 = vrot.slane %v7622_v58, 4  ;;  %v2640_v46 = vrot.slane %v2639_v28, 4 }
 0x3a1   : > { %10113 = vst [vmem:[#allocation90_spill] sm:$0xff] %v7639_v16  ;;  %v2363_v3 = vunpack.c.l.b16 %v2263_v15  ;;  %v2269_v35 = vsel %vm1127_vm1, 0, %v2268_v4  ;;  %v2267_v32 = vperm.slane %v2259_v49, %v6721_v14  ;;  %v2567_v48 = vor.u32 %v7584_v53, %v7575_v50 }
 0x3a2   : > { %2360 = vrot.lane.b32.xlu2 %v2359_v17, %s6404_s21  ;;  %v2368_v21 = vunpack.c.l.b16 %v2243_v26  ;;  %v2746_v62 = vrot.slane %v7629_v43, 4  ;;  %v2714_v22 = vperm.slane %v2664_v38, %v6696_v55  ;;  %v10114_v11 = vor.u32 %v7464_v60, %v7460_v52 }
 0x3a3   : > { %v2604_v25 = vrot.slane %v2603_v12, 4  ;;  %v2244_v15 = vrot.slane %v7639_v16, 4  ;;  %v7659_v49 = vsel %vm7003_vm4, %v2640_v46, %v7634_v10  ;;  %v7661_v50 = vrot.slane %v2569_v31, 5 }
 0x3a4   : > { %v2532_v7 = vrot.slane %v10114_v11, 4  ;;  %v2373_v53 = vunpack.c.l.b16 %v2269_v35  ;;  %v2740_v28 = vperm.slane %v2667_v13, %v6696_v55  ;;  %v2721_v27 = vsel %vm1127_vm1, %v2720_v30, %v2714_v22 }
 0x3a5   : > { %v10115_v4 = vshll.u32 %v6626_v2, 16  ;;  %v2364_v52 = vpack.c.b16 %v2363_v3, %v2363_v3  ;;  %v2270_v60 = vrot.slane %v2267_v32, 4  ;;  %v7672_v34 = vsel %vm7003_vm4, %v2604_v25, %v7641_v24 }
 0x3a6   : > { %v2568_v38 = vrot.slane %v2567_v48, 4  ;;  %v2369_v12 = vpack.c.b16 %v2368_v21, %v2368_v21  ;;  %v2747_v31 = vsel %vm1127_vm1, %v2746_v62, %v2740_v28  ;;  %v2684_v26 = vshrl.u32 %v7659_v49, 16 }
 0x3a7   : > { %v7667_v0 = vrot.slane %v10115_v4, 5  ;;  %v10116_v17 = vshrl.u32 %v6626_v2, 16  ;;  %v10117_v30 = vshrl.u32 %v6801_v36, 16  ;;  %2365 = vrot.lane.b32.xlu1 %v2364_v52, %s6402_s23  ;;  %v2245_v3 = vsel %vm1127_vm1, 0, %v2244_v15 }
 0x3a8   : > { %v7685_v35 = vperm.slane %v2721_v27, %v6721_v14  ;;  %2370 = vrot.lane.b32.xlu0 %v2369_v12, %s6403_s17  ;;  %v2374_v48 = vpack.c.b16 %v2373_v53, %v2373_v53  ;;  %v7691_v21 = vsel %vm7003_vm4, %v2568_v38, %v7661_v50  ;;  %v2683_v62 = vshrl.u32 %v7672_v34, 16 }
 0x3a9   : > { %v7678_v13 = vrot.slane %v10116_v17, 4  ;;  %v2646_v46 = vrot.slane %v10117_v30, 4  ;;  %v2682_v11 = vpack.i.b16 %v7659_v49, %v7672_v34  ;;  %v10119_v25 = vshrl.u32 %v6806_v41, 16 }
 0x3aa   : > { %10118 = vst [vmem:[#allocation91_spill] sm:$0xff] %v7685_v35  ;;  %v2378_v15 = vunpack.c.l.b16 %v2267_v32  ;;  %v2271_v27 = vsel %vm1127_vm1, 0, %v2270_v60  ;;  %v2753_v52 = vperm.slane %v2747_v31, %v6721_v14  ;;  %2375 = vrot.lane.b32.xlu2 %v2374_v48, %s6404_s21  ;;  %v2383_v53 = vunpack.c.l.b16 %v2245_v3 }
 0x3ab   : > { %v2610_v4 = vrot.slane %v10119_v25, 4  ;;  %v2722_v12 = vrot.slane %v2714_v22, 4  ;;  %v7704_v38 = vsel %vm7003_vm4, %v2532_v7, %v7667_v0  ;;  %v2685_v17 = vpack.i.b16 %v2684_v26, %v2683_v62 }
 0x3ac   : > { %v10120_v30 = vshrl.u32 %v6763_v40, 16  ;;  %v2647_v25 = vor.u32 %v2646_v46, %v7634_v10  ;;  %v2732_v32 = vrot.slane %v7685_v35, 4  ;;  %v2748_v60 = vrot.slane %v2740_v28, 4 }
 0x3ad   : > { %v2388_v44 = vunpack.c.l.b16 %v2271_v27  ;;  %v2723_v31 = vsel %vm1127_vm1, %v7622_v58, %v2722_v12  ;;  %v2678_v22 = vshrl.u32 %v7691_v21, 16  ;;  %v2771_v3 = vperm.slane %v2682_v11, %v6696_v55 }
 0x3ae   : > { %v2574_v16 = vrot.slane %v10120_v30, 4  ;;  %v2611_v7 = vor.u32 %v2610_v4, %v7641_v24  ;;  %v2379_v48 = vpack.c.b16 %v2378_v15, %v2378_v15  ;;  %v2758_v26 = vrot.slane %v2753_v52, 4 }
 0x3af   : > { %v2677_v62 = vshrl.u32 %v7704_v38, 16  ;;  %v2384_v30 = vpack.c.b16 %v2383_v53, %v2383_v53  ;;  %v2749_v10 = vsel %vm1127_vm1, %v7629_v43, %v2748_v60  ;;  %v2797_v28 = vperm.slane %v2685_v17, %v6696_v55 }
 0x3b0   : > { %v2676_v46 = vpack.i.b16 %v7691_v21, %v7704_v38  ;;  %v2648_v58 = vrot.slane %v2647_v25, 4  ;;  %2380 = vrot.lane.b32.xlu1 %v2379_v48, %s6402_s23  ;;  %v2733_v11 = vsel %vm1127_vm1, 0, %v2732_v32  ;;  %v7724_v24 = vperm.slane %v2723_v31, %v6721_v14 }
 0x3b1   : > { %v2575_v4 = vor.u32 %v2574_v16, %v7661_v50  ;;  %2385 = vrot.lane.b32.xlu0 %v2384_v30, %s6403_s17  ;;  %v2389_v15 = vpack.c.b16 %v2388_v44, %v2388_v44  ;;  %v2679_v27 = vpack.i.b16 %v2678_v22, %v2677_v62  ;;  %v2772_v43 = vrot.slane %v2771_v3, 4 }
 0x3b2   : > { %10121 = vst [vmem:[#allocation92_spill] sm:$0xff] %v7724_v24  ;;  %v2612_v53 = vrot.slane %v2611_v7, 4  ;;  %v2919_v12 = vunpack.c.l.b16 %v2753_v52  ;;  %v2759_v17 = vsel %vm1127_vm1, 0, %v2758_v26  ;;  %v2757_v25 = vperm.slane %v2749_v10, %v6721_v14 }
 0x3b3   : > { %v2539_v60 = vor.u32 %v7678_v13, %v7667_v0  ;;  %2390 = vrot.lane.b32.xlu2 %v2389_v15, %s6404_s21  ;;  %v2924_v32 = vunpack.c.l.b16 %v2733_v11  ;;  %v2798_v31 = vrot.slane %v2797_v28, 4  ;;  %v2766_v16 = vperm.slane %v2676_v46, %v6696_v55 }
 0x3b4   : > { %v2734_v50 = vrot.slane %v7724_v24, 4  ;;  %v7738_v44 = vsel %vm7003_vm4, %v2648_v58, %v7021_v8  ;;  %v2929_v52 = vunpack.c.l.b16 %v2759_v17  ;;  %v2792_v22 = vperm.slane %v2679_v27, %v6696_v55 }
 0x3b5   : > { %v2773_v7 = vsel %vm1127_vm1, %v2772_v43, %v2766_v16  ;;  %v2576_v48 = vrot.slane %v2575_v4, 4  ;;  %v2920_v0 = vpack.c.b16 %v2919_v12, %v2919_v12  ;;  %v2760_v13 = vrot.slane %v2757_v25, 4 }
 0x3b6   : > { %v7745_v26 = vsel %vm7003_vm4, %v2612_v53, %v6989_v18  ;;  %v2540_v62 = vrot.slane %v2539_v60, 4  ;;  %v2925_v30 = vpack.c.b16 %v2924_v32, %v2924_v32  ;;  %v2799_v10 = vsel %vm1127_vm1, %v2798_v31, %v2792_v22 }
 0x3b7   : > { %v2696_v8 = vshrl.u32 %v7738_v44, 16  ;;  %v2735_v46 = vsel %vm1127_vm1, 0, %v2734_v50  ;;  %v7752_v58 = vperm.slane %v2773_v7, %v6721_v14  ;;  %v2930_v11 = vpack.c.b16 %v2929_v52, %v2929_v52 }
 0x3b8   : > { %2921 = vrot.lane.b32.xlu1 %v2920_v0, %s6402_s23  ;;  %v2774_v4 = vrot.slane %v2766_v16, 4  ;;  %v2695_v18 = vshrl.u32 %v7745_v26, 16  ;;  %v2694_v15 = vpack.i.b16 %v7738_v44, %v7745_v26  ;;  %v2934_v27 = vunpack.c.l.b16 %v2757_v25 }
 0x3b9   : > { %2926 = vrot.lane.b32.xlu0 %v2925_v30, %s6403_s17  ;;  %v2761_v43 = vsel %vm1127_vm1, 0, %v2760_v13  ;;  %v2805_v53 = vperm.slane %v2799_v10, %v6721_v14  ;;  %v7763_v12 = vsel %vm7003_vm4, %v2576_v48, %v6980_v57  ;;  %v2939_v17 = vunpack.c.l.b16 %v2735_v46 }
 0x3ba   : > { %v7769_v60 = vsel %vm7003_vm4, %v2540_v62, %v6957_v37  ;;  %v2697_v32 = vpack.i.b16 %v2696_v8, %v2695_v18  ;;  %v2784_v25 = vrot.slane %v7752_v58, 4  ;;  %v2800_v31 = vrot.slane %v2792_v22, 4 }
 0x3bb   : > { %2931 = vrot.lane.b32.xlu2 %v2930_v11, %s6404_s21  ;;  %v2775_v16 = vsel %vm1127_vm1, %v2771_v3, %v2774_v4  ;;  %v2944_v50 = vunpack.c.l.b16 %v2761_v43  ;;  %v2690_v52 = vshrl.u32 %v7763_v12, 16  ;;  %v2823_v57 = vperm.slane %v2694_v15, %v6696_v55 }
 0x3bc   : > { %v2935_v7 = vpack.c.b16 %v2934_v27, %v2934_v27  ;;  %v2810_v48 = vrot.slane %v2805_v53, 4  ;;  %v2801_v0 = vsel %vm1127_vm1, %v2797_v28, %v2800_v31  ;;  %v2689_v13 = vshrl.u32 %v7769_v60, 16 }
 0x3bd   : > { %v2940_v42 = vpack.c.b16 %v2939_v17, %v2939_v17  ;;  %v7778_v37 = vperm.slane %v2775_v16, %v6721_v14  ;;  %v2849_v62 = vperm.slane %v2697_v32, %v6696_v55  ;;  %v2688_v3 = vpack.i.b16 %v7763_v12, %v7769_v60 }
 0x3be   : > { %v2785_v22 = vsel %vm1127_vm1, 0, %v2784_v25  ;;  %v2945_v30 = vpack.c.b16 %v2944_v50, %v2944_v50  ;;  %v2809_v28 = vperm.slane %v2801_v0, %v6721_v14  ;;  %v2691_v10 = vpack.i.b16 %v2690_v52, %v2689_v13 }
 0x3bf   : > { %10122 = vst [vmem:[#allocation93_spill] sm:$0xff] %v7778_v37  ;;  %v2824_v8 = vrot.slane %v2823_v57, 4  ;;  %v2949_v46 = vunpack.c.l.b16 %v2805_v53  ;;  %v2811_v11 = vsel %vm1127_vm1, 0, %v2810_v48  ;;  %v2954_v4 = vunpack.c.l.b16 %v2785_v22 }
 0x3c0   : > { %2936 = vrot.lane.b32.xlu1 %v2935_v7, %s6402_s23  ;;  %v2786_v18 = vrot.slane %v7778_v37, 4  ;;  %v2850_v15 = vrot.slane %v2849_v62, 4  ;;  %v2818_v27 = vperm.slane %v2688_v3, %v6696_v55  ;;  %v2959_v43 = vunpack.c.l.b16 %v2811_v11 }
 0x3c1   : > { %2941 = vrot.lane.b32.xlu0 %v2940_v42, %s6403_s17  ;;  %v2812_v17 = vrot.slane %v2809_v28, 4  ;;  %v2844_v32 = vperm.slane %v2691_v10, %v6696_v55  ;;  %v2950_v31 = vpack.c.b16 %v2949_v46, %v2949_v46  ;;  %v2955_v16 = vpack.c.b16 %v2954_v4, %v2954_v4 }
 0x3c2   : > { %v2825_v25 = vsel %vm1127_vm1, %v2824_v8, %v2818_v27  ;;  %v2787_v53 = vsel %vm1127_vm1, 0, %v2786_v18  ;;  %v2708_v52 = vshrl.u32 %v7059_v23, 16  ;;  %v2960_v48 = vpack.c.b16 %v2959_v43, %v2959_v43 }
 0x3c3   : > { %2946 = vrot.lane.b32.xlu2 %v2945_v30, %s6404_s21  ;;  %v2851_v50 = vsel %vm1127_vm1, %v2850_v15, %v2844_v32  ;;  %v7798_v7 = vperm.slane %v2825_v25, %v6721_v14  ;;  %v2813_v0 = vsel %vm1127_vm1, 0, %v2812_v17  ;;  %v2707_v13 = vshrl.u32 %v7027_v19, 16 }
 0x3c4   : > { %v2706_v42 = vpack.i.b16 %v7059_v23, %v7027_v19  ;;  %v2964_v3 = vunpack.c.l.b16 %v2809_v28  ;;  %v2969_v22 = vunpack.c.l.b16 %v2787_v53  ;;  %v2857_v30 = vperm.slane %v2851_v50, %v6721_v14 }
 0x3c5   : > { %10123 = vst [vmem:[#allocation94_spill] sm:$0xff] %v7798_v7  ;;  %v2826_v10 = vrot.slane %v2818_v27, 4  ;;  %v2709_v8 = vpack.i.b16 %v2708_v52, %v2707_v13  ;;  %v2974_v46 = vunpack.c.l.b16 %v2813_v0  ;;  %v2836_v11 = vrot.slane %v7798_v7, 4 }
 0x3c6   : > { %v2852_v4 = vrot.slane %v2844_v32, 4  ;;  %v2702_v15 = vshrl.u32 %v7018_v61, 16  ;;  %v2875_v43 = vperm.slane %v2706_v42, %v6696_v55  ;;  %v2965_v17 = vpack.c.b16 %v2964_v3, %v2964_v3 }
 0x3c7   : > { %v2827_v18 = vsel %vm1127_vm1, %v2823_v57, %v2826_v10  ;;  %v2970_v25 = vpack.c.b16 %v2969_v22, %v2969_v22  ;;  %v2862_v28 = vrot.slane %v2857_v30, 4  ;;  %v2901_v27 = vperm.slane %v2709_v8, %v6696_v55 }
 0x3c8   : > { %2951 = vrot.lane.b32.xlu1 %v2950_v31, %s6402_s23  ;;  %v2853_v31 = vsel %vm1127_vm1, %v2849_v62, %v2852_v4  ;;  %v2700_v53 = vpack.i.b16 %v7018_v61, %v7009_v5  ;;  %v2837_v57 = vsel %vm1127_vm1, 0, %v2836_v11  ;;  %v7819_v32 = vperm.slane %v2827_v18, %v6721_v14 }
 0x3c9   : > { %2956 = vrot.lane.b32.xlu0 %v2955_v16, %s6403_s17  ;;  %v2701_v16 = vshrl.u32 %v7009_v5, 16  ;;  %v2975_v50 = vpack.c.b16 %v2974_v46, %v2974_v46  ;;  %v2979_v62 = vunpack.c.l.b16 %v2857_v30  ;;  %v2863_v0 = vsel %vm1127_vm1, 0, %v2862_v28 }
 0x3ca   : > { %10124 = vst [vmem:[#allocation95_spill] sm:$0xff] %v7819_v32  ;;  %v2861_v13 = vperm.slane %v2853_v31, %v6721_v14  ;;  %v2984_v3 = vunpack.c.l.b16 %v2837_v57  ;;  %v2902_v22 = vrot.slane %v2901_v27, 4  ;;  %v2870_v10 = vperm.slane %v2700_v53, %v6696_v55 }
 0x3cb   : > { %2961 = vrot.lane.b32.xlu2 %v2960_v48, %s6404_s21  ;;  %v2703_v52 = vpack.i.b16 %v2702_v15, %v2701_v16  ;;  %v2876_v48 = vrot.slane %v2875_v43, 4  ;;  %v7824_v42 = vpop.permute.xlu2 %2285  ;;  %v2838_v8 = vrot.slane %v7819_v32, 4  ;;  %v2989_v11 = vunpack.c.l.b16 %v2863_v0 }
 0x3cc   : > { %10125 = vst [vmem:[#allocation96_spill] sm:$0xff] %v7824_v42  ;;  %v2980_v30 = vpack.c.b16 %v2979_v62, %v2979_v62  ;;  %v2864_v18 = vrot.slane %v2861_v13, 4  ;;  %v2985_v15 = vpack.c.b16 %v2984_v3, %v2984_v3  ;;  %v2994_v16 = vunpack.c.l.b16 %v2861_v13 }
 0x3cd   : > { %v2896_v46 = vperm.slane %v2703_v52, %v6696_v55  ;;  %v2877_v4 = vsel %vm1127_vm1, %v2876_v48, %v2870_v10  ;;  %v2990_v31 = vpack.c.b16 %v2989_v11, %v2989_v11  ;;  %v2878_v52 = vrot.slane %v2870_v10, 4 }
 0x3ce   : > { %v7835_v28 = vperm.slane %v2877_v4, %v6721_v14  ;;  %v2865_v53 = vsel %vm1127_vm1, 0, %v2864_v18 }
 0x3cf   : > { %v3004_v0 = vunpack.c.l.b16 %v2865_v53  ;;  %v2904_v3 = vrot.slane %v2896_v46, 4 }
 0x3d0   : > { %2966 = vrot.lane.b32.xlu1 %v2965_v17, %s6402_s23  ;;  %v2903_v17 = vsel %vm1127_vm1, %v2902_v22, %v2896_v46  ;;  %10126 = vst [vmem:[#allocation97_spill] sm:$0xff] %v7835_v28  ;;  %v2888_v48 = vrot.slane %v7835_v28, 4  ;;  %v2879_v22 = vsel %vm1127_vm1, %v2875_v43, %v2878_v52 }
 0x3d1   : > { %2971 = vrot.lane.b32.xlu0 %v2970_v25, %s6403_s17  ;;  %v2839_v25 = vsel %vm1127_vm1, 0, %v2838_v8  ;;  %v2909_v57 = vperm.slane %v2903_v17, %v6721_v14  ;;  %v2995_v8 = vpack.c.b16 %v2994_v16, %v2994_v16  ;;  %v2905_v13 = vsel %vm1127_vm1, %v2901_v27, %v2904_v3 }
 0x3d2   : > { %v7849_v18 = vperm.slane %v2879_v22, %v6721_v14  ;;  %v3005_v10 = vpack.c.b16 %v3004_v0, %v3004_v0  ;;  %v2913_v43 = vperm.slane %v2905_v13, %v6721_v14 }
 0x3d3   : > { %2976 = vrot.lane.b32.xlu2 %v2975_v50, %s6404_s21  ;;  %v2999_v50 = vunpack.c.l.b16 %v2839_v25  ;;  %v7842_v62 = vpop.permute.xlu2 %2300  ;;  %v2914_v4 = vrot.slane %v2909_v57, 4 }
 0x3d4   : > { %10127 = vst [vmem:[#allocation98_spill] sm:$0xff] %v7842_v62  ;;  %v2890_v27 = vrot.slane %v7849_v18, 4  ;;  %v2916_v53 = vrot.slane %v2913_v43, 4  ;;  %v3024_v3 = vunpack.c.l.b16 %v2913_v43 }
 0x3d5   : > { %v3000_v11 = vpack.c.b16 %v2999_v50, %v2999_v50  ;;  %10128 = vst [vmem:[#allocation99_spill] sm:$0xff] %v7849_v18  ;;  %v2915_v46 = vsel %vm1127_vm1, 0, %v2914_v4 }
 0x3d6   : > { %v2917_v22 = vsel %vm1127_vm1, 0, %v2916_v53  ;;  %v3025_v13 = vpack.c.b16 %v3024_v3, %v3024_v3 }
 0x3d7   : > { %v3034_v4 = vunpack.c.l.b16 %v2917_v22 }
 0x3d8   : > { %2981 = vrot.lane.b32.xlu1 %v2980_v30, %s6402_s23  ;;  %v2889_v30 = vsel %vm1127_vm1, 0, %v2888_v48 }
 0x3d9   : > { %2986 = vrot.lane.b32.xlu0 %v2985_v15, %s6403_s17  ;;  %v3009_v15 = vunpack.c.l.b16 %v2909_v57  ;;  %v3014_v17 = vunpack.c.l.b16 %v2889_v30  ;;  %v2891_v57 = vsel %vm1127_vm1, 0, %v2890_v27 }
 0x3db   : > { %2991 = vrot.lane.b32.xlu2 %v2990_v31, %s6404_s21  ;;  %v3019_v31 = vunpack.c.l.b16 %v2915_v46  ;;  %v3010_v16 = vpack.c.b16 %v3009_v15, %v3009_v15  ;;  %v3015_v50 = vpack.c.b16 %v3014_v17, %v3014_v17 }
 0x3dd   : > { %v3020_v0 = vpack.c.b16 %v3019_v31, %v3019_v31 }
 0x3e0   : > { %2996 = vrot.lane.b32.xlu1 %v2995_v8, %s6402_s23  ;;  %v7858_v52 = vpop.permute.xlu1 %2275  ;;  %v3029_v8 = vunpack.c.l.b16 %v2891_v57 }
 0x3e1   : > { %3001 = vrot.lane.b32.xlu0 %v3000_v11, %s6403_s17  ;;  %10130 = vst [vmem:[#allocation101_spill] sm:$0xff] %v7858_v52  ;;  %v7862_v48 = vpop.permute.xlu0 %2280 }
 0x3e2   : > { %10131 = vst [vmem:[#allocation102_spill] sm:$0xff] %v7862_v48  ;;  %v3030_v30 = vpack.c.b16 %v3029_v8, %v3029_v8 }
 0x3e3   : > { %3006 = vrot.lane.b32.xlu2 %v3005_v10, %s6404_s21  ;;  %v3035_v10 = vpack.c.b16 %v3034_v4, %v3034_v4 }
 0x3e4   : > { %v7856_v25 = vpop.permute.xlu2 %2315 }
 0x3e5   : > { %10129 = vst [vmem:[#allocation100_spill] sm:$0xff] %v7856_v25 }
 0x3e8   : > { %3011 = vrot.lane.b32.xlu1 %v3010_v16, %s6402_s23  ;;  %v7871_v15 = vpop.permute.xlu1 %2290 }
 0x3e9   : > { %3016 = vrot.lane.b32.xlu0 %v3015_v50, %s6403_s17  ;;  %10133 = vst [vmem:[#allocation104_spill] sm:$0xff] %v7871_v15  ;;  %v7873_v46 = vpop.permute.xlu0 %2295 }
 0x3ea   : > { %10134 = vst [vmem:[#allocation105_spill] sm:$0xff] %v7873_v46 }
 0x3eb   : > { %3021 = vrot.lane.b32.xlu2 %v3020_v0, %s6404_s21 }
 0x3ec   : > { %v7867_v11 = vpop.permute.xlu2 %2330 }
 0x3ed   : > { %10132 = vst [vmem:[#allocation103_spill] sm:$0xff] %v7867_v11 }
 0x3f0   : > { %3026 = vrot.lane.b32.xlu1 %v3025_v13, %s6402_s23 }
 0x3f1   : > { %3031 = vrot.lane.b32.xlu0 %v3030_v30, %s6403_s17 }
 0x3f3   : > { %3036 = vrot.lane.b32.xlu2 %v3035_v10, %s6404_s21 }
 0x3f4   : > { %v7876_v43 = vpop.permute.xlu2 %2345 }
 0x3f5   : > { %10135 = vst [vmem:[#allocation106_spill] sm:$0xff] %v7876_v43 }
 0x3f8   : > { %3094 = vrot.lane.b32.xlu1 %v7597_v39, %s6399_s18 }
 0x3f9   : > { %3096 = vrot.lane.b32.xlu0 %v7704_v38, %s6399_s18  ;;  %v7882_v17 = vpop.permute.xlu1 %2305 }
 0x3fa   : > { %10136 = vst [vmem:[#allocation107_spill] sm:$0xff] %v7882_v17  ;;  %v7886_v27 = vpop.permute.xlu0 %2310 }
 0x3fb   : > { %3098 = vrot.lane.b32.xlu2 %v7769_v60, %s6399_s18  ;;  %10137 = vst [vmem:[#allocation108_spill] sm:$0xff] %v7886_v27 }
 0x3fc   : > { %v7892_v31 = vpop.permute.xlu2 %2360 }
 0x3fd   : > { %10138 = vst [vmem:[#allocation109_spill] sm:$0xff] %v7892_v31 }
 0x400   : > { %3100 = vrot.lane.b32.xlu1 %v7009_v5, %s6399_s18 }
 0x401   : > { %3102 = vrot.lane.b32.xlu0 %v7603_v54, %s6399_s18  ;;  %v7894_v16 = vpop.permute.xlu1 %2320 }
 0x402   : > { %10139 = vst [vmem:[#allocation110_spill] sm:$0xff] %v7894_v16  ;;  %v7898_v53 = vpop.permute.xlu0 %2325 }
 0x403   : > { %3104 = vrot.lane.b32.xlu2 %v7691_v21, %s6399_s18  ;;  %10140 = vst [vmem:[#allocation111_spill] sm:$0xff] %v7898_v53 }
 0x404   : > { %v7910_v0 = vpop.permute.xlu2 %2375 }
 0x405   : > { %10143 = vst [vmem:[#allocation114_spill] sm:$0xff] %v7910_v0 }
 0x408   : > { %3106 = vrot.lane.b32.xlu1 %v7763_v12, %s6399_s18 }
 0x409   : > { %3108 = vrot.lane.b32.xlu0 %v7018_v61, %s6399_s18  ;;  %v7904_v50 = vpop.permute.xlu1 %2335 }
 0x40a   : > { %10141 = vst [vmem:[#allocation112_spill] sm:$0xff] %v7904_v50  ;;  %v7908_v57 = vpop.permute.xlu0 %2340 }
 0x40b   : > { %3110 = vrot.lane.b32.xlu2 %v7580_v9, %s6399_s18  ;;  %10142 = vst [vmem:[#allocation113_spill] sm:$0xff] %v7908_v57 }
 0x40d   : > { %v7922_v8 = vpop.permute.xlu2 %2390 }
 0x40e   : > { %10146 = vst [vmem:[#allocation117_spill] sm:$0xff] %v7922_v8 }
 0x410   : > { %3112 = vrot.lane.b32.xlu1 %v7672_v34, %s6399_s18 }
 0x411   : > { %3114 = vrot.lane.b32.xlu0 %v7745_v26, %s6399_s18  ;;  %v7916_v3 = vpop.permute.xlu1 %2350 }
 0x412   : > { %10144 = vst [vmem:[#allocation115_spill] sm:$0xff] %v7916_v3  ;;  %v7920_v22 = vpop.permute.xlu0 %2355 }
 0x413   : > { %3116 = vrot.lane.b32.xlu2 %v7027_v19, %s6399_s18  ;;  %10145 = vst [vmem:[#allocation116_spill] sm:$0xff] %v7920_v22 }
 0x415   : > { %v7934_v30 = vpop.permute.xlu2 %2931 }
 0x416   : > { %10149 = vst [vmem:[#allocation120_spill] sm:$0xff] %v7934_v30 }
 0x418   : > { %3118 = vrot.lane.b32.xlu1 %v7571_v6, %s6399_s18 }
 0x419   : > { %3120 = vrot.lane.b32.xlu0 %v7659_v49, %s6399_s18  ;;  %v7928_v4 = vpop.permute.xlu1 %2365 }
 0x41a   : > { %10147 = vst [vmem:[#allocation118_spill] sm:$0xff] %v7928_v4  ;;  %v7932_v13 = vpop.permute.xlu0 %2370 }
 0x41b   : > { %3122 = vrot.lane.b32.xlu2 %v7738_v44, %s6399_s18  ;;  %10148 = vst [vmem:[#allocation119_spill] sm:$0xff] %v7932_v13 }
 0x41d   : > { %v7942_v32 = vpop.permute.xlu2 %2946 }
 0x41e   : > { %10152 = vst [vmem:[#allocation123_spill] sm:$0xff] %v7942_v32 }
 0x420   : > { %3124 = vrot.lane.b32.xlu1 %v7059_v23, %s6399_s18 }
 0x422   : > { %v7938_v10 = vpop.permute.xlu1 %2380 }
 0x423   : > { %10150 = vst [vmem:[#allocation121_spill] sm:$0xff] %v7938_v10  ;;  %v7940_v18 = vpop.permute.xlu0 %2385 }
 0x424   : > { %10151 = vst [vmem:[#allocation122_spill] sm:$0xff] %v7940_v18 }
 0x425   : > { %v7952_v22 = vpop.permute.xlu2 %2961 }
 0x426   : > { %10157 = vst [vmem:[#allocation128_spill] sm:$0xff] %v7952_v22 }
 0x42a   : > { %v7944_v8 = vpop.permute.xlu1 %2921 }
 0x42b   : > { %10153 = vst [vmem:[#allocation124_spill] sm:$0xff] %v7944_v8  ;;  %v7946_v31 = vpop.permute.xlu0 %2926 }
 0x42c   : > { %10154 = vst [vmem:[#allocation125_spill] sm:$0xff] %v7946_v31 }
 0x42d   : > { %v7958_v62 = vpop.permute.xlu2 %2976 }
 0x42e   : > { %10159 = vst [vmem:[#allocation130_spill] sm:$0xff] %v7958_v62 }
 0x432   : > { %v7948_v43 = vpop.permute.xlu1 %2936 }
 0x433   : > { %10155 = vst [vmem:[#allocation126_spill] sm:$0xff] %v7948_v43  ;;  %v7950_v7 = vpop.permute.xlu0 %2941 }
 0x434   : > { %10156 = vst [vmem:[#allocation127_spill] sm:$0xff] %v7950_v7 }
 0x435   : > { %v7964_v10 = vpop.permute.xlu2 %2991 }
 0x436   : > { %10162 = vst [vmem:[#allocation133_spill] sm:$0xff] %v7964_v10 }
 0x43a   : > { %v7954_v57 = vpop.permute.xlu1 %2951 }
 0x43b   : > { %v7956_v11 = vpop.permute.xlu0 %2956 }
 0x43c   : > { %10158 = vst [vmem:[#allocation129_spill] sm:$0xff] %v7956_v11 }
 0x43d   : > { %v7970_v53 = vpop.permute.xlu2 %3006 }
 0x43e   : > { %10165 = vst [vmem:[#allocation136_spill] sm:$0xff] %v7970_v53 }
 0x442   : > { %v7960_v42 = vpop.permute.xlu1 %2966 }
 0x443   : > { %10160 = vst [vmem:[#allocation131_spill] sm:$0xff] %v7960_v42  ;;  %v7962_v18 = vpop.permute.xlu0 %2971 }
 0x444   : > { %10161 = vst [vmem:[#allocation132_spill] sm:$0xff] %v7962_v18 }
 0x445   : > { %v7980_v52 = vpop.permute.xlu2 %3021 }
 0x446   : > { %10170 = vst [vmem:[#allocation141_spill] sm:$0xff] %v7980_v52 }
 0x44a   : > { %v7966_v3 = vpop.permute.xlu1 %2981 }
 0x44b   : > { %10163 = vst [vmem:[#allocation134_spill] sm:$0xff] %v7966_v3  ;;  %v7968_v50 = vpop.permute.xlu0 %2986 }
 0x44c   : > { %10164 = vst [vmem:[#allocation135_spill] sm:$0xff] %v7968_v50 }
 0x44d   : > { %v7986_v10 = vpop.permute.xlu2 %3036 }
 0x44e   : > { %10173 = vst [vmem:[#allocation144_spill] sm:$0xff] %v7986_v10 }
 0x452   : > { %v7972_v46 = vpop.permute.xlu1 %2996 }
 0x453   : > { %10166 = vst [vmem:[#allocation137_spill] sm:$0xff] %v7972_v46  ;;  %v7974_v48 = vpop.permute.xlu0 %3001 }
 0x454   : > { %10167 = vst [vmem:[#allocation138_spill] sm:$0xff] %v7974_v48 }
 0x455   : > { %v7988_v13 = vpop.permute.xlu2 %3098 }
 0x45a   : > { %v7976_v16 = vpop.permute.xlu1 %3011 }
 0x45b   : > { %10168 = vst [vmem:[#allocation139_spill] sm:$0xff] %v7976_v16  ;;  %v7978_v15 = vpop.permute.xlu0 %3016 }
 0x45c   : > { %10169 = vst [vmem:[#allocation140_spill] sm:$0xff] %v7978_v15 }
 0x45d   : > { %v3105_v48 = vpop.permute.xlu2 %3104 }
 0x462   : > { %v7982_v0 = vpop.permute.xlu1 %3026 }
 0x463   : > { %10171 = vst [vmem:[#allocation142_spill] sm:$0xff] %v7982_v0  ;;  %v7984_v28 = vpop.permute.xlu0 %3031 }
 0x464   : > { %10172 = vst [vmem:[#allocation143_spill] sm:$0xff] %v7984_v28 }
 0x465   : > { %v3111_v0 = vpop.permute.xlu2 %3110 }
 0x466   : > { %v3135_v7 = vshrl.u32 %v3111_v0, 16 }
 0x46a   : > { %v3095_v3 = vpop.permute.xlu1 %3094 }
 0x46b   : > { %v3097_v50 = vpop.permute.xlu0 %3096  ;;  %v3129_v28 = vshrl.u32 %v3095_v3, 16 }
 0x46c   : > { %v3141_v22 = vshrl.u32 %v3097_v50, 16 }
 0x46d   : > { %v8001_v11 = vpop.permute.xlu2 %3116 }
 0x472   : > { %v7990_v53 = vpop.permute.xlu1 %3100 }
 0x473   : > { %v3103_v46 = vpop.permute.xlu0 %3102 }
 0x474   : > { %v3130_v15 = vshrl.u32 %v3103_v46, 16  ;;  %v3128_v27 = vpack.i.b16 %v3103_v46, %v3095_v3 }
 0x476   : > { %v3131_v10 = vpack.i.b16 %v3130_v15, %v3129_v28  ;;  %v3178_v17 = vperm.slane %v3128_v27, %v6696_v55 }
 0x478   : > { %v3204_v32 = vperm.slane %v3131_v10, %v6696_v55  ;;  %v3186_v31 = vrot.slane %v3178_v17, 4  ;;  %v3140_v10 = vpack.i.b16 %v3105_v48, %v3097_v50 }
 0x47a   : > { %v7992_v4 = vpop.permute.xlu1 %3106  ;;  %v3212_v28 = vrot.slane %v3204_v32, 4  ;;  %v3230_v50 = vperm.slane %v3140_v10, %v6696_v55 }
 0x47b   : > { %v7994_v16 = vpop.permute.xlu0 %3108 }
 0x482   : > { %v3113_v52 = vpop.permute.xlu1 %3112 }
 0x483   : > { %v7996_v25 = vpop.permute.xlu0 %3114  ;;  %v3147_v37 = vshrl.u32 %v3113_v52, 16 }
 0x48a   : > { %v3119_v62 = vpop.permute.xlu1 %3118 }
 0x48b   : > { %v3134_v18 = vpack.i.b16 %v3119_v62, %v3111_v0  ;;  %v3136_v24 = vshrl.u32 %v3119_v62, 16  ;;  %v3121_v43 = vpop.permute.xlu0 %3120  ;;  %v3142_v0 = vshrl.u32 %v3105_v48, 16 }
 0x48c   : > { %v3146_v42 = vpack.i.b16 %v3121_v43, %v3113_v52  ;;  %v3148_v30 = vshrl.u32 %v3121_v43, 16 }
 0x48d   : > { %v3137_v35 = vpack.i.b16 %v3136_v24, %v3135_v7  ;;  %v3183_v8 = vperm.slane %v3134_v18, %v6696_v55 }
 0x48e   : > { %v3149_v15 = vpack.i.b16 %v3148_v30, %v3147_v37  ;;  %v3235_v62 = vperm.slane %v3146_v42, %v6696_v55 }
 0x48f   : > { %v3184_v46 = vrot.slane %v3183_v8, 4  ;;  %v3187_v27 = vsel %vm1127_vm1, %v3183_v8, %v3186_v31  ;;  %v3209_v3 = vperm.slane %v3137_v35, %v6696_v55  ;;  %v3143_v31 = vpack.i.b16 %v3142_v0, %v3141_v22  ;;  %v3123_v0 = vpop.permute.xlu2 %3122 }
 0x490   : > { %v3261_v24 = vperm.slane %v3149_v15, %v6696_v55  ;;  %v8010_v18 = vperm.slane %v3187_v27, %v6721_v14  ;;  %v3236_v8 = vrot.slane %v3235_v62, 4 }
 0x491   : > { %v3185_v52 = vsel %vm1127_vm1, %v3184_v46, %v3178_v17  ;;  %v3210_v43 = vrot.slane %v3209_v3, 4  ;;  %v3213_v7 = vsel %vm1127_vm1, %v3209_v3, %v3212_v28  ;;  %v3256_v22 = vperm.slane %v3143_v31, %v6696_v55 }
 0x492   : > { %10174 = vst [vmem:[#allocation145_spill] sm:$0xff] %v8010_v18  ;;  %v8013_v37 = vperm.slane %v3185_v52, %v6721_v14  ;;  %v3221_v17 = vperm.slane %v3213_v7, %v6721_v14  ;;  %v3262_v30 = vrot.slane %v3261_v24, 4  ;;  %v3198_v27 = vrot.slane %v8010_v18, 4 }
 0x493   : > { %v3211_v35 = vsel %vm1127_vm1, %v3210_v43, %v3204_v32  ;;  %v3237_v3 = vsel %vm1127_vm1, %v3236_v8, %v3230_v50  ;;  %v3159_v7 = vshrl.u32 %v7996_v25, 16  ;;  %v3160_v8 = vshrl.u32 %v3123_v0, 16 }
 0x494   : > { %10175 = vst [vmem:[#allocation146_spill] sm:$0xff] %v8013_v37  ;;  %v3217_v42 = vperm.slane %v3211_v35, %v6721_v14  ;;  %v3196_v48 = vrot.slane %v8013_v37, 4  ;;  %v3224_v35 = vrot.slane %v3221_v17, 4  ;;  %v3263_v1 = vsel %vm1127_vm1, %v3262_v30, %v3256_v22 }
 0x495   : > { %v8030_v31 = vperm.slane %v3237_v3, %v6721_v14  ;;  %v3161_v30 = vpack.i.b16 %v3160_v8, %v3159_v7  ;;  %v3154_v18 = vshrl.u32 %v7992_v4, 16 }
 0x496   : > { %v3383_v28 = vunpack.c.l.b16 %v3217_v42  ;;  %v3197_v15 = vsel %vm1127_vm1, 0, %v3196_v48  ;;  %v3222_v46 = vrot.slane %v3217_v42, 4  ;;  %v3199_v42 = vsel %vm1127_vm1, 0, %v3198_v27 }
 0x497   : > { %v3388_v32 = vunpack.c.l.b16 %v3197_v15  ;;  %v3158_v48 = vpack.i.b16 %v3123_v0, %v7996_v25  ;;  %v3398_v15 = vunpack.c.l.b16 %v3221_v17  ;;  %v3264_v27 = vrot.slane %v3256_v22, 4 }
 0x498   : > { %v3384_v52 = vpack.c.b16 %v3383_v28, %v3383_v28  ;;  %v3223_v43 = vsel %vm1127_vm1, 0, %v3222_v46  ;;  %v3225_v46 = vsel %vm1127_vm1, 0, %v3224_v35  ;;  %v3248_v3 = vrot.slane %v8030_v31, 4 }
 0x499   : > { %v3389_v10 = vpack.c.b16 %v3388_v32, %v3388_v32  ;;  %v3393_v37 = vunpack.c.l.b16 %v3223_v43  ;;  %v3269_v32 = vperm.slane %v3263_v1, %v6721_v14  ;;  %v3238_v43 = vrot.slane %v3230_v50, 4 }
 0x49a   : > { %3385 = vrot.lane.b32.xlu0 %v3384_v52, %s6402_s23  ;;  %v3403_v52 = vunpack.c.l.b16 %v3199_v42  ;;  %v3287_v25 = vperm.slane %v3158_v48, %v6696_v55  ;;  %v3153_v17 = vshrl.u32 %v7988_v13, 16  ;;  %v3399_v35 = vpack.c.b16 %v3398_v15, %v3398_v15 }
 0x49b   : > { %3390 = vrot.lane.b32.xlu2 %v3389_v10, %s6403_s17  ;;  %v3394_v28 = vpack.c.b16 %v3393_v37, %v3393_v37  ;;  %v3239_v0 = vsel %vm1127_vm1, %v3235_v62, %v3238_v43  ;;  %v3408_v37 = vunpack.c.l.b16 %v3225_v46  ;;  %v3274_v10 = vrot.slane %v3269_v32, 4 }
 0x49c   : > { %v3152_v1 = vpack.i.b16 %v7992_v4, %v7988_v13  ;;  %v3313_v50 = vperm.slane %v3161_v30, %v6696_v55  ;;  %v3404_v7 = vpack.c.b16 %v3403_v52, %v3403_v52  ;;  %v3265_v22 = vsel %vm1127_vm1, %v3261_v24, %v3264_v27 }
 0x49d   : > { %3395 = vrot.lane.b32.xlu1 %v3394_v28, %s6404_s21  ;;  %v8047_v42 = vperm.slane %v3239_v0, %v6721_v14  ;;  %v3249_v62 = vsel %vm1127_vm1, 0, %v3248_v3  ;;  %v3155_v8 = vpack.i.b16 %v3154_v18, %v3153_v17  ;;  %v3288_v48 = vrot.slane %v3287_v25, 4 }
 0x49e   : > { %v3409_v28 = vpack.c.b16 %v3408_v37, %v3408_v37  ;;  %v3413_v15 = vunpack.c.l.b16 %v3269_v32  ;;  %v3275_v4 = vsel %vm1127_vm1, 0, %v3274_v10  ;;  %v3273_v13 = vperm.slane %v3265_v22, %v6721_v14 }
 0x49f   : > { %v3282_v46 = vperm.slane %v3152_v1, %v6696_v55  ;;  %v3314_v24 = vrot.slane %v3313_v50, 4  ;;  %v3418_v43 = vunpack.c.l.b16 %v3249_v62  ;;  %v3250_v30 = vrot.slane %v8047_v42, 4 }
 0x4a0   : > { %v3308_v52 = vperm.slane %v3155_v8, %v6696_v55  ;;  %v3423_v27 = vunpack.c.l.b16 %v3275_v4  ;;  %v3414_v3 = vpack.c.b16 %v3413_v15, %v3413_v15  ;;  %v3276_v0 = vrot.slane %v3273_v13, 4 }
 0x4a1   : > { %v3289_v18 = vsel %vm1127_vm1, %v3288_v48, %v3282_v46  ;;  %v3419_v32 = vpack.c.b16 %v3418_v43, %v3418_v43  ;;  %v3251_v17 = vsel %vm1127_vm1, 0, %v3250_v30  ;;  %v3428_v1 = vunpack.c.l.b16 %v3273_v13 }
 0x4a2   : > { %3400 = vrot.lane.b32.xlu0 %v3399_v35, %s6402_s23  ;;  %v3315_v37 = vsel %vm1127_vm1, %v3314_v24, %v3308_v52  ;;  %v8063_v35 = vperm.slane %v3289_v18, %v6721_v14  ;;  %v3424_v10 = vpack.c.b16 %v3423_v27, %v3423_v27  ;;  %v3290_v62 = vrot.slane %v3282_v46, 4 }
 0x4a3   : > { %3405 = vrot.lane.b32.xlu2 %v3404_v7, %s6403_s17  ;;  %v3277_v7 = vsel %vm1127_vm1, 0, %v3276_v0  ;;  %v3321_v22 = vperm.slane %v3315_v37, %v6721_v14  ;;  %v3433_v8 = vunpack.c.l.b16 %v3251_v17  ;;  %v3429_v4 = vpack.c.b16 %v3428_v1, %v3428_v1 }
 0x4a4   : > { %v3300_v48 = vrot.slane %v8063_v35, 4  ;;  %v3438_v15 = vunpack.c.l.b16 %v3277_v7  ;;  %v3316_v18 = vrot.slane %v3308_v52, 4 }
 0x4a5   : > { %3410 = vrot.lane.b32.xlu1 %v3409_v28, %s6404_s21  ;;  %v3291_v28 = vsel %vm1127_vm1, %v3287_v25, %v3290_v62  ;;  %v3326_v24 = vrot.slane %v3321_v22, 4  ;;  %v3434_v43 = vpack.c.b16 %v3433_v8, %v3433_v8  ;;  %v3443_v27 = vunpack.c.l.b16 %v3321_v22 }
 0x4a6   : > { %v8072_v30 = vperm.slane %v3291_v28, %v6721_v14  ;;  %v3301_v13 = vsel %vm1127_vm1, 0, %v3300_v48  ;;  %v3439_v46 = vpack.c.b16 %v3438_v15, %v3438_v15  ;;  %v3317_v0 = vsel %vm1127_vm1, %v3313_v50, %v3316_v18  ;;  %v8098_v48 = vpop.permute.xlu1 %3124 }
 0x4a7   : > { %v3448_v25 = vunpack.c.l.b16 %v3301_v13  ;;  %v3444_v17 = vpack.c.b16 %v3443_v27, %v3443_v27 }
 0x4a8   : > { %10176 = vst [vmem:[#allocation147_spill] sm:$0xff] %v8072_v30 }
 0x4a9   : > { %v3449_v1 = vpack.c.b16 %v3448_v25, %v3448_v25 }
 0x4aa   : > { %3415 = vrot.lane.b32.xlu0 %v3414_v3, %s6402_s23  ;;  %v3327_v3 = vsel %vm1127_vm1, 0, %v3326_v24 }
 0x4ab   : > { %3420 = vrot.lane.b32.xlu2 %v3419_v32, %s6403_s17  ;;  %v3302_v32 = vrot.slane %v8072_v30, 4  ;;  %v3453_v37 = vunpack.c.l.b16 %v3327_v3 }
 0x4ad   : > { %3425 = vrot.lane.b32.xlu1 %v3424_v10, %s6404_s21  ;;  %v3325_v10 = vperm.slane %v3317_v0, %v6721_v14  ;;  %v3303_v52 = vsel %vm1127_vm1, 0, %v3302_v32  ;;  %v3454_v7 = vpack.c.b16 %v3453_v37, %v3453_v37 }
 0x4ae   : > { %v3463_v62 = vunpack.c.l.b16 %v3303_v52 }
 0x4af   : > { %v3458_v22 = vunpack.c.l.b16 %v3325_v10 }
 0x4b0   : > { %v3464_v50 = vpack.c.b16 %v3463_v62, %v3463_v62 }
 0x4b1   : > { %v3459_v8 = vpack.c.b16 %v3458_v22, %v3458_v22 }
 0x4b2   : > { %3430 = vrot.lane.b32.xlu0 %v3429_v4, %s6402_s23 }
 0x4b3   : > { %3435 = vrot.lane.b32.xlu2 %v3434_v43, %s6403_s17 }
 0x4b5   : > { %3440 = vrot.lane.b32.xlu1 %v3439_v46, %s6404_s21 }
 0x4ba   : > { %3445 = vrot.lane.b32.xlu0 %v3444_v17, %s6402_s23 }
 0x4bb   : > { %3450 = vrot.lane.b32.xlu2 %v3449_v1, %s6403_s17 }
 0x4bd   : > { %3455 = vrot.lane.b32.xlu1 %v3454_v7, %s6404_s21 }
 0x4c2   : > { %3460 = vrot.lane.b32.xlu0 %v3459_v8, %s6402_s23 }
 0x4c3   : > { %3465 = vrot.lane.b32.xlu2 %v3464_v50, %s6403_s17 }
 0x4c5   : > { %3576 = vrot.lane.b32.xlu1 %v7672_v34, %s6405_s22  ;;  %v3172_v34 = vshrl.u32 %v8098_v48, 16 }
 0x4ca   : > { %3584 = vrot.lane.b32.xlu0 %v7659_v49, %s6405_s22  ;;  %v3171_v49 = vshrl.u32 %v8001_v11, 16 }
 0x4cb   : > { %3560 = vrot.lane.b32.xlu2 %v7704_v38, %s6405_s22 }
 0x4cc   : > { %v3173_v28 = vpack.i.b16 %v3172_v34, %v3171_v49 }
 0x4cd   : > { %3568 = vrot.lane.b32.xlu1 %v7691_v21, %s6405_s22 }
 0x4d2   : > { %3574 = vrot.lane.b32.xlu0 %v7580_v9, %s6405_s22  ;;  %v3166_v9 = vshrl.u32 %v7994_v16, 16 }
 0x4d3   : > { %3582 = vrot.lane.b32.xlu2 %v7571_v6, %s6405_s22  ;;  %v3165_v6 = vshrl.u32 %v7990_v53, 16 }
 0x4d5   : > { %3558 = vrot.lane.b32.xlu1 %v7597_v39, %s6405_s22  ;;  %v8115_v39 = vperm.slane %v3173_v28, %v6696_v55  ;;  %v3167_v21 = vpack.i.b16 %v3166_v9, %v3165_v6 }
 0x4d7   : > { %v3366_v38 = vrot.slane %v8115_v39, 4 }
 0x4da   : > { %3566 = vrot.lane.b32.xlu0 %v7603_v54, %s6405_s22 }
 0x4db   : > { %3580 = vrot.lane.b32.xlu2 %v7027_v19, %s6405_s22  ;;  %v8123_v19 = vperm.slane %v3167_v21, %v6696_v55 }
 0x4dd   : > { %3588 = vrot.lane.b32.xlu1 %v7059_v23, %s6405_s22  ;;  %v3328_v23 = vrot.slane %v3325_v10, 4  ;;  %v3367_v54 = vsel %vm1127_vm1, %v3366_v38, %v8123_v19 }
 0x4de   : > { %v8131_v4 = vperm.slane %v3367_v54, %v6721_v14 }
 0x4df   : > { %v3329_v15 = vsel %vm1127_vm1, 0, %v3328_v23 }
 0x4e2   : > { %3564 = vrot.lane.b32.xlu0 %v7009_v5, %s6405_s22  ;;  %v3468_v5 = vunpack.c.l.b16 %v3329_v15 }
 0x4e3   : > { %3572 = vrot.lane.b32.xlu2 %v7018_v61, %s6405_s22  ;;  %v3473_v61 = vunpack.c.l.b16 %v8131_v4 }
 0x4e5   : > { %3578 = vrot.lane.b32.xlu1 %v7745_v26, %s6405_s22  ;;  %v3469_v26 = vpack.c.b16 %v3468_v5, %v3468_v5  ;;  %v3474_v24 = vpack.c.b16 %v3473_v61, %v3473_v61 }
 0x4ea   : > { %3586 = vrot.lane.b32.xlu0 %v7738_v44, %s6405_s22 }
 0x4eb   : > { %3562 = vrot.lane.b32.xlu2 %v7769_v60, %s6405_s22 }
 0x4ed   : > { %3570 = vrot.lane.b32.xlu1 %v7763_v12, %s6405_s22 }
 0x4f2   : > { %3470 = vrot.lane.b32.xlu0 %v3469_v26, %s6404_s21 }
 0x4f3   : > { %3475 = vrot.lane.b32.xlu2 %v3474_v24, %s6402_s23 }
 0x4f5   : > { %v8142_v43 = vpop.permute.xlu2 %3390 }
 0x4fd   : > { %v8144_v13 = vpop.permute.xlu2 %3405 }
 0x505   : > { %v8150_v60 = vpop.permute.xlu2 %3420 }
 0x50c   : > { %v8146_v44 = vpop.permute.xlu0 %3385 }
 0x50d   : > { %v8156_v27 = vpop.permute.xlu2 %3435 }
 0x50f   : > { %v8148_v18 = vpop.permute.xlu1 %3395 }
 0x514   : > { %v8152_v46 = vpop.permute.xlu0 %3400 }
 0x515   : > { %v8164_v32 = vpop.permute.xlu2 %3450 }
 0x516   : > { %10177 = vst [vmem:[#allocation148_spill] sm:$0xff] %v8164_v32 }
 0x517   : > { %v8154_v12 = vpop.permute.xlu1 %3410 }
 0x51c   : > { %v8158_v3 = vpop.permute.xlu0 %3415 }
 0x51d   : > { %v8172_v1 = vpop.permute.xlu2 %3465 }
 0x51e   : > { %10179 = vst [vmem:[#allocation150_spill] sm:$0xff] %v8172_v1 }
 0x51f   : > { %v8160_v25 = vpop.permute.xlu1 %3425 }
 0x524   : > { %v8162_v0 = vpop.permute.xlu0 %3430 }
 0x525   : > { %v3561_v22 = vpop.permute.xlu2 %3560 }
 0x526   : > { %v3605_v6 = vshrl.u32 %v3561_v22, 16 }
 0x527   : > { %v8166_v37 = vpop.permute.xlu1 %3440 }
 0x52c   : > { %v8168_v17 = vpop.permute.xlu0 %3445 }
 0x52d   : > { %v3583_v26 = vpop.permute.xlu2 %3582 }
 0x52f   : > { %v8170_v10 = vpop.permute.xlu1 %3455 }
 0x530   : > { %10178 = vst [vmem:[#allocation149_spill] sm:$0xff] %v8170_v10 }
 0x534   : > { %v8174_v52 = vpop.permute.xlu0 %3460 }
 0x535   : > { %10180 = vst [vmem:[#allocation151_spill] sm:$0xff] %v8174_v52 }
 0x537   : > { %v3577_v7 = vpop.permute.xlu1 %3576 }
 0x538   : > { %v3611_v8 = vshrl.u32 %v3577_v7, 16 }
 0x53c   : > { %v3585_v62 = vpop.permute.xlu0 %3584 }
 0x53d   : > { %v3610_v50 = vpack.i.b16 %v3585_v62, %v3577_v7  ;;  %v3612_v34 = vshrl.u32 %v3585_v62, 16 }
 0x53f   : > { %v3613_v49 = vpack.i.b16 %v3612_v34, %v3611_v8  ;;  %v3699_v28 = vperm.slane %v3610_v50, %v6696_v55  ;;  %v3569_v9 = vpop.permute.xlu1 %3568 }
 0x540   : > { %v3604_v21 = vpack.i.b16 %v3569_v9, %v3561_v22  ;;  %v3606_v38 = vshrl.u32 %v3569_v9, 16  ;;  %v3600_v9 = vshrl.u32 %v3583_v26, 16 }
 0x541   : > { %v3700_v23 = vrot.slane %v3699_v28, 4  ;;  %v3725_v54 = vperm.slane %v3613_v49, %v6696_v55 }
 0x542   : > { %v3607_v15 = vpack.i.b16 %v3606_v38, %v3605_v6  ;;  %v3694_v5 = vperm.slane %v3604_v21, %v6696_v55 }
 0x543   : > { %v3726_v61 = vrot.slane %v3725_v54, 4 }
 0x544   : > { %v3701_v24 = vsel %vm1127_vm1, %v3700_v23, %v3694_v5  ;;  %v3702_v1 = vrot.slane %v3694_v5, 4  ;;  %v3720_v7 = vperm.slane %v3607_v15, %v6696_v55  ;;  %v3575_v62 = vpop.permute.xlu0 %3574 }
 0x545   : > { %v8182_v8 = vperm.slane %v3701_v24, %v6721_v14  ;;  %v3599_v50 = vshrl.u32 %v3575_v62, 16  ;;  %v3598_v49 = vpack.i.b16 %v3583_v26, %v3575_v62 }
 0x546   : > { %v3728_v22 = vrot.slane %v3720_v7, 4  ;;  %v3727_v34 = vsel %vm1127_vm1, %v3726_v61, %v3720_v7  ;;  %v3703_v38 = vsel %vm1127_vm1, %v3699_v28, %v3702_v1 }
 0x547   : > { %v3733_v6 = vperm.slane %v3727_v34, %v6721_v14  ;;  %v3712_v21 = vrot.slane %v8182_v8, 4  ;;  %v3601_v23 = vpack.i.b16 %v3600_v9, %v3599_v50  ;;  %v3559_v24 = vpop.permute.xlu1 %3558  ;;  %v3647_v32 = vperm.slane %v3598_v49, %v6696_v55 }
 0x548   : > { %v3729_v30 = vsel %vm1127_vm1, %v3725_v54, %v3728_v22  ;;  %v8194_v1 = vperm.slane %v3703_v38, %v6721_v14  ;;  %v3593_v50 = vshrl.u32 %v3559_v24, 16 }
 0x549   : > { %v3877_v5 = vunpack.c.l.b16 %v3733_v6  ;;  %v3713_v15 = vsel %vm1127_vm1, 0, %v3712_v21  ;;  %v3738_v10 = vrot.slane %v3733_v6, 4  ;;  %v3737_v34 = vperm.slane %v3729_v30, %v6721_v14 }
 0x54a   : > { %v3882_v52 = vunpack.c.l.b16 %v3713_v15  ;;  %v3673_v28 = vperm.slane %v3601_v23, %v6696_v55  ;;  %v3648_v22 = vrot.slane %v3647_v32, 4  ;;  %v3714_v30 = vrot.slane %v8194_v1, 4 }
 0x54b   : > { %v3878_v61 = vpack.c.b16 %v3877_v5, %v3877_v5  ;;  %v3739_v62 = vsel %vm1127_vm1, 0, %v3738_v10  ;;  %v3892_v10 = vunpack.c.l.b16 %v3737_v34 }
 0x54c   : > { %v3567_v7 = vpop.permute.xlu0 %3566  ;;  %v3883_v26 = vpack.c.b16 %v3882_v52, %v3882_v52  ;;  %v3887_v6 = vunpack.c.l.b16 %v3739_v62  ;;  %v3674_v21 = vrot.slane %v3673_v28, 4 }
 0x54d   : > { %v3592_v9 = vpack.i.b16 %v3567_v7, %v3559_v24  ;;  %v3594_v54 = vshrl.u32 %v3567_v7, 16  ;;  %3879 = vrot.lane.b32.xlu1 %v3878_v61, %s6402_s23 }
 0x54e   : > { %3884 = vrot.lane.b32.xlu0 %v3883_v26, %s6403_s17  ;;  %v3888_v7 = vpack.c.b16 %v3887_v6, %v3887_v6  ;;  %v3893_v26 = vpack.c.b16 %v3892_v10, %v3892_v10  ;;  %v3740_v10 = vrot.slane %v3737_v34, 4 }
 0x54f   : > { %v3595_v49 = vpack.i.b16 %v3594_v54, %v3593_v50  ;;  %v3642_v52 = vperm.slane %v3592_v9, %v6696_v55  ;;  %v3715_v50 = vsel %vm1127_vm1, 0, %v3714_v30 }
 0x551   : > { %v3649_v38 = vsel %vm1127_vm1, %v3648_v22, %v3642_v52  ;;  %v3650_v5 = vrot.slane %v3642_v52, 4  ;;  %v3668_v23 = vperm.slane %v3595_v49, %v6696_v55 }
 0x552   : > { %v8204_v15 = vperm.slane %v3649_v38, %v6721_v14 }
 0x553   : > { %v3651_v24 = vsel %vm1127_vm1, %v3647_v32, %v3650_v5  ;;  %v3675_v61 = vsel %vm1127_vm1, %v3674_v21, %v3668_v23  ;;  %v3897_v32 = vunpack.c.l.b16 %v3715_v50  ;;  %v3676_v21 = vrot.slane %v3668_v23, 4 }
 0x554   : > { %v3681_v62 = vperm.slane %v3675_v61, %v6721_v14  ;;  %v8211_v9 = vperm.slane %v3651_v24, %v6721_v14  ;;  %v3660_v54 = vrot.slane %v8204_v15, 4 }
 0x555   : > { %3889 = vrot.lane.b32.xlu1 %v3888_v7, %s6404_s21  ;;  %v3898_v24 = vpack.c.b16 %v3897_v32, %v3897_v32  ;;  %v3677_v50 = vsel %vm1127_vm1, %v3673_v28, %v3676_v21  ;;  %v4384_v28 = vrot.slane %v6765_v56, 5 }
 0x556   : > { %3894 = vrot.lane.b32.xlu0 %v3893_v26, %s6402_s23  ;;  %v3847_v22 = vunpack.c.l.b16 %v3681_v62  ;;  %v3686_v49 = vrot.slane %v3681_v62, 4  ;;  %v3661_v30 = vsel %vm1127_vm1, 0, %v3660_v54  ;;  %v3662_v5 = vrot.slane %v8211_v9, 4 }
 0x557   : > { %v3852_v7 = vunpack.c.l.b16 %v3661_v30  ;;  %v3741_v26 = vsel %vm1127_vm1, 0, %v3740_v10  ;;  %v4371_v10 = vrot.slane %v6751_v47, 5  ;;  %v10182_v47 = vrot.slane %v6801_v36, 5 }
 0x558   : > { %v3848_v52 = vpack.c.b16 %v3847_v22, %v3847_v22  ;;  %v3687_v6 = vsel %vm1127_vm1, 0, %v3686_v49  ;;  %v3663_v62 = vsel %vm1127_vm1, 0, %v3662_v5  ;;  %v3902_v34 = vunpack.c.l.b16 %v3741_v26 }
 0x559   : > { %v3857_v38 = vunpack.c.l.b16 %v3687_v6  ;;  %v3853_v23 = vpack.c.b16 %v3852_v7, %v3852_v7  ;;  %v3867_v54 = vunpack.c.l.b16 %v3663_v62  ;;  %v3685_v22 = vperm.slane %v3677_v50, %v6721_v14 }
 0x55a   : > { %3849 = vrot.lane.b32.xlu2 %v3848_v52, %s6402_s23  ;;  %v3903_v49 = vpack.c.b16 %v3902_v34, %v3902_v34  ;;  %v4373_v30 = vrot.slane %v4371_v10, 4  ;;  %v4386_v5 = vrot.slane %v4384_v28, 4  ;;  %v4345_v26 = vrot.slane %v6617_v51, 5  ;;  %v3581_v51 = vpop.permute.xlu2 %3580 }
 0x55b   : > { %v3858_v61 = vpack.c.b16 %v3857_v38, %v3857_v38  ;;  %v3868_v32 = vpack.c.b16 %v3867_v54, %v3867_v54  ;;  %v3862_v52 = vunpack.c.l.b16 %v3685_v22  ;;  %v3688_v6 = vrot.slane %v3685_v22, 4 }
 0x55c   : > { %v8245_v56 = vsel %vm7043_vm7, %v4386_v5, %v10182_v47  ;;  %v4347_v62 = vrot.slane %v4345_v26, 4  ;;  %v10183_v50 = vrot.slane %v6626_v2, 5  ;;  %v3170_v34 = vpack.i.b16 %v8098_v48, %v8001_v11  ;;  %v3565_v11 = vpop.permute.xlu0 %3564 }
 0x55d   : > { %3899 = vrot.lane.b32.xlu1 %v3898_v24, %s6403_s17  ;;  %v3863_v21 = vpack.c.b16 %v3862_v52, %v3862_v52  ;;  %v3689_v38 = vsel %vm1127_vm1, 0, %v3688_v6  ;;  %v10181_v24 = vrot.slane %v6806_v41, 5  ;;  %v6169_v54 = vrot.slane %v6704_v59, 9 }
 0x55e   : > { %3859 = vrot.lane.b32.xlu0 %v3858_v61, %s6404_s21  ;;  %v3872_v7 = vunpack.c.l.b16 %v3689_v38  ;;  %v8257_v36 = vsel %vm7043_vm7, %v4347_v62, %v10183_v50  ;;  %v6170_v22 = vrot.slane %v6707_v63, 9  ;;  %v4358_v2 = vrot.slane %v6649_v33, 5 }
 0x55f   : > { %v8237_v61 = vsel %vm7043_vm7, %v4373_v30, %v10181_v24  ;;  %v8273_v48 = vsel %vm7043_vm7, %v6169_v54, %v4371_v10  ;;  %v6167_v30 = vrot.slane %v6610_v45, 9  ;;  %v6168_v5 = vrot.slane %v6641_v29, 9 }
 0x560   : > { %v3873_v41 = vpack.c.b16 %v3872_v7, %v3872_v7  ;;  %v8279_v59 = vsel %vm7043_vm7, %v6170_v22, %v4384_v28  ;;  %v4360_v33 = vrot.slane %v4358_v2, 4  ;;  %v3635_v24 = vshrl.u32 %v3581_v51, 16 }
 0x561   : > { %v3629_v47 = vshrl.u32 %v3565_v11, 16  ;;  %v8317_v29 = vsel %vm7043_vm7, %v6167_v30, %v4345_v26  ;;  %v3368_v26 = vrot.slane %v8123_v19, 4 }
 0x562   : > { %3854 = vrot.lane.b32.xlu2 %v3853_v23, %s6403_s17  ;;  %v3589_v23 = vpop.permute.xlu1 %3588  ;;  %v3573_v10 = vpop.permute.xlu2 %3572 }
 0x563   : > { %v3630_v50 = vshrl.u32 %v3573_v10, 16  ;;  %v3634_v45 = vpack.i.b16 %v3589_v23, %v3581_v51  ;;  %v3369_v19 = vsel %vm1127_vm1, %v8115_v39, %v3368_v26 }
 0x564   : > { %v8300_v38 = vpop.permute.xlu0 %3586 }
 0x565   : > { %3904 = vrot.lane.b32.xlu1 %v3903_v49, %s6404_s21  ;;  %v3339_v49 = vperm.slane %v3170_v34, %v6696_v55 }
 0x566   : > { %3869 = vrot.lane.b32.xlu0 %v3868_v32, %s6403_s17  ;;  %v3164_v32 = vpack.i.b16 %v7994_v16, %v7990_v53  ;;  %v10184_v53 = vrot.slane %v6763_v40, 5  ;;  %v3636_v40 = vshrl.u32 %v3589_v23, 16 }
 0x567   : > { %v3340_v63 = vrot.slane %v3339_v49, 4 }
 0x568   : > { %v3334_v52 = vperm.slane %v3164_v32, %v6696_v55  ;;  %v8290_v6 = vsel %vm7043_vm7, %v4360_v33, %v10184_v53  ;;  %v3637_v34 = vpack.i.b16 %v3636_v40, %v3635_v24  ;;  %v8321_v32 = vsel %vm7043_vm7, %v6168_v5, %v4358_v2 }
 0x569   : > { %v3628_v24 = vpack.i.b16 %v3573_v10, %v3565_v11  ;;  %v3803_v2 = vperm.slane %v3634_v45, %v6696_v55  ;;  %v3378_v5 = vrot.slane %v8131_v4, 4 }
 0x56a   : > { %3864 = vrot.lane.b32.xlu2 %v3863_v21, %s6402_s23  ;;  %v8284_v16 = vpop.permute.xlu1 %3578  ;;  %v3341_v21 = vsel %vm1127_vm1, %v3340_v63, %v3334_v52  ;;  %v8313_v22 = vpop.permute.xlu2 %3562  ;;  %v3631_v63 = vpack.i.b16 %v3630_v50, %v3629_v47  ;;  %v3342_v40 = vrot.slane %v3334_v52, 4  ;;  %v3829_v23 = vperm.slane %v3637_v34, %v6696_v55 }
 0x56b   : > { %v8296_v28 = vperm.slane %v3341_v21, %v6721_v14  ;;  %v3623_v54 = vshrl.u32 %v8284_v16, 16  ;;  %v3617_v20 = vshrl.u32 %v8313_v22, 16  ;;  %v3798_v10 = vperm.slane %v3628_v24, %v6696_v55 }
 0x56c   : > { %v3343_v51 = vsel %vm1127_vm1, %v3339_v49, %v3342_v40  ;;  %v3830_v47 = vrot.slane %v3829_v23, 4  ;;  %v3379_v50 = vsel %vm1127_vm1, 0, %v3378_v5  ;;  %v3377_v34 = vperm.slane %v3369_v19, %v6721_v14 }
 0x56d   : > { %4845 = vrot.lane.b32.xlu1 %v8237_v61, %s6399_s18  ;;  %v3352_v7 = vrot.slane %v8296_v28, 4  ;;  %v8345_v49 = vperm.slane %v3343_v51, %v6721_v14 }
 0x56e   : > { %4853 = vrot.lane.b32.xlu0 %v8245_v56, %s6399_s18 }
 0x56f   : > { %v3353_v21 = vsel %vm1127_vm1, 0, %v3352_v7  ;;  %v3824_v7 = vperm.slane %v3631_v63, %v6696_v55 }
 0x570   : > { %v3478_v30 = vunpack.c.l.b16 %v3353_v21  ;;  %v3488_v21 = vunpack.c.l.b16 %v3377_v34 }
 0x571   : > { %v3832_v5 = vrot.slane %v3824_v7, 4 }
 0x572   : > { %3874 = vrot.lane.b32.xlu2 %v3873_v41, %s6404_s21  ;;  %v3624_v41 = vshrl.u32 %v8300_v38, 16  ;;  %v8308_v62 = vpop.permute.xlu1 %3570  ;;  %v3479_v4 = vpack.c.b16 %v3478_v30, %v3478_v30 }
 0x573   : > { %v3618_v53 = vshrl.u32 %v8308_v62, 16 }
 0x574   : > { %v3625_v33 = vpack.i.b16 %v3624_v41, %v3623_v54  ;;  %v3804_v41 = vrot.slane %v3803_v2, 4  ;;  %v3831_v54 = vsel %vm1127_vm1, %v3830_v47, %v3824_v7  ;;  %v3833_v7 = vsel %vm1127_vm1, %v3829_v23, %v3832_v5 }
 0x575   : > { %5317 = vrot.lane.b32.xlu1 %v8245_v56, %s6405_s22  ;;  %v3619_v52 = vpack.i.b16 %v3618_v53, %v3617_v20  ;;  %v3354_v53 = vrot.slane %v8345_v49, 4  ;;  %v3837_v40 = vperm.slane %v3831_v54, %v6721_v14  ;;  %v3622_v20 = vpack.i.b16 %v8300_v38, %v8284_v16 }
 0x576   : > { %4829 = vrot.lane.b32.xlu0 %v8257_v36, %s6399_s18  ;;  %v8337_v11 = vperm.slane %v3625_v33, %v6696_v55  ;;  %v3805_v63 = vsel %vm1127_vm1, %v3804_v41, %v3798_v10  ;;  %v3483_v33 = vunpack.c.l.b16 %v3379_v50  ;;  %v3806_v41 = vrot.slane %v3798_v10, 4 }
 0x577   : > { %v8352_v39 = vperm.slane %v3619_v52, %v6696_v55  ;;  %v8361_v24 = vperm.slane %v3805_v63, %v6721_v14  ;;  %v3355_v30 = vsel %vm1127_vm1, 0, %v3354_v53  ;;  %v3489_v52 = vpack.c.b16 %v3488_v21, %v3488_v21 }
 0x578   : > { %v3778_v45 = vrot.slane %v8337_v11, 4  ;;  %v3484_v51 = vpack.c.b16 %v3483_v33, %v3483_v33  ;;  %v3937_v19 = vunpack.c.l.b16 %v3837_v40  ;;  %v3751_v50 = vperm.slane %v3622_v20, %v6696_v55 }
 0x579   : > { %v3616_v16 = vpack.i.b16 %v8308_v62, %v8313_v22  ;;  %v3493_v38 = vunpack.c.l.b16 %v3355_v30  ;;  %v3807_v63 = vsel %vm1127_vm1, %v3803_v2, %v3806_v41  ;;  %v3380_v33 = vrot.slane %v3377_v34, 4 }
 0x57a   : > { %5309 = vrot.lane.b32.xlu2 %v8237_v61, %s6405_s22  ;;  %v3779_v26 = vsel %vm1127_vm1, %v3778_v45, %v8352_v39  ;;  %v3938_v54 = vpack.c.b16 %v3937_v19, %v3937_v19  ;;  %v3752_v53 = vrot.slane %v3751_v50, 4  ;;  %v3841_v62 = vperm.slane %v3833_v7, %v6721_v14 }
 0x57b   : > { %v3785_v47 = vperm.slane %v3779_v26, %v6721_v14  ;;  %v3746_v21 = vperm.slane %v3616_v16, %v6696_v55  ;;  %v3494_v26 = vpack.c.b16 %v3493_v38, %v3493_v38  ;;  %v8384_v22 = vperm.slane %v3807_v63, %v6721_v14 }
 0x57c   : > { %v3381_v23 = vsel %vm1127_vm1, 0, %v3380_v33  ;;  %v3842_v2 = vrot.slane %v3837_v40, 4  ;;  %v3952_v5 = vunpack.c.l.b16 %v3841_v62 }
 0x57d   : > { %4843 = vrot.lane.b32.xlu1 %v8273_v48, %s6399_s18  ;;  %v3907_v45 = vunpack.c.l.b16 %v3785_v47  ;;  %10185 = vst [vmem:[#allocation152_spill] sm:$0xff] %v8384_v22  ;;  %v3753_v34 = vsel %vm1127_vm1, %v3752_v53, %v3746_v21  ;;  %v3754_v30 = vrot.slane %v3746_v21, 4  ;;  %v3498_v19 = vunpack.c.l.b16 %v3381_v23 }
 0x57e   : > { %4851 = vrot.lane.b32.xlu0 %v8279_v59, %s6399_s18  ;;  %v3818_v41 = vrot.slane %v8384_v22, 4  ;;  %v3843_v16 = vsel %vm1127_vm1, 0, %v3842_v2  ;;  %v3790_v38 = vrot.slane %v3785_v47, 4  ;;  %v3953_v40 = vpack.c.b16 %v3952_v5, %v3952_v5 }
 0x57f   : > { %v3908_v20 = vpack.c.b16 %v3907_v45, %v3907_v45  ;;  %v8397_v45 = vpop.permute.xlu2 %3475  ;;  %v3499_v7 = vpack.c.b16 %v3498_v19, %v3498_v19  ;;  %v3947_v63 = vunpack.c.l.b16 %v3843_v16  ;;  %v8419_v16 = vpop.permute.xlu0 %3470 }
 0x580   : > { %v3791_v53 = vsel %vm1127_vm1, 0, %v3790_v38 }
 0x581   : > { %v3948_v21 = vpack.c.b16 %v3947_v63, %v3947_v63 }
 0x582   : > { %4837 = vrot.lane.b32.xlu2 %v8290_v6, %s6399_s18 }
 0x585   : > { %5301 = vrot.lane.b32.xlu1 %v8290_v6, %s6405_s22 }
 0x586   : > { %5307 = vrot.lane.b32.xlu0 %v8273_v48, %s6405_s22 }
 0x58a   : > { %5293 = vrot.lane.b32.xlu2 %v8257_v36, %s6405_s22 }
 0x58d   : > { %4827 = vrot.lane.b32.xlu1 %v8317_v29, %s6399_s18 }
 0x58e   : > { %4835 = vrot.lane.b32.xlu0 %v8321_v32, %s6399_s18 }
 0x592   : > { %5315 = vrot.lane.b32.xlu2 %v8279_v59, %s6405_s22 }
 0x595   : > { %5299 = vrot.lane.b32.xlu1 %v8321_v32, %s6405_s22 }
 0x596   : > { %3480 = vrot.lane.b32.xlu0 %v3479_v4, %s6403_s17  ;;  %v3816_v4 = vrot.slane %v8361_v24, 4 }
 0x598   : > { %v3817_v10 = vsel %vm1127_vm1, 0, %v3816_v4  ;;  %v8392_v4 = vperm.slane %v3753_v34, %v6721_v14 }
 0x59a   : > { %5291 = vrot.lane.b32.xlu2 %v8317_v29, %s6405_s22  ;;  %v3764_v47 = vrot.slane %v8392_v4, 4 }
 0x59c   : > { %v3765_v23 = vsel %vm1127_vm1, 0, %v3764_v47 }
 0x59d   : > { %3485 = vrot.lane.b32.xlu1 %v3484_v51, %s6404_s21  ;;  %v3942_v51 = vunpack.c.l.b16 %v3817_v10  ;;  %v3819_v10 = vsel %vm1127_vm1, 0, %v3818_v41 }
 0x59e   : > { %3490 = vrot.lane.b32.xlu0 %v3489_v52, %s6402_s23 }
 0x59f   : > { %v3943_v52 = vpack.c.b16 %v3942_v51, %v3942_v51  ;;  %v3780_v51 = vrot.slane %v8352_v39, 4 }
 0x5a1   : > { %v3781_v39 = vsel %vm1127_vm1, %v8337_v11, %v3780_v51  ;;  %v3518_v11 = vsel %vm1445_vm8, %v8030_v31, %v8158_v3  ;;  %v3054_v31 = vsel %vm1445_vm8, %v7752_v58, %v7954_v57  ;;  %v10190_v57 = vld [vmem:[#allocation26_spill] sm:$0xff] }
 0x5a2   : > { %3939 = vrot.lane.b32.xlu2 %v3938_v54, %s6402_s23  ;;  %v3755_v54 = vsel %vm1127_vm1, %v3751_v50, %v3754_v30  ;;  %v3957_v50 = vunpack.c.l.b16 %v3819_v10 }
 0x5a3   : > { %v8401_v33 = vperm.slane %v3755_v54, %v6721_v14 }
 0x5a4   : > { %v3958_v34 = vpack.c.b16 %v3957_v50, %v3957_v50 }
 0x5a5   : > { %3495 = vrot.lane.b32.xlu1 %v3494_v26, %s6403_s17  ;;  %10186 = vst [vmem:[#allocation153_spill] sm:$0xff] %v8401_v33  ;;  %v3917_v26 = vunpack.c.l.b16 %v3791_v53  ;;  %v3766_v2 = vrot.slane %v8401_v33, 4 }
 0x5a6   : > { %3909 = vrot.lane.b32.xlu0 %v3908_v20, %s6402_s23  ;;  %v3844_v20 = vrot.slane %v3841_v62, 4 }
 0x5a7   : > { %v3918_v5 = vpack.c.b16 %v3917_v26, %v3917_v26  ;;  %v3767_v41 = vsel %vm1127_vm1, 0, %v3766_v2 }
 0x5a8   : > { %v3845_v19 = vsel %vm1127_vm1, 0, %v3844_v20  ;;  %v3927_v54 = vunpack.c.l.b16 %v3767_v41 }
 0x5a9   : > { %v3962_v62 = vunpack.c.l.b16 %v3845_v19  ;;  %v10189_v19 = vld [vmem:[#allocation146_spill] sm:$0xff] }
 0x5aa   : > { %3944 = vrot.lane.b32.xlu2 %v3943_v52, %s6403_s17  ;;  %v3912_v52 = vunpack.c.l.b16 %v3765_v23  ;;  %v3928_v10 = vpack.c.b16 %v3927_v54, %v3927_v54  ;;  %v3504_v41 = vsel %vm1445_vm8, %v10189_v19, %v8146_v44  ;;  %v4405_v19 = vshrl.u32 %v8279_v59, 16 }
 0x5ab   : > { %v3506_v44 = vsel %vm1449_vm9, %v3504_v41, %v8142_v43  ;;  %v4410_v43 = vshrl.u32 %v8257_v36, 16 }
 0x5ac   : > { %v3913_v38 = vpack.c.b16 %v3912_v52, %v3912_v52 }
 0x5ad   : > { %3954 = vrot.lane.b32.xlu1 %v3953_v40, %s6402_s23  ;;  %v3789_v40 = vperm.slane %v3781_v39, %v6721_v14  ;;  %v4417_v39 = vshrl.u32 %v8245_v56, 16 }
 0x5ae   : > { %3500 = vrot.lane.b32.xlu0 %v3499_v7, %s6404_s21  ;;  %v3963_v7 = vpack.c.b16 %v3962_v62, %v3962_v62 }
 0x5af   : > { %v3922_v53 = vunpack.c.l.b16 %v3789_v40  ;;  %v3792_v47 = vrot.slane %v3789_v40, 4  ;;  %v10191_v40 = vld [vmem:[#allocation128_spill] sm:$0xff] }
 0x5b1   : > { %v3923_v20 = vpack.c.b16 %v3922_v53, %v3922_v53  ;;  %v3793_v51 = vsel %vm1127_vm1, 0, %v3792_v47 }
 0x5b2   : > { %3949 = vrot.lane.b32.xlu2 %v3948_v21, %s6404_s21  ;;  %v3520_v21 = vsel %vm1449_vm9, %v3518_v11, %v8150_v60  ;;  %v3932_v60 = vunpack.c.l.b16 %v3793_v51  ;;  %v4416_v11 = vshrl.u32 %v8237_v61, 16 }
 0x5b3   : > { %v3522_v3 = vsel %vm1452_vm10, %v3520_v21, %v8160_v25  ;;  %v10193_v21 = vld [vmem:[#allocation91_spill] sm:$0xff] }
 0x5b4   : > { %v8411_v30 = vpop.permute.xlu2 %3849  ;;  %v4032_v58 = vrot.slane %v3522_v3, 6  ;;  %v3933_v54 = vpack.c.b16 %v3932_v60, %v3932_v60  ;;  %v3525_v3 = vsel %vm1445_vm8, %v8047_v42, %v8162_v0  ;;  %v4418_v60 = vpack.i.b16 %v4417_v39, %v4416_v11  ;;  %v10194_v0 = vld [vmem:[#allocation19_spill] sm:$0xff] }
 0x5b5   : > { %3959 = vrot.lane.b32.xlu1 %v3958_v34, %s6403_s17  ;;  %v10187_v34 = vld [vmem:[#allocation22_spill] sm:$0xff]  ;;  %v4409_v42 = vpack.i.b16 %v8290_v6, %v8257_v36  ;;  %v4398_v36 = vshrl.u32 %v8317_v29, 16 }
 0x5b6   : > { %3919 = vrot.lane.b32.xlu0 %v3918_v5, %s6404_s21  ;;  %v10188_v5 = vld [vmem:[#allocation129_spill] sm:$0xff] }
 0x5b7   : > { %v3056_v52 = vsel %vm1449_vm9, %v3054_v31, %v10188_v5  ;;  %v4411_v5 = vshrl.u32 %v8290_v6, 16  ;;  %v4399_v6 = vshrl.u32 %v8321_v32, 16 }
 0x5ba   : > { %3914 = vrot.lane.b32.xlu2 %v3913_v38, %s6403_s17 }
 0x5bc   : > { %v8423_v63 = vpop.permute.xlu2 %3854 }
 0x5bd   : > { %3964 = vrot.lane.b32.xlu1 %v3963_v7, %s6404_s21  ;;  %v3058_v7 = vsel %vm1452_vm10, %v3056_v52, %v10191_v40  ;;  %v4403_v52 = vpack.i.b16 %v8279_v59, %v8273_v48  ;;  %v3527_v59 = vsel %vm1449_vm9, %v3525_v3, %v8156_v27  ;;  %v4412_v40 = vpack.i.b16 %v4411_v5, %v4410_v43  ;;  %v10201_v3 = vld [vmem:[#allocation126_spill] sm:$0xff] }
 0x5be   : > { %3929 = vrot.lane.b32.xlu0 %v3928_v10, %s6403_s17  ;;  %v4059_v53 = vsel %vm2480_vm11, %v3058_v7, %v4032_v58  ;;  %v10196_v58 = vld [vmem:[#allocation145_spill] sm:$0xff] }
 0x5bf   : > { %v3880_v50 = vpop.permute.xlu1 %3879 }
 0x5c0   : > { %v3885_v26 = vpop.permute.xlu0 %3884  ;;  %v3982_v23 = vsel %vm1445_vm8, %v8182_v8, %v3880_v50  ;;  %v10192_v50 = vld [vmem:[#allocation124_spill] sm:$0xff] }
 0x5c1   : > { %v3984_v25 = vsel %vm1449_vm9, %v3982_v23, %v3885_v26  ;;  %v3040_v26 = vsel %vm1445_vm8, %v10193_v21, %v10192_v50  ;;  %v4415_v23 = vpack.i.b16 %v8245_v56, %v8237_v61  ;;  %v10195_v61 = vld [vmem:[#allocation125_spill] sm:$0xff]  ;;  %v8523_v50 = vperm.slane %v4403_v52, %v6696_v55 }
 0x5c2   : > { %3924 = vrot.lane.b32.xlu2 %v3923_v20, %s6402_s23  ;;  %v3508_v20 = vsel %vm1452_vm10, %v3506_v44, %v8148_v18  ;;  %v4404_v18 = vshrl.u32 %v8273_v48, 16  ;;  %v3042_v56 = vsel %vm1449_vm9, %v3040_v26, %v10195_v61  ;;  %v3968_v48 = vsel %vm1445_vm8, %v8204_v15, %v8411_v30  ;;  %v10197_v30 = vld [vmem:[#allocation120_spill] sm:$0xff] }
 0x5c3   : > { %v4030_v41 = vrot.slane %v3508_v20, 6  ;;  %v3970_v39 = vsel %vm1449_vm9, %v3968_v48, %v8423_v63  ;;  %v3044_v27 = vsel %vm1452_vm10, %v3042_v56, %v10197_v30  ;;  %v10198_v63 = vld [vmem:[#allocation131_spill] sm:$0xff]  ;;  %10200 = vst [vmem:[#allocation129_spill] sm:$0xff] %v8523_v50  ;;  %v8527_v26 = vperm.slane %v4409_v42, %v6696_v55 }
 0x5c4   : > { %v8441_v2 = vpop.permute.xlu2 %3864  ;;  %v4406_v44 = vpack.i.b16 %v4405_v19, %v4404_v18  ;;  %v4400_v20 = vpack.i.b16 %v4399_v6, %v4398_v36  ;;  %v10203_v18 = vld [vmem:[#allocation24_spill] sm:$0xff]  ;;  %v10205_v56 = vld [vmem:[#allocation27_spill] sm:$0xff] }
 0x5c5   : > { %4849 = vrot.lane.b32.xlu1 %v10187_v34, %s6399_s18  ;;  %v4055_v21 = vsel %vm2480_vm11, %v3044_v27, %v4030_v41 }
 0x5c6   : > { %4857 = vrot.lane.b32.xlu0 %v10190_v57, %s6399_s18  ;;  %v8553_v41 = vperm.slane %v4406_v44, %v6696_v55 }
 0x5c7   : > { %v3890_v8 = vpop.permute.xlu1 %3889 }
 0x5c8   : > { %v3986_v62 = vsel %vm1452_vm10, %v3984_v25, %v3890_v8  ;;  %v8455_v38 = vpop.permute.xlu0 %3894  ;;  %v3511_v25 = vsel %vm1445_vm8, %v10196_v58, %v8152_v46  ;;  %v8508_v46 = vperm.slane %v4418_v60, %v6696_v55  ;;  %10206 = vst [vmem:[#allocation146_spill] sm:$0xff] %v8553_v41  ;;  %v4525_v58 = vperm.slane %v4412_v40, %v6696_v55 }
 0x5c9   : > { %v4048_v10 = vrot.slane %v3986_v62, 4  ;;  %v3513_v7 = vsel %vm1449_vm9, %v3511_v25, %v8144_v13  ;;  %v4397_v13 = vpack.i.b16 %v8321_v32, %v8317_v29  ;;  %v10204_v29 = vld [vmem:[#allocation132_spill] sm:$0xff]  ;;  %v3989_v61 = vsel %vm1445_vm8, %v8194_v1, %v8455_v38 }
 0x5ca   : > { %3934 = vrot.lane.b32.xlu2 %v3933_v54, %s6404_s21  ;;  %v8505_v54 = vperm.slane %v4415_v23, %v6696_v55  ;;  %v10202_v23 = vld [vmem:[#allocation92_spill] sm:$0xff]  ;;  %v3515_v60 = vsel %vm1452_vm10, %v3513_v7, %v8154_v12  ;;  %v4531_v42 = vrot.slane %v8508_v46, 4  ;;  %v4453_v12 = vrot.slane %v8523_v50, 4 }
 0x5cb   : > { %v4075_v47 = vsel %vm2497_vm12, %v4059_v53, %v4048_v10  ;;  %v10199_v53 = vld [vmem:[#allocation93_spill] sm:$0xff]  ;;  %v4031_v6 = vrot.slane %v3515_v60, 6  ;;  %v3975_v1 = vsel %vm1445_vm8, %v8211_v9, %v8441_v2  ;;  %v8566_v30 = vperm.slane %v4397_v13, %v6696_v55  ;;  %v10210_v7 = vld [vmem:[#allocation20_spill] sm:$0xff] }
 0x5cc   : > { %v8471_v51 = vpop.permute.xlu2 %3874  ;;  %v4097_v31 = vsel %vm4092_vm13, %v4075_v47, 0  ;;  %v3061_v11 = vsel %vm1445_vm8, %v10199_v53, %v10198_v63  ;;  %v3529_v47 = vsel %vm1452_vm10, %v3527_v59, %v8166_v37  ;;  %v3047_v37 = vsel %vm1445_vm8, %v10202_v23, %v10201_v3  ;;  %v10207_v59 = vld [vmem:[#allocation127_spill] sm:$0xff]  ;;  %v10261_v50 = vld [vmem:[#allocation36_spill] sm:$0xff] }
 0x5cd   : > { %5321 = vrot.lane.b32.xlu1 %v10190_v57, %s6405_s22  ;;  %4142 = vmatpush.bf16.msra.mxu2 %v4097_v31  ;;  %v4505_v5 = vrot.slane %v8505_v54, 4  ;;  %v3063_v32 = vsel %vm1449_vm9, %v3061_v11, %v10204_v29  ;;  %v4033_v19 = vrot.slane %v3529_v47, 6  ;;  %v3049_v36 = vsel %vm1449_vm9, %v3047_v37, %v10207_v59  ;;  %10209 = vst [vmem:[#allocation128_spill] sm:$0xff] %v8566_v30  ;;  %v10260_v57 = vld [vmem:[#allocation72_spill] sm:$0xff] }
 0x5ce   : > { %4833 = vrot.lane.b32.xlu0 %v10194_v0, %s6399_s18  ;;  %v4532_v2 = vsel %vm1127_vm1, %v4531_v42, %v4525_v58  ;;  %v4479_v53 = vrot.slane %v8553_v41, 4  ;;  %v4454_v3 = vsel %vm1127_vm1, %v4453_v12, %v8566_v30  ;;  %v4533_v23 = vrot.slane %v4525_v58, 4  ;;  %v10286_v30 = vld [vmem:[#allocation108_spill] sm:$0xff] }
 0x5cf   : > { %v3900_v8 = vpop.permute.xlu1 %3899  ;;  %v4506_v44 = vsel %vm1127_vm1, %v4505_v5, %v8527_v26  ;;  %v4538_v60 = vperm.slane %v4532_v2, %v6721_v14  ;;  %v4507_v42 = vrot.slane %v8527_v26, 4 }
 0x5d0   : > { %v3860_v62 = vpop.permute.xlu0 %3859  ;;  %v3991_v25 = vsel %vm1449_vm9, %v3989_v61, %v3900_v8 }
 0x5d1   : > { %v3972_v15 = vsel %vm1452_vm10, %v3970_v39, %v3860_v62  ;;  %v10208_v62 = vld [vmem:[#allocation130_spill] sm:$0xff] }
 0x5d2   : > { %v4046_v10 = vrot.slane %v3972_v15, 4  ;;  %5313 = vrot.lane.b32.xlu2 %v10187_v34, %s6405_s22  ;;  %v3065_v15 = vsel %vm1452_vm10, %v3063_v32, %v10208_v62  ;;  %v4534_v32 = vsel %vm1127_vm1, %v8508_v46, %v4533_v23  ;;  %v10227_v23 = vld [vmem:[#allocation29_spill] sm:$0xff] }
 0x5d3   : > { %v4061_v9 = vsel %vm2480_vm11, %v3065_v15, %v4033_v19  ;;  %v8605_v19 = vperm.slane %v4454_v3, %v6721_v14  ;;  %v10219_v15 = vld [vmem:[#allocation21_spill] sm:$0xff] }
 0x5d4   : > { %v8531_v43 = vpop.permute.xlu2 %5309  ;;  %v4071_v31 = vsel %vm2497_vm12, %v4055_v21, %v4046_v10  ;;  %v10211_v10 = vld [vmem:[#allocation123_spill] sm:$0xff] }
 0x5d5   : > { %4847 = vrot.lane.b32.xlu1 %v10203_v18, %s6399_s18  ;;  %v4093_v52 = vsel %vm4092_vm13, %v4071_v31, 0  ;;  %v3051_v63 = vsel %vm1452_vm10, %v3049_v36, %v10211_v10  ;;  %10214 = vst [vmem:[#allocation125_spill] sm:$0xff] %v8605_v19  ;;  %v8615_v36 = vperm.slane %v4534_v32, %v6721_v14  ;;  %v4465_v26 = vrot.slane %v8605_v19, 4  ;;  %v10229_v32 = vld [vmem:[#allocation31_spill] sm:$0xff]  ;;  %v10250_v19 = vld [vmem:[#allocation49_spill] sm:$0xff] }
 0x5d6   : > { %4855 = vrot.lane.b32.xlu0 %v10205_v56, %s6399_s18  ;;  %4116 = vmatpush.bf16.msra.mxu0 %v4093_v52  ;;  %v4057_v31 = vsel %vm2480_vm11, %v3051_v63, %v4031_v6  ;;  %v4508_v6 = vsel %vm1127_vm1, %v8505_v54, %v4507_v42  ;;  %v10223_v63 = vld [vmem:[#allocation28_spill] sm:$0xff] }
 0x5d7   : > { %v3905_v48 = vpop.permute.xlu1 %3904  ;;  %10216 = vst [vmem:[#allocation120_spill] sm:$0xff] %v8615_v36 }
 0x5d8   : > { %v3993_v38 = vsel %vm1452_vm10, %v3991_v25, %v3905_v48  ;;  %v3870_v39 = vpop.permute.xlu0 %3869  ;;  %v4543_v48 = vrot.slane %v4538_v60, 4 }
 0x5d9   : > { %v4049_v40 = vrot.slane %v3993_v38, 4  ;;  %v3977_v8 = vsel %vm1449_vm9, %v3975_v1, %v3870_v39  ;;  %v10217_v1 = vld [vmem:[#allocation32_spill] sm:$0xff] }
 0x5da   : > { %v3979_v27 = vsel %vm1452_vm10, %v3977_v8, %v8471_v51  ;;  %4841 = vrot.lane.b32.xlu2 %v10210_v7, %s6399_s18  ;;  %v8582_v51 = vperm.slane %v4400_v20, %v6696_v55  ;;  %v8595_v20 = vperm.slane %v4506_v44, %v6721_v14  ;;  %v10218_v38 = vld [vmem:[#allocation12_spill] sm:$0xff]  ;;  %v4544_v54 = vsel %vm1127_vm1, 0, %v4543_v48  ;;  %v10222_v44 = vld [vmem:[#allocation23_spill] sm:$0xff] }
 0x5db   : > { %v4047_v11 = vrot.slane %v3979_v27, 4  ;;  %v4077_v47 = vsel %vm2497_vm12, %v4061_v9, %v4049_v40  ;;  %v1471_v39 = vsel %vm1445_vm8, %v10218_v38, %v10217_v1  ;;  %v10220_v40 = vld [vmem:[#allocation11_spill] sm:$0xff]  ;;  %v10221_v9 = vld [vmem:[#allocation25_spill] sm:$0xff] }
 0x5dc   : > { %10212 = vst [vmem:[#allocation124_spill] sm:$0xff] %v8582_v51  ;;  %v8584_v21 = vpop.permute.xlu2 %4837  ;;  %v4099_v13 = vsel %vm4092_vm13, %v4077_v47, 0  ;;  %v4480_v29 = vsel %vm1127_vm1, %v4479_v53, %v8582_v51  ;;  %v4517_v25 = vrot.slane %v8595_v20, 4  ;;  %v1457_v8 = vsel %vm1445_vm8, %v10220_v40, %v10219_v15  ;;  %v10230_v38 = vld [vmem:[#allocation33_spill] sm:$0xff]  ;;  %v10232_v40 = vld [vmem:[#allocation35_spill] sm:$0xff] }
 0x5dd   : > { %5305 = vrot.lane.b32.xlu1 %v10210_v7, %s6405_s22  ;;  %4155 = vmatpush.bf16.msra.mxu3 %v4099_v13  ;;  %v4073_v37 = vsel %vm2497_vm12, %v4057_v31, %v4047_v11  ;;  %10213 = vst [vmem:[#allocation91_spill] sm:$0xff] %v8595_v20  ;;  %v8612_v59 = vperm.slane %v4480_v29, %v6721_v14  ;;  %v4697_v11 = vunpack.c.l.b16 %v8615_v36  ;;  %v10225_v13 = vld [vmem:[#allocation30_spill] sm:$0xff]  ;;  %v10226_v31 = vld [vmem:[#allocation13_spill] sm:$0xff]  ;;  %v8652_v29 = vsel %vm1127_vm1, 0, %v4465_v26  ;;  %v10258_v7 = vld [vmem:[#allocation67_spill] sm:$0xff] }
 0x5de   : > { %5311 = vrot.lane.b32.xlu0 %v10203_v18, %s6405_s22  ;;  %v4095_v5 = vsel %vm4092_vm13, %v4073_v37, 0  ;;  %v4518_v2 = vsel %vm1127_vm1, 0, %v4517_v25  ;;  %v1459_v10 = vsel %vm1449_vm9, %v1457_v8, %v10222_v44  ;;  %v8639_v47 = vperm.slane %v4508_v6, %v6721_v14  ;;  %10228 = vst [vmem:[#allocation93_spill] sm:$0xff] %v8652_v29  ;;  %v10233_v8 = vld [vmem:[#allocation14_spill] sm:$0xff]  ;;  %v10254_v18 = vld [vmem:[#allocation53_spill] sm:$0xff] }
 0x5df   : > { %v4846_v52 = vpop.permute.xlu1 %4845  ;;  %4129 = vmatpush.bf16.msra.mxu1 %v4095_v5  ;;  %10215 = vst [vmem:[#allocation145_spill] sm:$0xff] %v8612_v59  ;;  %v4652_v53 = vunpack.c.l.b16 %v8612_v59  ;;  %v1448_v3 = vsel %vm1445_vm8, %v10226_v31, %v10225_v13  ;;  %v1473_v37 = vsel %vm1449_vm9, %v1471_v39, %v10227_v23  ;;  %v8656_v42 = vsel %vm1452_vm10, %v1459_v10, %v10229_v32  ;;  %v10234_v44 = vld [vmem:[#allocation34_spill] sm:$0xff] }
 0x5e0   : > { %v4854_v61 = vpop.permute.xlu0 %4853  ;;  %v4880_v12 = vshrl.u32 %v4846_v52, 16  ;;  %10224 = vst [vmem:[#allocation131_spill] sm:$0xff] %v8639_v47  ;;  %v4692_v25 = vunpack.c.l.b16 %v4544_v54  ;;  %v4875_v48 = vshrl.u32 %v8584_v21, 16  ;;  %v8665_v26 = vsel %vm1452_vm10, %v1473_v37, %v10230_v38  ;;  %v10235_v23 = vld [vmem:[#allocation38_spill] sm:$0xff] }
 0x5e1   : > { %v4881_v58 = vshrl.u32 %v4854_v61, 16  ;;  %v4879_v46 = vpack.i.b16 %v4854_v61, %v4846_v52  ;;  %v8669_v39 = vpack.c.b16 %v4652_v53, %v4652_v53  ;;  %v4519_v15 = vrot.slane %v8639_v47, 4  ;;  %v10251_v20 = vld [vmem:[#allocation18_spill] sm:$0xff] }
 0x5e2   : > { %5297 = vrot.lane.b32.xlu2 %v10194_v0, %s6405_s22  ;;  %v8689_v31 = vpack.c.b16 %v4692_v25, %v4692_v25  ;;  %v1451_v37 = vsel %vm1449_vm9, %v1448_v3, %v10235_v23  ;;  %v10238_v25 = vld [vmem:[#allocation44_spill] sm:$0xff]  ;;  %v10240_v3 = vld [vmem:[#allocation59_spill] sm:$0xff] }
 0x5e3   : > { %v4882_v27 = vpack.i.b16 %v4881_v58, %v4880_v12  ;;  %v8647_v5 = vperm.slane %v4879_v46, %v6696_v55  ;;  %v4682_v12 = vunpack.c.l.b16 %v4538_v60  ;;  %v4687_v58 = vunpack.c.l.b16 %v4518_v2  ;;  %v10245_v23 = vld [vmem:[#allocation63_spill] sm:$0xff]  ;;  %v10257_v0 = vld [vmem:[#allocation64_spill] sm:$0xff] }
 0x5e4   : > { %v8623_v62 = vpop.permute.xlu2 %5293  ;;  %v8671_v60 = vpack.c.b16 %v4697_v11, %v4697_v11 }
 0x5e5   : > { %4831 = vrot.lane.b32.xlu1 %v10221_v9, %s6399_s18  ;;  %v8660_v6 = vperm.slane %v4882_v27, %v6696_v55  ;;  %v1464_v27 = vsel %vm1445_vm8, %v10233_v8, %v10232_v40  ;;  %v8685_v53 = vpack.c.b16 %v4682_v12, %v4682_v12  ;;  %v8687_v11 = vpack.c.b16 %v4687_v58, %v4687_v58  ;;  %v10236_v12 = vld [vmem:[#allocation41_spill] sm:$0xff]  ;;  %v10241_v40 = vld [vmem:[#allocation51_spill] sm:$0xff] }
 0x5e6   : > { %4839 = vrot.lane.b32.xlu0 %v10223_v63, %s6399_s18  ;;  %10231 = vst [vmem:[#allocation126_spill] sm:$0xff] %v8671_v60  ;;  %v1466_v10 = vsel %vm1449_vm9, %v1464_v27, %v10234_v44  ;;  %v1937_v8 = vsel %vm1445_vm8, %v10241_v40, %v10240_v3  ;;  %v10296_v60 = vld [vmem:[#allocation119_spill] sm:$0xff] }
 0x5e7   : > { %v8649_v52 = vpop.permute.xlu1 %5317  ;;  %v4995_v32 = vrot.slane %v8660_v6, 4  ;;  %v1939_v47 = vsel %vm1449_vm9, %v1937_v8, %v10245_v23  ;;  %v10248_v23 = vld [vmem:[#allocation47_spill] sm:$0xff] }
 0x5e8   : > { %v4830_v61 = vpop.permute.xlu0 %4829 }
 0x5e9   : > { %v4873_v46 = vpack.i.b16 %v8584_v21, %v4830_v61  ;;  %v4874_v1 = vshrl.u32 %v4830_v61, 16  ;;  %v4969_v21 = vrot.slane %v8647_v5, 4 }
 0x5ea   : > { %5319 = vrot.lane.b32.xlu2 %v10205_v56, %s6405_s22 }
 0x5eb   : > { %v4876_v2 = vpack.i.b16 %v4875_v48, %v4874_v1  ;;  %v8679_v54 = vperm.slane %v4873_v46, %v6696_v55  ;;  %v10237_v46 = vld [vmem:[#allocation15_spill] sm:$0xff]  ;;  %v10239_v1 = vld [vmem:[#allocation16_spill] sm:$0xff] }
 0x5ec   : > { %v8683_v13 = vpop.permute.xlu2 %5315  ;;  %v1485_v58 = vsel %vm1445_vm8, %v10237_v46, %v10236_v12  ;;  %v1499_v38 = vsel %vm1445_vm8, %v10239_v1, %v10238_v25  ;;  %v8722_v25 = vld [vmem:[#allocation5 + $0x4] sm:$0xf] }
 0x5ed   : > { %v4970_v61 = vsel %vm1127_vm1, %v4969_v21, %v8679_v54  ;;  %v8697_v48 = vperm.slane %v4876_v2, %v6696_v55  ;;  %5303 = vrot.lane.b32.xlu1 %v10223_v63, %s6405_s22  ;;  %v10243_v21 = vld [vmem:[#allocation60_spill] sm:$0xff]  ;;  %v10246_v1 = vld [vmem:[#allocation66_spill] sm:$0xff]  ;;  %6153 = vmatmul.msk.bf16.vlgmr.msra.gmra.mxu2 %vm4088_vm14, %v8722_v25  ;;  %v10253_v63 = vld [vmem:[#allocation61_spill] sm:$0xff] }
 0x5ee   : > { %v8711_v27 = vperm.slane %v4970_v61, %v6721_v14  ;;  %v10244_v2 = vld [vmem:[#allocation52_spill] sm:$0xff]  ;;  %v5345_v61 = vshrl.u32 %v8649_v52, 16  ;;  %6151 = vmatmul.msk.bf16.vlgmr.msra.gmra.mxu0 %vm4088_vm14, %v8722_v25  ;;  %6154 = vmatmul.msk.bf16.vlgmr.msra.gmra.mxu3 %vm4088_vm14, %v8722_v25 }
 0x5ef   : > { %v1951_v44 = vsel %vm1445_vm8, %v10244_v2, %v10243_v21  ;;  %v4996_v12 = vsel %vm1127_vm1, %v4995_v32, %v8697_v48  ;;  %v8720_v46 = vpop.permute.xlu1 %4843  ;;  %v10247_v32 = vld [vmem:[#allocation40_spill] sm:$0xff]  ;;  %6152 = vmatmul.msk.bf16.vlgmr.msra.gmra.mxu1 %vm4088_vm14, %v8722_v25 }
 0x5f0   : > { %10242 = vst [vmem:[#allocation92_spill] sm:$0xff] %v8711_v27  ;;  %v1953_v3 = vsel %vm1449_vm9, %v1951_v44, %v10246_v1  ;;  %v8727_v40 = vpop.permute.xlu0 %4851  ;;  %v8730_v21 = vperm.slane %v4996_v12, %v6721_v14  ;;  %v4981_v8 = vrot.slane %v8711_v27, 4  ;;  %v1501_v2 = vsel %vm1449_vm9, %v1499_v38, %v10247_v32  ;;  %v10249_v44 = vld [vmem:[#allocation17_spill] sm:$0xff] }
 0x5f1   : > { %v1478_v1 = vsel %vm1445_vm8, %v10249_v44, %v10248_v23  ;;  %v1492_v12 = vsel %vm1445_vm8, %v10251_v20, %v10250_v19  ;;  %v8750_v27 = vsel %vm1127_vm1, 0, %v4519_v15  ;;  %v1930_v38 = vsel %vm1445_vm8, %v10254_v18, %v10253_v63  ;;  %v10255_v23 = vld [vmem:[#allocation62_spill] sm:$0xff]  ;;  %v10259_v18 = vld [vmem:[#allocation69_spill] sm:$0xff] }
 0x5f2   : > { %10252 = vst [vmem:[#allocation132_spill] sm:$0xff] %v8750_v27  ;;  %v5344_v32 = vshrl.u32 %v8531_v43, 16  ;;  %5295 = vrot.lane.b32.xlu2 %v10221_v9, %s6405_s22  ;;  %v5146_v20 = vunpack.c.l.b16 %v8730_v21  ;;  %v4982_v19 = vsel %vm1127_vm1, 0, %v4981_v8  ;;  %v10256_v44 = vld [vmem:[#allocation54_spill] sm:$0xff]  ;;  %v1941_v15 = vsel %vm1452_vm10, %v1939_v47, %v10257_v0  ;;  %v10263_v47 = vld [vmem:[#allocation37_spill] sm:$0xff] }
 0x5f3   : > { %v1944_v56 = vsel %vm1445_vm8, %v10256_v44, %v10255_v23  ;;  %v1955_v34 = vsel %vm1452_vm10, %v1953_v3, %v10258_v7  ;;  %v1932_v63 = vsel %vm1449_vm9, %v1930_v38, %v10259_v18  ;;  %v5151_v51 = vunpack.c.l.b16 %v4982_v19  ;;  %v10262_v44 = vld [vmem:[#allocation39_spill] sm:$0xff]  ;;  %v10265_v38 = vld [vmem:[#allocation45_spill] sm:$0xff] }
 0x5f4   : > { %v1946_v9 = vsel %vm1449_vm9, %v1944_v56, %v10260_v57  ;;  %v5346_v59 = vpack.i.b16 %v5345_v61, %v5344_v32  ;;  %v8771_v41 = vpop.permute.xlu2 %5291  ;;  %v5147_v8 = vpack.c.b16 %v5146_v20, %v5146_v20  ;;  %v1454_v23 = vsel %vm1452_vm10, %v1451_v37, %v10261_v50  ;;  %v10266_v56 = vld [vmem:[#allocation43_spill] sm:$0xff]  ;;  %v10267_v32 = vld [vmem:[#allocation46_spill] sm:$0xff]  ;;  %v10269_v19 = vld [vmem:[#allocation73_spill] sm:$0xff] }
 0x5f5   : > { %v1468_v0 = vsel %vm1452_vm10, %v1466_v10, %v10262_v44  ;;  %v8779_v7 = vsel %vm1449_vm9, %v1485_v58, %v10263_v47  ;;  %v4997_v3 = vrot.slane %v8697_v48, 4  ;;  %v8784_v57 = vsel %vm1452_vm10, %v1501_v2, %v10265_v38  ;;  %v10268_v50 = vld [vmem:[#allocation70_spill] sm:$0xff] }
 0x5f6   : > { %10264 = vst [vmem:[#allocation127_spill] sm:$0xff] %v8779_v7  ;;  %v1480_v61 = vsel %vm1449_vm9, %v1478_v1, %v10266_v56  ;;  %v1494_v20 = vsel %vm1449_vm9, %v1492_v12, %v10267_v32  ;;  %v1934_v37 = vsel %vm1452_vm10, %v1932_v63, %v10268_v50  ;;  %5148 = vrot.lane.b32.xlu0 %v5147_v8, %s6402_s23  ;;  %v2457_v10 = vrot.slane %v1941_v15, 6  ;;  %v10270_v8 = vld [vmem:[#allocation48_spill] sm:$0xff]  ;;  %v10271_v32 = vld [vmem:[#allocation50_spill] sm:$0xff] }
 0x5f7   : > { %v2459_v58 = vrot.slane %v1955_v34, 6  ;;  %v1948_v48 = vsel %vm1452_vm10, %v1946_v9, %v10269_v19  ;;  %v5338_v18 = vshrl.u32 %v8623_v62, 16  ;;  %v5302_v2 = vpop.permute.xlu1 %5301  ;;  %v5343_v44 = vpack.i.b16 %v8649_v52, %v8531_v43 }
 0x5f8   : > { %v8799_v1 = vperm.slane %v5346_v59, %v6696_v55  ;;  %v5339_v12 = vshrl.u32 %v5302_v2, 16  ;;  %v8801_v47 = vpop.permute.xlu0 %5307  ;;  %v5152_v63 = vpack.c.b16 %v5151_v51, %v5151_v51  ;;  %v2456_v38 = vrot.slane %v1934_v37, 6  ;;  %v10273_v37 = vld [vmem:[#allocation65_spill] sm:$0xff] }
 0x5f9   : > { %v4868_v15 = vshrl.u32 %v8720_v46, 16  ;;  %v4869_v34 = vshrl.u32 %v8727_v40, 16  ;;  %v4998_v9 = vsel %vm1127_vm1, %v8660_v6, %v4997_v3  ;;  %v8809_v56 = vsel %vm1452_vm10, %v1480_v61, %v10270_v8  ;;  %v10274_v6 = vld [vmem:[#allocation55_spill] sm:$0xff] }
 0x5fa   : > { %v2458_v43 = vrot.slane %v1948_v48, 6  ;;  %v5337_v59 = vpack.i.b16 %v5302_v2, %v8623_v62  ;;  %v5340_v52 = vpack.i.b16 %v5339_v12, %v5338_v18  ;;  %5153 = vrot.lane.b32.xlu2 %v5152_v63, %s6403_s17  ;;  %v8815_v51 = vsel %vm1452_vm10, %v1494_v20, %v10271_v32  ;;  %v10276_v18 = vld [vmem:[#allocation68_spill] sm:$0xff]  ;;  %v10278_v12 = vld [vmem:[#allocation71_spill] sm:$0xff]  ;;  %v10279_v63 = vld [vmem:[#allocation57_spill] sm:$0xff] }
 0x5fb   : > { %v8819_v50 = vsel %vm2480_vm11, %v8656_v42, %v2457_v10  ;;  %v1965_v3 = vsel %vm1445_vm8, %v10274_v6, %v10273_v37  ;;  %v4867_v61 = vpack.i.b16 %v8727_v40, %v8720_v46  ;;  %v8827_v62 = vperm.slane %v5343_v44, %v6696_v55  ;;  %v10277_v2 = vld [vmem:[#allocation56_spill] sm:$0xff] }
 0x5fc   : > { %10272 = vst [vmem:[#allocation130_spill] sm:$0xff] %v8819_v50  ;;  %v5459_v19 = vrot.slane %v8799_v1, 4  ;;  %v8831_v48 = vperm.slane %v5340_v52, %v6696_v55  ;;  %v8833_v20 = vpop.permute.xlu2 %3939  ;;  %v8836_v42 = vperm.slane %v4998_v9, %v6721_v14  ;;  %v8840_v10 = vsel %vm2480_vm11, %v8665_v26, %v2459_v58  ;;  %v10280_v58 = vld [vmem:[#allocation74_spill] sm:$0xff] }
 0x5fd   : > { %10275 = vst [vmem:[#allocation123_spill] sm:$0xff] %v8840_v10  ;;  %v1979_v46 = vsel %vm1445_vm8, %v10277_v2, %v10276_v18  ;;  %v8846_v40 = vsel %vm2480_vm11, %v1454_v23, %v2456_v38  ;;  %v4870_v44 = vpack.i.b16 %v4869_v34, %v4868_v15  ;;  %v1958_v8 = vsel %vm1445_vm8, %v10279_v63, %v10278_v12  ;;  %v10281_v23 = vld [vmem:[#allocation58_spill] sm:$0xff]  ;;  %v10282_v15 = vld [vmem:[#allocation107_spill] sm:$0xff]  ;;  %v10283_v34 = vld [vmem:[#allocation85_spill] sm:$0xff] }
 0x5fe   : > { %v8852_v52 = vsel %vm2480_vm11, %v1468_v0, %v2458_v43  ;;  %v8855_v9 = vperm.slane %v5337_v59, %v6696_v55  ;;  %v5460_v26 = vsel %vm1127_vm1, %v5459_v19, %v8831_v48  ;;  %4684 = vrot.lane.b32.xlu0 %v8685_v53, %s6402_s23  ;;  %v1972_v38 = vsel %vm1445_vm8, %v10281_v23, %v10280_v58  ;;  %v10284_v58 = vld [vmem:[#allocation75_spill] sm:$0xff] }
 0x5ff   : > { %v2408_v32 = vsel %vm1445_vm8, %v10283_v34, %v10282_v15  ;;  %v8868_v0 = vperm.slane %v4867_v61, %v6696_v55  ;;  %v4828_v43 = vpop.permute.xlu1 %4827  ;;  %v8871_v59 = vperm.slane %v5460_v26, %v6721_v14  ;;  %v5433_v37 = vrot.slane %v8827_v62, 4  ;;  %v10285_v26 = vld [vmem:[#allocation77_spill] sm:$0xff] }
 0x600   : > { %v4862_v6 = vshrl.u32 %v4828_v43, 16  ;;  %v4836_v19 = vpop.permute.xlu0 %4835  ;;  %v5161_v53 = vunpack.c.l.b16 %v8836_v42  ;;  %v5007_v18 = vrot.slane %v8730_v21, 4  ;;  %v8877_v2 = vperm.slane %v4870_v44, %v6696_v55 }
 0x601   : > { %v4861_v12 = vpack.i.b16 %v4836_v19, %v4828_v43  ;;  %v4863_v63 = vshrl.u32 %v4836_v19, 16  ;;  %v5610_v61 = vunpack.c.l.b16 %v8871_v59  ;;  %v8882_v23 = vsel %vm1449_vm9, %v1965_v3, %v10284_v58 }
 0x602   : > { %v1981_v15 = vsel %vm1449_vm9, %v1979_v46, %v10285_v26  ;;  %v5434_v34 = vsel %vm1127_vm1, %v5433_v37, %v8855_v9  ;;  %v5332_v36 = vshrl.u32 %v8801_v47, 16  ;;  %v4917_v21 = vrot.slane %v8868_v0, 4 }
 0x603   : > { %v4864_v44 = vpack.i.b16 %v4863_v63, %v4862_v6  ;;  %v8891_v43 = vperm.slane %v4861_v12, %v6696_v55  ;;  %v5611_v19 = vpack.c.b16 %v5610_v61, %v5610_v61  ;;  %v2410_v29 = vsel %vm1449_vm9, %v2408_v32, %v10286_v30  ;;  %v10288_v30 = vld [vmem:[#allocation83_spill] sm:$0xff]  ;;  %v10290_v61 = vld [vmem:[#allocation78_spill] sm:$0xff] }
 0x604   : > { %v5333_v3 = vshrl.u32 %v8683_v13, 16  ;;  %v3945_v58 = vpop.permute.xlu2 %3944  ;;  %v5162_v27 = vpack.c.b16 %v5161_v53, %v5161_v53  ;;  %v5008_v46 = vsel %vm1127_vm1, 0, %v5007_v18  ;;  %v4943_v37 = vrot.slane %v8877_v2, 4 }
 0x605   : > { %v8899_v26 = vperm.slane %v5434_v34, %v6721_v14  ;;  %v4918_v6 = vsel %vm1127_vm1, %v4917_v21, %v8891_v43  ;;  %v8904_v12 = vperm.slane %v4864_v44, %v6696_v55  ;;  %5612 = vrot.lane.b32.xlu1 %v5611_v19, %s6402_s23  ;;  %v1974_v32 = vsel %vm1449_vm9, %v1972_v38, %v10288_v30  ;;  %v10291_v21 = vld [vmem:[#allocation100_spill] sm:$0xff] }
 0x606   : > { %v4971_v53 = vrot.slane %v8679_v54, 4  ;;  %v5334_v63 = vpack.i.b16 %v5333_v3, %v5332_v36  ;;  %v8911_v18 = vperm.slane %v4918_v6, %v6721_v14  ;;  %5163 = vrot.lane.b32.xlu0 %v5162_v27, %s6402_s23  ;;  %v8916_v34 = vsel %vm1452_vm10, %v1981_v15, %v10290_v61  ;;  %v10292_v54 = vld [vmem:[#allocation118_spill] sm:$0xff]  ;;  %v10293_v36 = vld [vmem:[#allocation89_spill] sm:$0xff]  ;;  %v10294_v61 = vld [vmem:[#allocation79_spill] sm:$0xff] }
 0x607   : > { %10287 = vst [vmem:[#allocation32_spill] sm:$0xff] %v8899_v26  ;;  %v2412_v44 = vsel %vm1452_vm10, %v2410_v29, %v10291_v21  ;;  %v4944_v19 = vsel %vm1127_vm1, %v4943_v37, %v8904_v12  ;;  %v8922_v7 = vpop.permute.xlu1 %5299  ;;  %v5156_v38 = vunpack.c.l.b16 %v5008_v46  ;;  %v2436_v3 = vsel %vm1445_vm8, %v10293_v36, %v10292_v54  ;;  %v10295_v21 = vld [vmem:[#allocation84_spill] sm:$0xff] }
 0x608   : > { %10289 = vst [vmem:[#allocation12_spill] sm:$0xff] %v8911_v18  ;;  %v5326_v6 = vshrl.u32 %v8771_v41, 16  ;;  %v5327_v27 = vshrl.u32 %v8922_v7, 16  ;;  %v3481_v30 = vpop.permute.xlu0 %3480  ;;  %v8930_v15 = vperm.slane %v4944_v19, %v6721_v14  ;;  %v1960_v29 = vsel %vm1449_vm9, %v1958_v8, %v10294_v61 }
 0x609   : > { %v1976_v37 = vsel %vm1452_vm10, %v1974_v32, %v10295_v21  ;;  %v4929_v46 = vrot.slane %v8911_v18, 4  ;;  %v5445_v10 = vrot.slane %v8899_v26, 4  ;;  %v4972_v54 = vsel %vm1127_vm1, %v8647_v5, %v4971_v53  ;;  %v10297_v21 = vld [vmem:[#allocation139_spill] sm:$0xff]  ;;  %v10298_v18 = vld [vmem:[#allocation97_spill] sm:$0xff] }
 0x60a   : > { %v8941_v36 = vperm.slane %v5334_v63, %v6696_v55  ;;  %v5328_v33 = vpack.i.b16 %v5327_v27, %v5326_v6  ;;  %v5116_v19 = vunpack.c.l.b16 %v8930_v15  ;;  %v2474_v50 = vrot.slane %v2412_v44, 4 }
 0x60b   : > { %v2438_v8 = vsel %vm1449_vm9, %v2436_v3, %v10296_v60  ;;  %v5157_v61 = vpack.c.b16 %v5156_v38, %v5156_v38  ;;  %v4930_v32 = vsel %vm1127_vm1, 0, %v4929_v46  ;;  %v3082_v26 = vsel %vm1445_vm8, %v10298_v18, %v10297_v21  ;;  %v10299_v18 = vld [vmem:[#allocation114_spill] sm:$0xff]  ;;  %v10300_v46 = vld [vmem:[#allocation140_spill] sm:$0xff] }
 0x60c   : > { %v8951_v22 = vperm.slane %v5328_v33, %v6696_v55  ;;  %v3950_v5 = vpop.permute.xlu2 %3949  ;;  %v5117_v53 = vpack.c.b16 %v5116_v19, %v5116_v19  ;;  %v5471_v63 = vrot.slane %v8871_v59, 4  ;;  %v8955_v6 = vperm.slane %v4972_v54, %v6721_v14 }
 0x60d   : > { %v4010_v60 = vsel %vm1445_vm8, %v8361_v24, %v8833_v20  ;;  %5158 = vrot.lane.b32.xlu1 %v5157_v61, %s6404_s21  ;;  %v5121_v44 = vunpack.c.l.b16 %v4930_v32  ;;  %v5446_v38 = vsel %vm1127_vm1, 0, %v5445_v10  ;;  %v2440_v33 = vsel %vm1452_vm10, %v2438_v8, %v10299_v18  ;;  %v10301_v32 = vld [vmem:[#allocation80_spill] sm:$0xff]  ;;  %v10303_v18 = vld [vmem:[#allocation141_spill] sm:$0xff] }
 0x60e   : > { %v3546_v3 = vsel %vm1445_vm8, %v8296_v28, %v8397_v45  ;;  %v5407_v59 = vrot.slane %v8941_v36, 4  ;;  %v4012_v27 = vsel %vm1449_vm9, %v4010_v60, %v3945_v58  ;;  %5118 = vrot.lane.b32.xlu2 %v5117_v53, %s6402_s23  ;;  %v3084_v24 = vsel %vm1449_vm9, %v3082_v26, %v10300_v46 }
 0x60f   : > { %v3548_v20 = vsel %vm1449_vm9, %v3546_v3, %v3481_v30  ;;  %v4014_v10 = vsel %vm1452_vm10, %v4012_v27, %v3950_v5  ;;  %v3486_v54 = vpop.permute.xlu1 %3485  ;;  %v5122_v19 = vpack.c.b16 %v5121_v44, %v5121_v44  ;;  %v5615_v61 = vunpack.c.l.b16 %v5446_v38  ;;  %v10302_v5 = vld [vmem:[#allocation76_spill] sm:$0xff] }
 0x610   : > { %v5408_v8 = vsel %vm1127_vm1, %v5407_v59, %v8951_v22  ;;  %v3550_v28 = vsel %vm1452_vm10, %v3548_v20, %v3486_v54  ;;  %v8977_v45 = vpop.permute.xlu0 %3490  ;;  %v5472_v58 = vsel %vm1127_vm1, 0, %v5471_v63  ;;  %v1962_v21 = vsel %vm1452_vm10, %v1960_v29, %v10301_v32  ;;  %v10304_v54 = vld [vmem:[#allocation101_spill] sm:$0xff] }
 0x611   : > { %v2462_v26 = vrot.slane %v1976_v37, 6  ;;  %v4036_v53 = vrot.slane %v3550_v28, 6  ;;  %5123 = vrot.lane.b32.xlu0 %v5122_v19, %s6403_s17  ;;  %v4983_v30 = vrot.slane %v8955_v6, 4  ;;  %v8987_v60 = vsel %vm1452_vm10, %v8882_v23, %v10302_v5  ;;  %v10307_v28 = vld [vmem:[#allocation82_spill] sm:$0xff] }
 0x612   : > { %v2478_v44 = vrot.slane %v2440_v33, 4  ;;  %v3086_v38 = vsel %vm1452_vm10, %v3084_v24, %v10303_v18  ;;  %v4052_v3 = vrot.slane %v4014_v10, 4  ;;  %v5620_v59 = vunpack.c.l.b16 %v5472_v58  ;;  %v10309_v58 = vld [vmem:[#allocation86_spill] sm:$0xff] }
 0x613   : > { %v4067_v63 = vsel %vm2480_vm11, %v3086_v38, %v4036_v53  ;;  %v2503_v29 = vsel %vm2497_vm12, %v8852_v52, %v2474_v50  ;;  %v8995_v37 = vperm.slane %v5408_v8, %v6721_v14  ;;  %v2463_v27 = vrot.slane %v8916_v34, 6  ;;  %v10305_v34 = vld [vmem:[#allocation81_spill] sm:$0xff]  ;;  %v10306_v8 = vld [vmem:[#allocation104_spill] sm:$0xff] }
 0x614   : > { %v2460_v46 = vrot.slane %v1962_v21, 6  ;;  %v8998_v20 = vpop.permute.xlu2 %3914  ;;  %v5616_v23 = vpack.c.b16 %v5615_v61, %v5615_v61  ;;  %v4083_v33 = vsel %vm2497_vm12, %v4067_v63, %v4052_v3  ;;  %v2494_v24 = vsel %vm2480_vm11, %v8815_v51, %v2462_v26 }
 0x615   : > { %v5461_v10 = vrot.slane %v8831_v48, 4  ;;  %4689 = vrot.lane.b32.xlu1 %v8687_v11, %s6403_s17  ;;  %v4105_v50 = vsel %vm4092_vm13, %v4083_v33, 0  ;;  %v4984_v52 = vsel %vm1127_vm1, 0, %v4983_v30  ;;  %v2394_v19 = vsel %vm1445_vm8, %v10305_v34, %v10304_v54  ;;  %v10308_v11 = vld [vmem:[#allocation110_spill] sm:$0xff]  ;;  %v10314_v33 = vld [vmem:[#allocation87_spill] sm:$0xff] }
 0x616   : > { %v2401_v61 = vsel %vm1445_vm8, %v10307_v28, %v10306_v8  ;;  %5617 = vrot.lane.b32.xlu2 %v5616_v23, %s6403_s17  ;;  %4194 = vmatpush.bf16.msrb.mxu2 %v4105_v50  ;;  %v4220_v51 = vsel %vm4092_vm13, %v2503_v29, 0  ;;  %v2511_v48 = vsel %vm2497_vm12, %v2494_v24, %v2478_v44  ;;  %v2415_v32 = vsel %vm1445_vm8, %v10309_v58, %v10308_v11  ;;  %v10311_v29 = vld [vmem:[#allocation105_spill] sm:$0xff]  ;;  %v10313_v23 = vld [vmem:[#allocation112_spill] sm:$0xff]  ;;  %v10315_v50 = vld [vmem:[#allocation115_spill] sm:$0xff] }
 0x617   : > { %v5331_v21 = vpack.i.b16 %v8683_v13, %v8801_v47  ;;  %v9022_v26 = vpop.permute.xlu1 %3495  ;;  %v5621_v53 = vpack.c.b16 %v5620_v59, %v5620_v59  ;;  %v5580_v30 = vunpack.c.l.b16 %v8995_v37  ;;  %v2461_v5 = vrot.slane %v8987_v60, 6  ;;  %v10310_v59 = vld [vmem:[#allocation102_spill] sm:$0xff] }
 0x618   : > { %v9028_v18 = vsel %vm2480_vm11, %v8784_v57, %v2463_v27  ;;  %v4945_v44 = vrot.slane %v8904_v12, 4  ;;  %v9031_v38 = vpop.permute.xlu0 %3909  ;;  %v5166_v3 = vunpack.c.l.b16 %v4984_v52  ;;  %v5435_v63 = vrot.slane %v8855_v9, 4  ;;  %v10317_v52 = vld [vmem:[#allocation121_spill] sm:$0xff]  ;;  %v10318_v54 = vld [vmem:[#allocation90_spill] sm:$0xff] }
 0x619   : > { %v5325_v13 = vpack.i.b16 %v8922_v7, %v8771_v41  ;;  %5622 = vrot.lane.b32.xlu0 %v5621_v53, %s6404_s21  ;;  %6157 = vmatmul.msk.bf16.vlgmr.msrb.gmra.mxu2 %vm4088_vm14, %v8722_v25  ;;  %v4228_v47 = vsel %vm4092_vm13, %v2511_v48, 0  ;;  %v5462_v57 = vsel %vm1127_vm1, %v8799_v1, %v5461_v10  ;;  %v9044_v12 = vsel %vm2480_vm11, %v8809_v56, %v2460_v46  ;;  %v10312_v7 = vld [vmem:[#allocation111_spill] sm:$0xff]  ;;  %v10316_v1 = vld [vmem:[#allocation88_spill] sm:$0xff] }
 0x61a   : > { %4265 = vmatpush.bf16.msra.mxu2 %v4220_v51  ;;  %v2396_v9 = vsel %vm1449_vm9, %v2394_v19, %v10310_v59  ;;  %v2403_v41 = vsel %vm1449_vm9, %v2401_v61, %v10311_v29  ;;  %v2417_v27 = vsel %vm1449_vm9, %v2415_v32, %v10312_v7  ;;  %v2422_v24 = vsel %vm1445_vm8, %v10314_v33, %v10313_v23  ;;  %v10319_v51 = vld [vmem:[#allocation96_spill] sm:$0xff] }
 0x61b   : > { %v2429_v10 = vsel %vm1445_vm8, %v10316_v1, %v10315_v50  ;;  %v9059_v56 = vperm.slane %v5331_v21, %v6696_v55  ;;  %v5581_v46 = vpack.c.b16 %v5580_v30, %v5580_v30  ;;  %v2443_v34 = vsel %vm1445_vm8, %v10318_v54, %v10317_v52  ;;  %v10320_v21 = vld [vmem:[#allocation98_spill] sm:$0xff] }
 0x61c   : > { %v9064_v19 = vpop.permute.xlu2 %3924  ;;  %v5167_v8 = vpack.c.b16 %v5166_v3, %v5166_v3  ;;  %v9067_v28 = vperm.slane %v5462_v57, %v6721_v14  ;;  %v4946_v61 = vsel %vm1127_vm1, %v8877_v2, %v4945_v44  ;;  %v2398_v48 = vsel %vm1452_vm10, %v2396_v9, %v10319_v51  ;;  %v10321_v2 = vld [vmem:[#allocation103_spill] sm:$0xff]  ;;  %v10322_v44 = vld [vmem:[#allocation113_spill] sm:$0xff]  ;;  %v10328_v54 = vld [vmem:[#allocation106_spill] sm:$0xff] }
 0x61d   : > { %v3532_v11 = vsel %vm1445_vm8, %v8063_v35, %v8168_v17  ;;  %v5436_v58 = vsel %vm1127_vm1, %v8827_v62, %v5435_v63  ;;  %v9079_v32 = vperm.slane %v5325_v13, %v6696_v55  ;;  %5582 = vrot.lane.b32.xlu1 %v5581_v46, %s6402_s23  ;;  %v9084_v53 = vsel %vm1452_vm10, %v2403_v41, %v10320_v21  ;;  %v10323_v35 = vld [vmem:[#allocation116_spill] sm:$0xff]  ;;  %v10324_v62 = vld [vmem:[#allocation122_spill] sm:$0xff]  ;;  %v10334_v21 = vld [vmem:[#allocation149_spill] sm:$0xff] }
 0x61e   : > { %4317 = vmatpush.bf16.msrb.mxu2 %v4228_v47  ;;  %v9088_v30 = vsel %vm1452_vm10, %v2417_v27, %v10321_v2  ;;  %v2424_v3 = vsel %vm1449_vm9, %v2422_v24, %v10322_v44  ;;  %v2431_v17 = vsel %vm1449_vm9, %v2429_v10, %v10323_v35  ;;  %5168 = vrot.lane.b32.xlu2 %v5167_v8, %s6403_s17  ;;  %v10325_v13 = vld [vmem:[#allocation134_spill] sm:$0xff]  ;;  %v5381_v59 = vrot.slane %v9059_v56, 4  ;;  %v10327_v41 = vld [vmem:[#allocation148_spill] sm:$0xff]  ;;  %v10329_v8 = vld [vmem:[#allocation109_spill] sm:$0xff] }
 0x61f   : > { %v2445_v63 = vsel %vm1449_vm9, %v2443_v34, %v10324_v62  ;;  %v10326_v47 = vld [vmem:[#allocation94_spill] sm:$0xff]  ;;  %v9101_v9 = vpop.permute.xlu1 %3954  ;;  %v9104_v29 = vperm.slane %v4946_v61, %v6721_v14  ;;  %v3534_v7 = vsel %vm1449_vm9, %v3532_v11, %v10327_v41  ;;  %v9109_v27 = vperm.slane %v5436_v58, %v6721_v14  ;;  %v10332_v11 = vld [vmem:[#allocation137_spill] sm:$0xff]  ;;  %v10333_v58 = vld [vmem:[#allocation95_spill] sm:$0xff] }
 0x620   : > { %v3068_v57 = vsel %vm1445_vm8, %v10326_v47, %v10325_v13  ;;  %v3501_v23 = vpop.permute.xlu0 %3500  ;;  %v5625_v33 = vunpack.c.l.b16 %v9067_v28  ;;  %v4955_v24 = vrot.slane %v8930_v15, 4  ;;  %v2472_v50 = vrot.slane %v2398_v48, 4  ;;  %v10330_v15 = vld [vmem:[#allocation117_spill] sm:$0xff] }
 0x621   : > { %v2473_v1 = vrot.slane %v9084_v53, 4  ;;  %v4919_v10 = vrot.slane %v8891_v43, 4  ;;  %v5382_v46 = vsel %vm1127_vm1, %v5381_v59, %v9079_v32  ;;  %4694 = vrot.lane.b32.xlu0 %v8689_v31, %s6404_s21  ;;  %v2475_v52 = vrot.slane %v9088_v30, 4  ;;  %v10331_v43 = vld [vmem:[#allocation135_spill] sm:$0xff] }
 0x622   : > { %v2426_v34 = vsel %vm1452_vm10, %v2424_v3, %v10328_v54  ;;  %v9124_v61 = vsel %vm1452_vm10, %v2431_v17, %v10329_v8  ;;  %v9128_v51 = vsel %vm1452_vm10, %v2445_v63, %v10330_v15  ;;  %v3070_v48 = vsel %vm1449_vm9, %v3068_v57, %v10331_v43  ;;  %v10337_v54 = vld [vmem:[#allocation151_spill] sm:$0xff] }
 0x623   : > { %v3075_v31 = vsel %vm1445_vm8, %v10333_v58, %v10332_v11  ;;  %v3536_v2 = vsel %vm1452_vm10, %v3534_v7, %v10334_v21  ;;  %v5131_v44 = vunpack.c.l.b16 %v9104_v29  ;;  %v9139_v3 = vperm.slane %v5382_v46, %v6721_v14  ;;  %v10335_v7 = vld [vmem:[#allocation133_spill] sm:$0xff] }
 0x624   : > { %v9141_v35 = vpop.permute.xlu2 %3934  ;;  %v5626_v17 = vpack.c.b16 %v5625_v33, %v5625_v33  ;;  %v4956_v62 = vsel %vm1127_vm1, 0, %v4955_v24  ;;  %v5447_v63 = vrot.slane %v9109_v27, 4  ;;  %v2476_v13 = vrot.slane %v2426_v34, 4  ;;  %v10336_v24 = vld [vmem:[#allocation138_spill] sm:$0xff]  ;;  %v10338_v34 = vld [vmem:[#allocation147_spill] sm:$0xff] }
 0x625   : > { %v2477_v47 = vrot.slane %v9124_v61, 4  ;;  %v4920_v57 = vsel %vm1127_vm1, %v8868_v0, %v4919_v10  ;;  %v3996_v59 = vsel %vm1445_vm8, %v8392_v4, %v9031_v38  ;;  %4654 = vrot.lane.b32.xlu1 %v8669_v39, %s6402_s23  ;;  %v2479_v41 = vrot.slane %v9128_v51, 4 }
 0x626   : > { %v3072_v33 = vsel %vm1452_vm10, %v3070_v48, %v10335_v7  ;;  %v3077_v46 = vsel %vm1449_vm9, %v3075_v31, %v10336_v24  ;;  %v3539_v8 = vsel %vm1445_vm8, %v10338_v34, %v10337_v54  ;;  %5627 = vrot.lane.b32.xlu2 %v5626_v17, %s6402_s23  ;;  %v4034_v0 = vrot.slane %v3536_v2, 6  ;;  %v10339_v31 = vld [vmem:[#allocation150_spill] sm:$0xff]  ;;  %v10342_v24 = vld [vmem:[#allocation136_spill] sm:$0xff] }
 0x627   : > { %v3960_v10 = vpop.permute.xlu1 %3959  ;;  %v5132_v4 = vpack.c.b16 %v5131_v44, %v5131_v44  ;;  %v5126_v38 = vunpack.c.l.b16 %v4956_v62  ;;  %v2499_v39 = vsel %vm2497_vm12, %v8846_v40, %v2472_v50  ;;  %v9165_v15 = vperm.slane %v4920_v57, %v6721_v14  ;;  %v10340_v44 = vld [vmem:[#allocation142_spill] sm:$0xff] }
 0x628   : > { %v3998_v43 = vsel %vm1449_vm9, %v3996_v59, %v8998_v20  ;;  %v3920_v48 = vpop.permute.xlu0 %3919  ;;  %v5448_v11 = vsel %vm1127_vm1, 0, %v5447_v63  ;;  %v5393_v58 = vrot.slane %v9139_v3, 4  ;;  %v3541_v21 = vsel %vm1449_vm9, %v3539_v8, %v10339_v31  ;;  %v10341_v20 = vld [vmem:[#allocation99_spill] sm:$0xff] }
 0x629   : > { %v3553_v2 = vsel %vm1445_vm8, %v8345_v49, %v8977_v45  ;;  %5133 = vrot.lane.b32.xlu0 %v5132_v4, %s6402_s23  ;;  %v4000_v40 = vsel %vm1452_vm10, %v3998_v43, %v3920_v48  ;;  %v5009_v50 = vrot.slane %v8836_v42, 4  ;;  %v3089_v17 = vsel %vm1445_vm8, %v10341_v20, %v10340_v44 }
 0x62a   : > { %v3543_v62 = vsel %vm1452_vm10, %v3541_v21, %v8419_v16  ;;  %v3555_v63 = vsel %vm1449_vm9, %v3553_v2, %v9022_v26  ;;  %v4050_v57 = vrot.slane %v4000_v40, 4  ;;  %v5127_v49 = vpack.c.b16 %v5126_v38, %v5126_v38  ;;  %v10343_v16 = vld [vmem:[#allocation143_spill] sm:$0xff]  ;;  %v10346_v40 = vld [vmem:[#allocation130_spill] sm:$0xff] }
 0x62b   : > { %v3557_v59 = vsel %vm1452_vm10, %v3555_v63, %v3501_v23  ;;  %v4063_v45 = vsel %vm2480_vm11, %v3072_v33, %v4034_v0  ;;  %v5630_v7 = vunpack.c.l.b16 %v5448_v11  ;;  %v3079_v42 = vsel %vm1452_vm10, %v3077_v46, %v10342_v24  ;;  %v10344_v46 = vld [vmem:[#allocation152_spill] sm:$0xff]  ;;  %v10345_v11 = vld [vmem:[#allocation126_spill] sm:$0xff] }
 0x62c   : > { %v4079_v54 = vsel %vm2497_vm12, %v4063_v45, %v4050_v57  ;;  %v5394_v34 = vsel %vm1127_vm1, 0, %v5393_v58  ;;  %v4931_v8 = vrot.slane %v9165_v15, 4  ;;  %v3091_v4 = vsel %vm1449_vm9, %v3089_v17, %v10343_v16  ;;  %v9202_v48 = vpop.permute.xlu2 %5313 }
 0x62d   : > { %5128 = vrot.lane.b32.xlu1 %v5127_v49, %s6404_s21  ;;  %v4101_v26 = vsel %vm4092_vm13, %v4079_v54, 0  ;;  %v4216_v23 = vsel %vm4092_vm13, %v2499_v39, 0  ;;  %v5010_v33 = vsel %vm1127_vm1, 0, %v5009_v50  ;;  %v4035_v0 = vrot.slane %v3543_v62, 6  ;;  %v10347_v50 = vld [vmem:[#allocation153_spill] sm:$0xff] }
 0x62e   : > { %v4017_v38 = vsel %vm1445_vm8, %v10344_v46, %v9101_v9  ;;  %v4037_v43 = vrot.slane %v3557_v59, 6  ;;  %4699 = vrot.lane.b32.xlu2 %v10345_v11, %s6402_s23  ;;  %4168 = vmatpush.bf16.msrb.mxu0 %v4101_v26  ;;  %v2507_v58 = vsel %vm2497_vm12, %v9044_v12, %v2476_v13  ;;  %v5631_v21 = vpack.c.b16 %v5630_v7, %v5630_v7  ;;  %v10348_v13 = vld [vmem:[#allocation144_spill] sm:$0xff]  ;;  %v10349_v59 = vld [vmem:[#allocation123_spill] sm:$0xff]  ;;  %v10350_v26 = vld [vmem:[#allocation42_spill] sm:$0xff] }
 0x62f   : > { %v4019_v31 = vsel %vm1449_vm9, %v4017_v38, %v3960_v10  ;;  %v3965_v39 = vpop.permute.xlu1 %3964  ;;  %v5585_v2 = vunpack.c.l.b16 %v5394_v34  ;;  %v2501_v9 = vsel %vm2497_vm12, %v10346_v40, %v2473_v1  ;;  %v4003_v44 = vsel %vm1445_vm8, %v10347_v50, %v9064_v19  ;;  %v10353_v11 = vld [vmem:[#allocation93_spill] sm:$0xff] }
 0x630   : > { %v4021_v20 = vsel %vm1452_vm10, %v4019_v31, %v3965_v39  ;;  %v3930_v17 = vpop.permute.xlu0 %3929  ;;  %v5171_v62 = vunpack.c.l.b16 %v5010_v33  ;;  %v4932_v12 = vsel %vm1127_vm1, 0, %v4931_v8  ;;  %v3093_v10 = vsel %vm1452_vm10, %v3091_v4, %v10348_v13  ;;  %v10354_v39 = vld [vmem:[#allocation128_spill] sm:$0xff] }
 0x631   : > { %v4053_v63 = vrot.slane %v4021_v20, 4  ;;  %5632 = vrot.lane.b32.xlu0 %v5631_v21, %s6403_s17  ;;  %v4005_v53 = vsel %vm1449_vm9, %v4003_v44, %v3930_v17  ;;  %6155 = vmatmul.msk.bf16.vlgmr.msrb.gmra.mxu0 %vm4088_vm14, %v8722_v25  ;;  %v4224_v1 = vsel %vm4092_vm13, %v2507_v58, 0  ;;  %v4069_v57 = vsel %vm2480_vm11, %v3093_v10, %v4037_v43  ;;  %v10356_v17 = vld [vmem:[#allocation129_spill] sm:$0xff] }
 0x632   : > { %4239 = vmatpush.bf16.msra.mxu0 %v4216_v23  ;;  %v4007_v19 = vsel %vm1452_vm10, %v4005_v53, %v9141_v35  ;;  %v2505_v49 = vsel %vm2497_vm12, %v10349_v59, %v2475_v52  ;;  %v4065_v45 = vsel %vm2480_vm11, %v3079_v42, %v4035_v0  ;;  %v5586_v24 = vpack.c.b16 %v5585_v2, %v5585_v2  ;;  %v10351_v23 = vld [vmem:[#allocation127_spill] sm:$0xff] }
 0x633   : > { %v4051_v7 = vrot.slane %v4007_v19, 4  ;;  %v4085_v54 = vsel %vm2497_vm12, %v4069_v57, %v4053_v63  ;;  %v5136_v34 = vunpack.c.l.b16 %v4932_v12  ;;  %v5409_v8 = vrot.slane %v8951_v22, 4  ;;  %v10357_v12 = vld [vmem:[#allocation124_spill] sm:$0xff] }
 0x634   : > { %v4107_v16 = vsel %vm4092_vm13, %v4085_v54, 0  ;;  %v5172_v35 = vpack.c.b16 %v5171_v62, %v5171_v62  ;;  %v5473_v4 = vrot.slane %v9067_v28, 4  ;;  %v1489_v30 = vsel %vm1452_vm10, %v10351_v23, %v10350_v26  ;;  %v9259_v60 = vpop.permute.xlu2 %4841 }
 0x635   : > { %5587 = vrot.lane.b32.xlu1 %v5586_v24, %s6403_s17  ;;  %4207 = vmatpush.bf16.msrb.mxu3 %v4107_v16  ;;  %v4222_v52 = vsel %vm4092_vm13, %v2505_v49, 0  ;;  %v4081_v42 = vsel %vm2497_vm12, %v4065_v45, %v4051_v7  ;;  %v2513_v22 = vsel %vm2497_vm12, %v9028_v18, %v2479_v41  ;;  %v2492_v28 = vsel %vm2480_vm11, %v1489_v30, %v2461_v5  ;;  %v10352_v18 = vld [vmem:[#allocation132_spill] sm:$0xff]  ;;  %v10358_v45 = vld [vmem:[#allocation146_spill] sm:$0xff]  ;;  %v10359_v24 = vld [vmem:[#allocation145_spill] sm:$0xff] }
 0x636   : > { %4291 = vmatpush.bf16.msrb.mxu0 %v4224_v1  ;;  %5173 = vrot.lane.b32.xlu2 %v5172_v35, %s6404_s21  ;;  %v4103_v33 = vsel %vm4092_vm13, %v4081_v42, 0  ;;  %v5137_v46 = vpack.c.b16 %v5136_v34, %v5136_v34  ;;  %v4218_v38 = vsel %vm4092_vm13, %v2501_v9, 0  ;;  %v2509_v51 = vsel %vm2497_vm12, %v2492_v28, %v2477_v47  ;;  %v10360_v34 = vld [vmem:[#allocation26_spill] sm:$0xff] }
 0x637   : > { %v9252_v0 = vpop.permute.xlu1 %4849  ;;  %4181 = vmatpush.bf16.msrb.mxu1 %v4103_v33  ;;  %v4702_v41 = vunpack.c.l.b16 %v10352_v18  ;;  %v4230_v43 = vsel %vm4092_vm13, %v2513_v22, 0  ;;  %v4657_v58 = vunpack.c.l.b16 %v10353_v11  ;;  %v5474_v31 = vsel %vm1127_vm1, 0, %v5473_v4  ;;  %v10361_v4 = vld [vmem:[#allocation22_spill] sm:$0xff] }
 0x638   : > { %v9261_v5 = vpop.permute.xlu0 %4857  ;;  %6158 = vmatmul.msk.bf16.vlgmr.msrb.gmra.mxu3 %vm4088_vm14, %v8722_v25  ;;  %v5410_v61 = vsel %vm1127_vm1, %v8941_v36, %v5409_v8  ;;  %v5419_v47 = vrot.slane %v8995_v37, 4  ;;  %v4455_v21 = vrot.slane %v10354_v39, 4  ;;  %v4226_v2 = vsel %vm4092_vm13, %v2509_v51, 0  ;;  %v10355_v36 = vld [vmem:[#allocation120_spill] sm:$0xff] }
 0x639   : > { %4278 = vmatpush.bf16.msra.mxu3 %v4222_v52  ;;  %5138 = vrot.lane.b32.xlu0 %v5137_v46, %s6403_s17  ;;  %v4703_v40 = vpack.c.b16 %v4702_v41, %v4702_v41  ;;  %v5635_v9 = vunpack.c.l.b16 %v5474_v31  ;;  %v9277_v50 = vperm.slane %v5410_v61, %v6721_v14  ;;  %v4658_v44 = vpack.c.b16 %v4657_v58, %v4657_v58 }
 0x63a   : > { %6156 = vmatmul.msk.bf16.vlgmr.msrb.gmra.mxu1 %vm4088_vm14, %v8722_v25  ;;  %v4545_v20 = vrot.slane %v10355_v36, 4  ;;  %v4456_v62 = vsel %vm1127_vm1, %v10356_v17, %v4455_v21  ;;  %v5383_v37 = vrot.slane %v9079_v32, 4  ;;  %v5420_v25 = vsel %vm1127_vm1, 0, %v5419_v47  ;;  %v10363_v36 = vld [vmem:[#allocation19_spill] sm:$0xff] }
 0x63b   : > { %4252 = vmatpush.bf16.msra.mxu1 %v4218_v38  ;;  %v4481_v13 = vrot.slane %v10357_v12, 4  ;;  %v4904_v10 = vshrl.u32 %v9252_v0, 16  ;;  %v4905_v63 = vshrl.u32 %v9261_v5, 16  ;;  %v5636_v1 = vpack.c.b16 %v5635_v9, %v5635_v9 }
 0x63c   : > { %v5595_v19 = vunpack.c.l.b16 %v9277_v50  ;;  %v9293_v57 = vperm.slane %v4456_v62, %v6721_v14  ;;  %v5590_v59 = vunpack.c.l.b16 %v5420_v25  ;;  %v4546_v49 = vsel %vm1127_vm1, 0, %v4545_v20  ;;  %v9305_v52 = vpop.permute.xlu2 %5297 }
 0x63d   : > { %4330 = vmatpush.bf16.msrb.mxu3 %v4230_v43  ;;  %4704 = vrot.lane.b32.xlu1 %v4703_v40, %s6403_s17  ;;  %v4482_v7 = vsel %vm1127_vm1, %v10358_v45, %v4481_v13  ;;  %v4491_v54 = vrot.slane %v10359_v24, 4  ;;  %v4441_v8 = vshrl.u32 %v10360_v34, 16  ;;  %v5384_v16 = vsel %vm1127_vm1, %v9059_v56, %v5383_v37  ;;  %v10362_v43 = vld [vmem:[#allocation20_spill] sm:$0xff] }
 0x63e   : > { %4659 = vrot.lane.b32.xlu2 %v4658_v44, %s6403_s17  ;;  %v4440_v26 = vshrl.u32 %v10361_v4, 16  ;;  %v4899_v23 = vshrl.u32 %v9259_v60, 16  ;;  %v4906_v30 = vpack.i.b16 %v4905_v63, %v4904_v10  ;;  %v5596_v42 = vpack.c.b16 %v5595_v19, %v5595_v19 }
 0x63f   : > { %4304 = vmatpush.bf16.msrb.mxu1 %v4226_v2  ;;  %v9289_v53 = vpop.permute.xlu1 %5321  ;;  %v4707_v22 = vunpack.c.l.b16 %v4546_v49  ;;  %v4490_v28 = vperm.slane %v4482_v7, %v6721_v14  ;;  %v4467_v33 = vrot.slane %v9293_v57, 4  ;;  %v9310_v46 = vperm.slane %v5384_v16, %v6721_v14 }
 0x640   : > { %v4834_v32 = vpop.permute.xlu0 %4833  ;;  %v5591_v38 = vpack.c.b16 %v5590_v59, %v5590_v59  ;;  %v4492_v51 = vsel %vm1127_vm1, 0, %v4491_v54  ;;  %v4442_v18 = vpack.i.b16 %v4441_v8, %v4440_v26  ;;  %v9315_v41 = vperm.slane %v4906_v30, %v6696_v55 }
 0x641   : > { %5637 = vrot.lane.b32.xlu0 %v5636_v1, %s6404_s21  ;;  %v4898_v35 = vshrl.u32 %v4834_v32, 16  ;;  %v4435_v11 = vshrl.u32 %v10362_v43, 16  ;;  %v4708_v31 = vpack.c.b16 %v4707_v22, %v4707_v22  ;;  %v4667_v61 = vunpack.c.l.b16 %v4490_v28 }
 0x642   : > { %v4662_v47 = vunpack.c.l.b16 %v4492_v51  ;;  %v4903_v39 = vpack.i.b16 %v9261_v5, %v9252_v0  ;;  %v4468_v40 = vsel %vm1127_vm1, 0, %v4467_v33  ;;  %v5395_v9 = vrot.slane %v9310_v46, 4 }
 0x643   : > { %v4900_v56 = vpack.i.b16 %v4899_v23, %v4898_v35  ;;  %v9331_v44 = vperm.slane %v4442_v18, %v6696_v55  ;;  %v4434_v20 = vshrl.u32 %v10363_v36, 16  ;;  %v4957_v17 = vrot.slane %v9104_v29, 4 }
 0x644   : > { %v5099_v0 = vrot.slane %v9315_v41, 4  ;;  %v5369_v5 = vshrl.u32 %v9289_v53, 16  ;;  %v4897_v62 = vpack.i.b16 %v9259_v60, %v4834_v32  ;;  %v4668_v25 = vpack.c.b16 %v4667_v61, %v4667_v61  ;;  %v9345_v19 = vpop.permute.xlu2 %5319 }
 0x645   : > { %5597 = vrot.lane.b32.xlu1 %v5596_v42, %s6402_s23  ;;  %v9324_v21 = vperm.slane %v4900_v56, %v6696_v55  ;;  %v4436_v37 = vpack.i.b16 %v4435_v11, %v4434_v20  ;;  %v4663_v12 = vpack.c.b16 %v4662_v47, %v4662_v47  ;;  %v4672_v13 = vunpack.c.l.b16 %v4468_v40 }
 0x646   : > { %5592 = vrot.lane.b32.xlu2 %v5591_v38, %s6404_s21  ;;  %v5368_v10 = vshrl.u32 %v9202_v48, 16  ;;  %v9341_v63 = vperm.slane %v4903_v39, %v6696_v55  ;;  %v5396_v29 = vsel %vm1127_vm1, 0, %v5395_v9  ;;  %v4635_v59 = vrot.slane %v9331_v44, 4 }
 0x647   : > { %v9319_v58 = vpop.permute.xlu1 %4847  ;;  %v5100_v1 = vsel %vm1127_vm1, %v5099_v0, %v9324_v21  ;;  %v4958_v60 = vsel %vm1127_vm1, 0, %v4957_v17  ;;  %v4493_v32 = vrot.slane %v4490_v28, 4  ;;  %v9352_v45 = vperm.slane %v4897_v62, %v6696_v55 }
 0x648   : > { %v9326_v2 = vpop.permute.xlu0 %4855  ;;  %v5370_v49 = vpack.i.b16 %v5369_v5, %v5368_v10  ;;  %v9356_v7 = vperm.slane %v4436_v37, %v6696_v55  ;;  %v4673_v54 = vpack.c.b16 %v4672_v13, %v4672_v13  ;;  %v5600_v8 = vunpack.c.l.b16 %v5396_v29 }
 0x649   : > { %4709 = vrot.lane.b32.xlu0 %v4708_v31, %s6404_s21  ;;  %v9361_v16 = vperm.slane %v5100_v1, %v6721_v14  ;;  %v5073_v35 = vrot.slane %v9341_v63, 4  ;;  %v5362_v26 = vshrl.u32 %v9305_v52, 16  ;;  %v5141_v42 = vunpack.c.l.b16 %v4958_v60 }
 0x64a   : > { %v4439_v22 = vpack.i.b16 %v10360_v34, %v10361_v4  ;;  %v4494_v28 = vsel %vm1127_vm1, 0, %v4493_v32  ;;  %v5421_v33 = vrot.slane %v9277_v50, 4  ;;  %v4636_v56 = vsel %vm1127_vm1, %v4635_v59, %v9356_v7 }
 0x64b   : > { %v9376_v38 = vperm.slane %v5370_v49, %v6696_v55  ;;  %v5074_v51 = vsel %vm1127_vm1, %v5073_v35, %v9352_v45  ;;  %v4891_v18 = vpack.i.b16 %v9326_v2, %v9319_v58  ;;  %v4892_v34 = vshrl.u32 %v9319_v58, 16 }
 0x64c   : > { %v4893_v4 = vshrl.u32 %v9326_v2, 16  ;;  %v5601_v31 = vpack.c.b16 %v5600_v8, %v5600_v8  ;;  %v5206_v50 = vunpack.c.l.b16 %v9361_v16  ;;  %v5142_v47 = vpack.c.b16 %v5141_v42, %v5141_v42  ;;  %v9400_v20 = vpop.permute.xlu2 %5295 }
 0x64d   : > { %4669 = vrot.lane.b32.xlu1 %v4668_v25, %s6402_s23  ;;  %v9389_v39 = vperm.slane %v4439_v22, %v6696_v55  ;;  %v9392_v40 = vperm.slane %v5074_v51, %v6721_v14  ;;  %v5422_v9 = vsel %vm1127_vm1, 0, %v5421_v33  ;;  %v5563_v58 = vrot.slane %v9376_v38, 4 }
 0x64e   : > { %4664 = vrot.lane.b32.xlu2 %v4663_v12, %s6404_s21  ;;  %v9398_v2 = vperm.slane %v4891_v18, %v6696_v55  ;;  %v4677_v17 = vunpack.c.l.b16 %v4494_v28  ;;  %v9404_v0 = vperm.slane %v4636_v56, %v6721_v14  ;;  %v4433_v5 = vpack.i.b16 %v10362_v43, %v10363_v36 }
 0x64f   : > { %v9358_v24 = vpop.permute.xlu1 %5305  ;;  %v5367_v62 = vpack.i.b16 %v9289_v53, %v9202_v48  ;;  %v4894_v37 = vpack.i.b16 %v4893_v4, %v4892_v34  ;;  %v5207_v12 = vpack.c.b16 %v5206_v50, %v5206_v50  ;;  %v5101_v13 = vrot.slane %v9324_v21, 4 }
 0x650   : > { %v5363_v23 = vshrl.u32 %v9358_v24, 16  ;;  %v9366_v30 = vpop.permute.xlu0 %5311  ;;  %v5605_v59 = vunpack.c.l.b16 %v5422_v9  ;;  %v4609_v60 = vrot.slane %v9389_v39, 4  ;;  %v5085_v36 = vrot.slane %v9392_v40, 4 }
 0x651   : > { %4674 = vrot.lane.b32.xlu0 %v4673_v54, %s6403_s17  ;;  %v5021_v48 = vrot.slane %v9398_v2, 4  ;;  %v5361_v53 = vpack.i.b16 %v9358_v24, %v9305_v52  ;;  %v4678_v21 = vpack.c.b16 %v4677_v17, %v4677_v17  ;;  %v4742_v49 = vunpack.c.l.b16 %v9404_v0 }
 0x652   : > { %v5364_v11 = vpack.i.b16 %v5363_v23, %v5362_v26  ;;  %v9421_v54 = vperm.slane %v4894_v37, %v6696_v55  ;;  %v9430_v23 = vperm.slane %v4433_v5, %v6696_v55  ;;  %v9433_v42 = vperm.slane %v5367_v62, %v6696_v55 }
 0x653   : > { %v5606_v52 = vpack.c.b16 %v5605_v59, %v5605_v59  ;;  %v5102_v24 = vsel %vm1127_vm1, %v9315_v41, %v5101_v13  ;;  %v5086_v33 = vsel %vm1127_vm1, 0, %v5085_v36  ;;  %v9445_v56 = vperm.slane %v5361_v53, %v6696_v55 }
 0x654   : > { %v9386_v61 = vperm.slane %v5364_v11, %v6696_v55  ;;  %v4743_v51 = vpack.c.b16 %v4742_v49, %v4742_v49  ;;  %v4610_v18 = vsel %vm1127_vm1, %v4609_v60, %v9430_v23  ;;  %v5047_v41 = vrot.slane %v9421_v54, 4  ;;  %v9457_v50 = vpop.permute.xlu2 %5153 }
 0x655   : > { %5602 = vrot.lane.b32.xlu1 %v5601_v31, %s6403_s17  ;;  %v9453_v34 = vperm.slane %v5102_v24, %v6721_v14  ;;  %v5111_v4 = vrot.slane %v9361_v16, 4  ;;  %v5537_v31 = vrot.slane %v9433_v42, 4  ;;  %v5211_v9 = vunpack.c.l.b16 %v5086_v33 }
 0x656   : > { %5143 = vrot.lane.b32.xlu2 %v5142_v47, %s6404_s21  ;;  %v5564_v10 = vsel %vm1127_vm1, %v5563_v58, %v9386_v61  ;;  %v5356_v16 = vshrl.u32 %v9366_v30, 16  ;;  %v9471_v62 = vperm.slane %v4610_v18, %v6721_v14  ;;  %v5357_v37 = vshrl.u32 %v9345_v19, 16 }
 0x657   : > { %v4832_v25 = vpop.permute.xlu1 %4831  ;;  %v9427_v26 = vperm.slane %v5564_v10, %v6721_v14  ;;  %v5538_v5 = vsel %vm1127_vm1, %v5537_v31, %v9445_v56  ;;  %v5112_v13 = vsel %vm1127_vm1, 0, %v5111_v4 }
 0x658   : > { %v4886_v1 = vshrl.u32 %v4832_v25, 16  ;;  %v4840_v29 = vpop.permute.xlu0 %4839  ;;  %v9482_v60 = vperm.slane %v5538_v5, %v6721_v14  ;;  %v5358_v36 = vpack.i.b16 %v5357_v37, %v5356_v16  ;;  %v5216_v49 = vunpack.c.l.b16 %v5112_v13  ;;  %v10366_v13 = vld [vmem:[#allocation28_spill] sm:$0xff] }
 0x659   : > { %5208 = vrot.lane.b32.xlu0 %v5207_v12, %s6402_s23  ;;  %v4885_v32 = vpack.i.b16 %v4840_v29, %v4832_v25  ;;  %v4887_v43 = vshrl.u32 %v4840_v29, 16  ;;  %v5670_v11 = vunpack.c.l.b16 %v9427_v26  ;;  %v5221_v12 = vunpack.c.l.b16 %v9453_v34 }
 0x65a   : > { %v9502_v4 = vperm.slane %v5358_v36, %v6696_v55 }
 0x65b   : > { %v4888_v8 = vpack.i.b16 %v4887_v43, %v4886_v1  ;;  %v9424_v35 = vperm.slane %v4885_v32, %v6696_v55  ;;  %v5671_v25 = vpack.c.b16 %v5670_v11, %v5670_v11  ;;  %v5212_v1 = vpack.c.b16 %v5211_v9, %v5211_v9 }
 0x65c   : > { %v5075_v32 = vrot.slane %v9352_v45, 4  ;;  %v5350_v43 = vshrl.u32 %v9400_v20, 16  ;;  %v4621_v45 = vrot.slane %v9471_v62, 4  ;;  %v5217_v9 = vpack.c.b16 %v5216_v49, %v5216_v49 }
 0x65d   : > { %v5022_v22 = vsel %vm1127_vm1, %v5021_v48, %v9424_v35  ;;  %v9440_v28 = vperm.slane %v4888_v8, %v6696_v55  ;;  %4679 = vrot.lane.b32.xlu1 %v4678_v21, %s6404_s21  ;;  %v10364_v48 = vld [vmem:[#allocation27_spill] sm:$0xff]  ;;  %v5222_v21 = vpack.c.b16 %v5221_v12, %v5221_v12 }
 0x65e   : > { %5607 = vrot.lane.b32.xlu2 %v5606_v52, %s6404_s21  ;;  %v9460_v47 = vperm.slane %v5022_v22, %v6721_v14  ;;  %v4429_v53 = vshrl.u32 %v10364_v48, 16  ;;  %v5076_v11 = vsel %vm1127_vm1, %v9341_v63, %v5075_v32  ;;  %v4622_v37 = vsel %vm1127_vm1, 0, %v4621_v45 }
 0x65f   : > { %v5048_v58 = vsel %vm1127_vm1, %v5047_v41, %v9440_v28  ;;  %v9464_v17 = vpop.permute.xlu1 %5303  ;;  %v5549_v41 = vrot.slane %v9482_v60, 4  ;;  %v9510_v12 = vperm.slane %v5076_v11, %v6721_v14  ;;  %v4747_v36 = vunpack.c.l.b16 %v4622_v37 }
 0x660   : > { %v5351_v10 = vshrl.u32 %v9464_v17, 16  ;;  %v9478_v29 = vperm.slane %v5048_v58, %v6721_v14  ;;  %v5033_v59 = vrot.slane %v9460_v47, 4 }
 0x661   : > { %4744 = vrot.lane.b32.xlu0 %v4743_v51, %s6402_s23  ;;  %v10365_v51 = vld [vmem:[#allocation24_spill] sm:$0xff]  ;;  %v5550_v63 = vsel %vm1127_vm1, 0, %v5549_v41 }
 0x662   : > { %v5352_v8 = vpack.i.b16 %v5351_v10, %v5350_v43  ;;  %v5176_v22 = vunpack.c.l.b16 %v9478_v29  ;;  %v5034_v33 = vsel %vm1127_vm1, 0, %v5033_v59  ;;  %v4428_v18 = vshrl.u32 %v10365_v51, 16  ;;  %v10367_v59 = vld [vmem:[#allocation25_spill] sm:$0xff] }
 0x663   : > { %v5181_v58 = vunpack.c.l.b16 %v5034_v33  ;;  %v4423_v10 = vshrl.u32 %v10366_v13, 16  ;;  %v4422_v32 = vshrl.u32 %v10367_v59, 16  ;;  %v5087_v33 = vrot.slane %v9510_v12, 4 }
 0x664   : > { %v4430_v31 = vpack.i.b16 %v4429_v53, %v4428_v18  ;;  %v9505_v5 = vperm.slane %v5352_v8, %v6696_v55  ;;  %v5177_v16 = vpack.c.b16 %v5176_v22, %v5176_v22  ;;  %v5675_v8 = vunpack.c.l.b16 %v5550_v63 }
 0x665   : > { %5672 = vrot.lane.b32.xlu1 %v5671_v25, %s6402_s23  ;;  %v5575_v25 = vrot.slane %v9427_v26, 4  ;;  %v5182_v43 = vpack.c.b16 %v5181_v58, %v5181_v58  ;;  %v4424_v45 = vpack.i.b16 %v4423_v10, %v4422_v32  ;;  %v4748_v18 = vpack.c.b16 %v4747_v36, %v4747_v36 }
 0x666   : > { %5213 = vrot.lane.b32.xlu2 %v5212_v1, %s6403_s17  ;;  %v5511_v1 = vrot.slane %v9502_v4, 4  ;;  %v9519_v53 = vperm.slane %v4430_v31, %v6696_v55  ;;  %v4647_v58 = vrot.slane %v9404_v0, 4  ;;  %v5088_v37 = vsel %vm1127_vm1, 0, %v5087_v33 }
 0x667   : > { %v5576_v22 = vsel %vm1127_vm1, 0, %v5575_v25  ;;  %v9538_v25 = vld [vmem:[#allocation5] sm:$0xf]  ;;  %v9541_v63 = vperm.slane %v4424_v45, %v6696_v55  ;;  %v5355_v10 = vpack.i.b16 %v9345_v19, %v9366_v30  ;;  %v5049_v32 = vrot.slane %v9440_v28, 4 }
 0x668   : > { %v9489_v52 = vpop.permute.xlu2 %5118  ;;  %v9491_v24 = vpop.permute.xlu0 %5148  ;;  %v5512_v26 = vsel %vm1127_vm1, %v5511_v1, %v9505_v5  ;;  %v5680_v41 = vunpack.c.l.b16 %v5576_v22  ;;  %v4583_v31 = vrot.slane %v9519_v53, 4  ;;  %6161 = vmatmul.msk.bf16.vlgmr.msra.gmra.mxu2 %vm4088_vm14, %v9538_v25  ;;  %6159 = vmatmul.msk.bf16.vlgmr.msra.gmra.mxu0 %vm4088_vm14, %v9538_v25  ;;  %v5226_v36 = vunpack.c.l.b16 %v5088_v37 }
 0x669   : > { %5223 = vrot.lane.b32.xlu0 %v5222_v21, %s6402_s23  ;;  %v9531_v11 = vperm.slane %v5512_v26, %v6721_v14  ;;  %6162 = vmatmul.msk.bf16.vlgmr.msra.gmra.mxu3 %vm4088_vm14, %v9538_v25  ;;  %v4648_v26 = vsel %vm1127_vm1, 0, %v4647_v58  ;;  %v5539_v30 = vrot.slane %v9445_v56, 4  ;;  %v9572_v33 = vperm.slane %v5355_v10, %v6696_v55 }
 0x66a   : > { %v4584_v19 = vsel %vm1127_vm1, %v4583_v31, %v9541_v63  ;;  %6160 = vmatmul.msk.bf16.vlgmr.msra.gmra.mxu1 %vm4088_vm14, %v9538_v25  ;;  %v5227_v31 = vpack.c.b16 %v5226_v36, %v5226_v36  ;;  %v4637_v58 = vrot.slane %v9356_v7, 4  ;;  %v5059_v7 = vrot.slane %v9478_v29, 4 }
 0x66b   : > { %v5640_v1 = vunpack.c.l.b16 %v9531_v11 }
 0x66d   : > { %5218 = vrot.lane.b32.xlu1 %v5217_v9, %s6404_s21  ;;  %v5676_v9 = vpack.c.b16 %v5675_v8, %v5675_v8  ;;  %v5349_v8 = vpack.i.b16 %v9464_v17, %v9400_v20  ;;  %v5641_v45 = vpack.c.b16 %v5640_v1, %v5640_v1  ;;  %v5050_v20 = vsel %vm1127_vm1, %v9421_v54, %v5049_v32 }
 0x66e   : > { %5178 = vrot.lane.b32.xlu2 %v5177_v16, %s6402_s23  ;;  %v5565_v16 = vrot.slane %v9386_v61, 4  ;;  %v5681_v61 = vpack.c.b16 %v5680_v41, %v5680_v41  ;;  %v9575_v41 = vperm.slane %v4584_v19, %v6721_v14  ;;  %v5540_v17 = vsel %vm1127_vm1, %v9433_v42, %v5539_v30 }
 0x66f   : > { %v9597_v42 = vperm.slane %v5050_v20, %v6721_v14  ;;  %v5023_v32 = vrot.slane %v9424_v35, 4  ;;  %v4421_v19 = vpack.i.b16 %v10366_v13, %v10367_v59 }
 0x670   : > { %v9523_v21 = vpop.permute.xlu2 %5617  ;;  %v9525_v49 = vpop.permute.xlu0 %4684  ;;  %v5566_v28 = vsel %vm1127_vm1, %v9376_v38, %v5565_v16  ;;  %v9585_v38 = vperm.slane %v5349_v8, %v6696_v55  ;;  %v5485_v16 = vrot.slane %v9572_v33, 4  ;;  %v4712_v10 = vunpack.c.l.b16 %v9575_v41 }
 0x671   : > { %5183 = vrot.lane.b32.xlu0 %v5182_v43, %s6403_s17  ;;  %v9578_v56 = vperm.slane %v5566_v28, %v6721_v14  ;;  %v5191_v29 = vunpack.c.l.b16 %v9597_v42  ;;  %v5024_v13 = vsel %vm1127_vm1, %v9398_v2, %v5023_v32  ;;  %v9637_v20 = vperm.slane %v4421_v19, %v6696_v55  ;;  %v10368_v19 = vld [vmem:[#allocation92_spill] sm:$0xff] }
 0x672   : > { %v5486_v36 = vsel %vm1127_vm1, %v5485_v16, %v9585_v38  ;;  %v4713_v8 = vpack.c.b16 %v4712_v10, %v4712_v10  ;;  %v9646_v2 = vperm.slane %v5024_v13, %v6721_v14 }
 0x673   : > { %v9624_v35 = vperm.slane %v5486_v36, %v6721_v14 }
 0x675   : > { %4749 = vrot.lane.b32.xlu1 %v4748_v18, %s6403_s17  ;;  %v4752_v18 = vunpack.c.l.b16 %v4648_v26  ;;  %v5497_v10 = vrot.slane %v9624_v35, 4 }
 0x676   : > { %5677 = vrot.lane.b32.xlu2 %v5676_v9, %s6403_s17  ;;  %v4427_v9 = vpack.i.b16 %v10364_v48, %v10365_v51  ;;  %v5685_v48 = vunpack.c.l.b16 %v9578_v56  ;;  %v4638_v51 = vsel %vm1127_vm1, %v9331_v44, %v4637_v58 }
 0x677   : > { %v9548_v0 = vpop.permute.xlu1 %5612  ;;  %v4753_v54 = vpack.c.b16 %v4752_v18, %v4752_v18  ;;  %v9621_v44 = vperm.slane %v4638_v51, %v6721_v14 }
 0x678   : > { %v9556_v43 = vpop.permute.xlu2 %5168  ;;  %v9567_v22 = vpop.permute.xlu0 %5163  ;;  %v9613_v26 = vperm.slane %v4427_v9, %v6696_v55  ;;  %v5686_v28 = vpack.c.b16 %v5685_v48, %v5685_v48  ;;  %6165 = vmatmul.msk.bf16.vlgmr.msrb.gmra.mxu2 %vm4088_vm14, %v9538_v25  ;;  %v5192_v9 = vpack.c.b16 %v5191_v29, %v5191_v29  ;;  %6163 = vmatmul.msk.bf16.vlgmr.msrb.gmra.mxu0 %vm4088_vm14, %v9538_v25 }
 0x679   : > { %5682 = vrot.lane.b32.xlu0 %v5681_v61, %s6404_s21  ;;  %v9600_v61 = vperm.slane %v5540_v17, %v6721_v14  ;;  %6166 = vmatmul.msk.bf16.vlgmr.msrb.gmra.mxu3 %vm4088_vm14, %v9538_v25  ;;  %v4757_v55 = vunpack.c.l.b16 %v9621_v44 }
 0x67a   : > { %v4557_v59 = vrot.slane %v9613_v26, 4  ;;  %6164 = vmatmul.msk.bf16.vlgmr.msrb.gmra.mxu1 %vm4088_vm14, %v9538_v25  ;;  %v5498_v25 = vsel %vm1127_vm1, 0, %v5497_v10 }
 0x67b   : > { %v5551_v18 = vrot.slane %v9600_v61, 4  ;;  %v4758_v29 = vpack.c.b16 %v4757_v55, %v4757_v55 }
 0x67d   : > { %5642 = vrot.lane.b32.xlu1 %v5641_v45, %s6402_s23  ;;  %v5060_v45 = vsel %vm1127_vm1, 0, %v5059_v7  ;;  %v4558_v7 = vsel %vm1127_vm1, %v4557_v59, %v9637_v20 }
 0x67e   : > { %5228 = vrot.lane.b32.xlu2 %v5227_v31, %s6403_s17  ;;  %v4611_v31 = vrot.slane %v9430_v23, 4  ;;  %v5186_v58 = vunpack.c.l.b16 %v5060_v45 }
 0x67f   : > { %v9593_v37 = vpop.permute.xlu1 %5158 }
 0x680   : > { %v9602_v1 = vpop.permute.xlu2 %5627  ;;  %v4612_v23 = vsel %vm1127_vm1, %v9389_v39, %v4611_v31  ;;  %v5113_v39 = vrot.slane %v9453_v34, 4  ;;  %v5187_v32 = vpack.c.b16 %v5186_v58, %v5186_v58  ;;  %v10369_v34 = vld [vmem:[#allocation32_spill] sm:$0xff]  ;;  %v9673_v31 = vperm.slane %v4558_v7, %v6721_v14 }
 0x681   : > { %4754 = vrot.lane.b32.xlu0 %v4753_v54, %s6404_s21  ;;  %v5552_v54 = vsel %vm1127_vm1, 0, %v5551_v18  ;;  %v9658_v48 = vperm.slane %v4612_v23, %v6721_v14  ;;  %v5715_v45 = vsel %vm1445_vm8, %v10369_v34, %v9548_v0  ;;  %v5645_v58 = vunpack.c.l.b16 %v5498_v25 }
 0x682   : > { %v5690_v36 = vunpack.c.l.b16 %v5552_v54  ;;  %v5114_v18 = vsel %vm1127_vm1, 0, %v5113_v39  ;;  %v5717_v23 = vsel %vm1449_vm9, %v5715_v45, %v9523_v21  ;;  %v5513_v7 = vrot.slane %v9505_v5, 4 }
 0x683   : > { %v9617_v30 = vpop.permute.xlu0 %5123  ;;  %v5231_v54 = vunpack.c.l.b16 %v5114_v18  ;;  %v5577_v45 = vrot.slane %v9578_v56, 4 }
 0x685   : > { %4714 = vrot.lane.b32.xlu1 %v4713_v8, %s6402_s23  ;;  %v5251_v8 = vsel %vm1445_vm8, %v10368_v19, %v9491_v24  ;;  %v4623_v24 = vrot.slane %v9658_v48, 4  ;;  %v5232_v34 = vpack.c.b16 %v5231_v54, %v5231_v54  ;;  %v5578_v56 = vsel %vm1127_vm1, 0, %v5577_v45  ;;  %v10371_v45 = vld [vmem:[#allocation12_spill] sm:$0xff] }
 0x686   : > { %5687 = vrot.lane.b32.xlu2 %v5686_v28, %s6402_s23  ;;  %v5035_v28 = vrot.slane %v9646_v2, 4  ;;  %v5253_v13 = vsel %vm1449_vm9, %v5251_v8, %v9457_v50  ;;  %v4569_v50 = vrot.slane %v9673_v31, 4  ;;  %v5523_v54 = vrot.slane %v9531_v11, 4 }
 0x687   : > { %v4690_v17 = vpop.permute.xlu1 %4689  ;;  %v5255_v0 = vsel %vm1452_vm10, %v5253_v13, %v9593_v37 }
 0x688   : > { %v9648_v16 = vpop.permute.xlu2 %4699  ;;  %v5036_v10 = vsel %vm1127_vm1, 0, %v5035_v28  ;;  %v5765_v21 = vrot.slane %v5255_v0, 6  ;;  %v5524_v11 = vsel %vm1127_vm1, 0, %v5523_v54 }
 0x689   : > { %5193 = vrot.lane.b32.xlu0 %v5192_v9, %s6402_s23  ;;  %v5691_v9 = vpack.c.b16 %v5690_v36, %v5690_v36  ;;  %v4624_v36 = vsel %vm1127_vm1, 0, %v4623_v24  ;;  %v5196_v25 = vunpack.c.l.b16 %v5036_v10  ;;  %v4559_v10 = vrot.slane %v9637_v20, 4 }
 0x68b   : > { %v5623_v51 = vpop.permute.xlu0 %5622  ;;  %v5197_v13 = vpack.c.b16 %v5196_v25, %v5196_v25 }
 0x68c   : > { %v5719_v39 = vsel %vm1452_vm10, %v5717_v23, %v5623_v51  ;;  %v5514_v23 = vsel %vm1127_vm1, %v9502_v4, %v5513_v7  ;;  %v4585_v4 = vrot.slane %v9541_v63, 4  ;;  %v5487_v7 = vrot.slane %v9585_v38, 4 }
 0x68d   : > { %5188 = vrot.lane.b32.xlu1 %v5187_v32, %s6404_s21  ;;  %v10370_v32 = vld [vmem:[#allocation91_spill] sm:$0xff]  ;;  %v5781_v28 = vrot.slane %v5719_v39, 4  ;;  %v5650_v63 = vunpack.c.l.b16 %v5524_v11 }
 0x68e   : > { %4759 = vrot.lane.b32.xlu2 %v4758_v29, %s6402_s23  ;;  %v4787_v37 = vsel %vm1445_vm8, %v10370_v32, %v9525_v49  ;;  %v5646_v29 = vpack.c.b16 %v5645_v58, %v5645_v58  ;;  %v4570_v49 = vsel %vm1127_vm1, 0, %v4569_v50  ;;  %v5695_v32 = vunpack.c.l.b16 %v5578_v56 }
 0x68f   : > { %v9679_v59 = vpop.permute.xlu1 %5582  ;;  %v4789_v19 = vsel %vm1449_vm9, %v4787_v37, %v4690_v17  ;;  %v4717_v0 = vunpack.c.l.b16 %v4570_v49  ;;  %v9714_v37 = vperm.slane %v5514_v23, %v6721_v14 }
 0x690   : > { %v9685_v55 = vpop.permute.xlu2 %5173 }
 0x691   : > { %5692 = vrot.lane.b32.xlu0 %v5691_v9, %s6403_s17  ;;  %v4762_v9 = vunpack.c.l.b16 %v4624_v36  ;;  %v4718_v36 = vpack.c.b16 %v4717_v0, %v4717_v0  ;;  %v10372_v0 = vld [vmem:[#allocation125_spill] sm:$0xff] }
 0x693   : > { %v4695_v8 = vpop.permute.xlu0 %4694  ;;  %v4763_v50 = vpack.c.b16 %v4762_v9, %v4762_v9 }
 0x694   : > { %v4791_v51 = vsel %vm1452_vm10, %v4789_v19, %v4695_v8  ;;  %v4560_v19 = vsel %vm1127_vm1, %v9613_v26, %v4559_v10  ;;  %v5696_v8 = vpack.c.b16 %v5695_v32, %v5695_v32 }
 0x695   : > { %v5792_v5 = vsel %vm2480_vm11, %v4791_v51, %v5765_v21  ;;  %5647 = vrot.lane.b32.xlu1 %v5646_v29, %s6403_s17  ;;  %v4649_v21 = vrot.slane %v9621_v44, 4  ;;  %v5655_v29 = vunpack.c.l.b16 %v9714_v37  ;;  %v4586_v44 = vsel %vm1127_vm1, %v9519_v53, %v4585_v4 }
 0x696   : > { %5233 = vrot.lane.b32.xlu2 %v5232_v34, %s6404_s21  ;;  %v5808_v18 = vsel %vm2497_vm12, %v5792_v5, %v5781_v28  ;;  %v9728_v25 = vperm.slane %v4560_v19, %v6721_v14  ;;  %v4595_v28 = vrot.slane %v9575_v41, 4  ;;  %v5488_v51 = vsel %vm1127_vm1, %v9572_v33, %v5487_v7 }
 0x697   : > { %v5828_v17 = vsel %vm4092_vm13, %v5808_v18, 0  ;;  %v4655_v24 = vpop.permute.xlu1 %4654  ;;  %v4650_v38 = vsel %vm1127_vm1, 0, %v4649_v21  ;;  %v4594_v34 = vperm.slane %v4586_v44, %v6721_v14  ;;  %v5237_v53 = vsel %vm1445_vm8, %v10371_v45, %v9489_v52 }
 0x698   : > { %5873 = vmatpush.bf16.msra.mxu2 %v5828_v17  ;;  %v4660_v58 = vpop.permute.xlu2 %4659  ;;  %v5656_v49 = vpack.c.b16 %v5655_v29, %v5655_v29  ;;  %v4767_v18 = vunpack.c.l.b16 %v4650_v38  ;;  %v4571_v17 = vrot.slane %v9728_v25, 4  ;;  %v5239_v41 = vsel %vm1449_vm9, %v5237_v53, %v9617_v30 }
 0x699   : > { %5198 = vrot.lane.b32.xlu0 %v5197_v13, %s6403_s17  ;;  %v9741_v13 = vperm.slane %v5488_v51, %v6721_v14  ;;  %v5651_v33 = vpack.c.b16 %v5650_v63, %v5650_v63  ;;  %v4596_v9 = vsel %vm1127_vm1, 0, %v4595_v28  ;;  %v4773_v56 = vsel %vm1445_vm8, %v10372_v0, %v4655_v24 }
 0x69a   : > { %v4727_v52 = vunpack.c.l.b16 %v4594_v34  ;;  %v5701_v14 = vsel %vm1445_vm8, %v9139_v3, %v9679_v59  ;;  %v4768_v10 = vpack.c.b16 %v4767_v18, %v4767_v18  ;;  %v4722_v30 = vunpack.c.l.b16 %v4596_v9 }
 0x69b   : > { %v9711_v39 = vpop.permute.xlu0 %5133  ;;  %v4775_v32 = vsel %vm1449_vm9, %v4773_v56, %v4660_v58  ;;  %v5499_v19 = vrot.slane %v9741_v13, 4  ;;  %v5061_v3 = vrot.slane %v9597_v42, 4  ;;  %v5525_v18 = vrot.slane %v9714_v37, 4 }
 0x69c   : > { %v4723_v29 = vpack.c.b16 %v4722_v30, %v4722_v30  ;;  %v10373_v30 = vld [vmem:[#allocation131_spill] sm:$0xff] }
 0x69d   : > { %4764 = vrot.lane.b32.xlu1 %v4763_v50, %s6403_s17  ;;  %v4572_v50 = vsel %vm1127_vm1, 0, %v4571_v17  ;;  %v5500_v63 = vsel %vm1127_vm1, 0, %v5499_v19  ;;  %v5062_v38 = vsel %vm1127_vm1, 0, %v5061_v3  ;;  %v5526_v56 = vsel %vm1127_vm1, 0, %v5525_v18 }
 0x69e   : > { %4719 = vrot.lane.b32.xlu2 %v4718_v36, %s6403_s17  ;;  %v4732_v58 = vunpack.c.l.b16 %v4572_v50  ;;  %v5660_v51 = vunpack.c.l.b16 %v5500_v63  ;;  %v5201_v53 = vunpack.c.l.b16 %v5062_v38  ;;  %v4794_v50 = vsel %vm1445_vm8, %v10373_v30, %v9648_v16 }
 0x69f   : > { %v5129_v20 = vpop.permute.xlu1 %5128 }
 0x6a0   : > { %v5593_v26 = vpop.permute.xlu2 %5592  ;;  %v5241_v23 = vsel %vm1452_vm10, %v5239_v41, %v5129_v20  ;;  %v4733_v28 = vpack.c.b16 %v4732_v58, %v4732_v58  ;;  %v5661_v41 = vpack.c.b16 %v5660_v51, %v5660_v51  ;;  %v5202_v9 = vpack.c.b16 %v5201_v53, %v5201_v53 }
 0x6a1   : > { %5697 = vrot.lane.b32.xlu0 %v5696_v8, %s6404_s21  ;;  %v5763_v36 = vrot.slane %v5241_v23, 6  ;;  %v4728_v8 = vpack.c.b16 %v4727_v52, %v4727_v52 }
 0x6a3   : > { %v5633_v5 = vpop.permute.xlu0 %5632 }
 0x6a5   : > { %5657 = vrot.lane.b32.xlu1 %v5656_v49, %s6402_s23  ;;  %v4597_v49 = vrot.slane %v4594_v34, 4  ;;  %v5722_v34 = vsel %vm1445_vm8, %v9109_v27, %v9602_v1 }
 0x6a6   : > { %5652 = vrot.lane.b32.xlu2 %v5651_v33, %s6404_s21  ;;  %v5258_v33 = vsel %vm1445_vm8, %v8955_v6, %v9567_v22  ;;  %v5724_v22 = vsel %vm1449_vm9, %v5722_v34, %v5633_v5 }
 0x6a7   : > { %v5588_v54 = vpop.permute.xlu1 %5587  ;;  %v4598_v0 = vsel %vm1127_vm1, 0, %v4597_v49  ;;  %v5260_v37 = vsel %vm1449_vm9, %v5258_v33, %v9556_v43  ;;  %v9812_v49 = vld [vmem:[#allocation5 + $0x8] sm:$0xf] }
 0x6a8   : > { %v5703_v24 = vsel %vm1449_vm9, %v5701_v14, %v5588_v54  ;;  %v4665_v21 = vpop.permute.xlu2 %4664  ;;  %v4737_v52 = vunpack.c.l.b16 %v4598_v0  ;;  %v5262_v6 = vsel %vm1452_vm10, %v5260_v37, %v9685_v55  ;;  %v5665_v54 = vunpack.c.l.b16 %v5526_v56  ;;  %6173 = vmatmul.msk.bf16.vlgmr.msra.gmra.mxu2 %vm4088_vm14, %v9812_v49 }
 0x6a9   : > { %v5705_v4 = vsel %vm1452_vm10, %v5703_v24, %v5593_v26  ;;  %4769 = vrot.lane.b32.xlu0 %v4768_v10, %s6404_s21  ;;  %v4777_v7 = vsel %vm1452_vm10, %v4775_v32, %v4665_v21  ;;  %v5766_v32 = vrot.slane %v5262_v6, 6 }
 0x6aa   : > { %v5779_v59 = vrot.slane %v5705_v4, 4  ;;  %v5788_v11 = vsel %vm2480_vm11, %v4777_v7, %v5763_v36  ;;  %v4738_v43 = vpack.c.b16 %v4737_v52, %v4737_v52  ;;  %v5666_v21 = vpack.c.b16 %v5665_v54, %v5665_v54 }
 0x6ab   : > { %v5139_v20 = vpop.permute.xlu0 %5138 }
 0x6ac   : > { %v5804_v44 = vsel %vm2497_vm12, %v5788_v11, %v5779_v59 }
 0x6ad   : > { %4729 = vrot.lane.b32.xlu1 %v4728_v8, %s6402_s23  ;;  %v5824_v26 = vsel %vm4092_vm13, %v5804_v44, 0  ;;  %v5244_v8 = vsel %vm1445_vm8, %v9165_v15, %v9711_v39  ;;  %s6342_s23 = scalar_lea.hbm %s9935_s3, 128 }
 0x6ae   : > { %4724 = vrot.lane.b32.xlu2 %v4723_v29, %s6404_s21  ;;  %5847 = vmatpush.bf16.msra.mxu0 %v5824_v26  ;;  %v5246_v29 = vsel %vm1449_vm9, %v5244_v8, %v5139_v20  ;;  %p6344_p9 = scmp.lt.s32.totalorder %s6342_s23, %s6338_s11 }
 0x6af   : > { %v4705_v42 = vpop.permute.xlu1 %4704 }
 0x6b0   : > { %v5144_v45 = vpop.permute.xlu2 %5143  ;;  %v4796_v27 = vsel %vm1449_vm9, %v4794_v50, %v4705_v42  ;;  %p6345_p2 = por %p6344_p9, %p6343_p11 }
 0x6b1   : > { %4734 = vrot.lane.b32.xlu0 %v4733_v28, %s6403_s17  ;;  %v5248_v63 = vsel %vm1452_vm10, %v5246_v29, %v5144_v45  ;;  %6171 = vmatmul.msk.bf16.vlgmr.msra.gmra.mxu0 %vm4088_vm14, %v9812_v49 }
 0x6b2   : > { %v5764_v42 = vrot.slane %v5248_v63, 6  ;;  %p6346_p10 = pnand %p6345_p2, %p6341_p8 }
 0x6b3   : > { %v5638_v17 = vpop.permute.xlu0 %5637 }
 0x6b4   : > { %v5726_v10 = vsel %vm1452_vm10, %v5724_v22, %v5638_v17 }
 0x6b5   : > { %5662 = vrot.lane.b32.xlu1 %v5661_v41, %s6403_s17  ;;  %v5782_v36 = vrot.slane %v5726_v10, 4 }
 0x6b6   : > { %5203 = vrot.lane.b32.xlu2 %v5202_v9, %s6404_s21 }
 0x6b7   : > { %v5598_v23 = vpop.permute.xlu1 %5597 }
 0x6b8   : > { %v5608_v14 = vpop.permute.xlu2 %5607  ;;  %v5708_v11 = vsel %vm1445_vm8, %v9310_v46, %v5598_v23 }
 0x6bb   : > { %v4710_v1 = vpop.permute.xlu0 %4709 }
 0x6bc   : > { %v4798_v24 = vsel %vm1452_vm10, %v4796_v27, %v4710_v1 }
 0x6bd   : > { %v5794_v55 = vsel %vm2480_vm11, %v4798_v24, %v5766_v32  ;;  %4739 = vrot.lane.b32.xlu1 %v4738_v43, %s6404_s21 }
 0x6be   : > { %5667 = vrot.lane.b32.xlu2 %v5666_v21, %s6404_s21  ;;  %v5810_v5 = vsel %vm2497_vm12, %v5794_v55, %v5782_v36 }
 0x6bf   : > { %v5830_v19 = vsel %vm4092_vm13, %v5810_v5, 0  ;;  %v4670_v16 = vpop.permute.xlu1 %4669 }
 0x6c0   : > { %5886 = vmatpush.bf16.msra.mxu3 %v5830_v19  ;;  %v5214_v4 = vpop.permute.xlu2 %5213  ;;  %v4780_v26 = vsel %vm1445_vm8, %v9293_v57, %v4670_v16 }
 0x6c3   : > { %v4675_v7 = vpop.permute.xlu0 %4674  ;;  %6174 = vmatmul.msk.bf16.vlgmr.msra.gmra.mxu3 %vm4088_vm14, %v9812_v49 }
 0x6c4   : > { %v4782_v28 = vsel %vm1449_vm9, %v4780_v26, %v4675_v7 }
 0x6c7   : > { %v5603_v3 = vpop.permute.xlu1 %5602 }
 0x6c8   : > { %v5179_v59 = vpop.permute.xlu2 %5178  ;;  %v5710_v58 = vsel %vm1449_vm9, %v5708_v11, %v5603_v3 }
 0x6c9   : > { %v5712_v38 = vsel %vm1452_vm10, %v5710_v58, %v5608_v14  ;;  %v5265_v16 = vsel %vm1445_vm8, %v9460_v47, %v5179_v59 }
 0x6ca   : > { %v5780_v51 = vrot.slane %v5712_v38, 4 }
 0x6cb   : > { %v5209_v44 = vpop.permute.xlu0 %5208 }
 0x6cc   : > { %v5279_v23 = vsel %vm1445_vm8, %v9392_v40, %v5209_v44 }
 0x6cd   : > { %v5281_v6 = vsel %vm1449_vm9, %v5279_v23, %v5214_v4 }
 0x6cf   : > { %v4680_v46 = vpop.permute.xlu1 %4679 }
 0x6d0   : > { %v4784_v53 = vsel %vm1452_vm10, %v4782_v28, %v4680_v46  ;;  %v5678_v15 = vpop.permute.xlu2 %5677 }
 0x6d1   : > { %v5790_v39 = vsel %vm2480_vm11, %v4784_v53, %v5764_v42  ;;  %v4131_v53 = vpop.f32.mrf.mxu1 }
 0x6d2   : > { %v5806_v20 = vsel %vm2497_vm12, %v5790_v39, %v5780_v51  ;;  %v4118_v51 = vpop.f32.mrf.mxu0 }
 0x6d3   : > { %v4745_v45 = vpop.permute.xlu0 %4744  ;;  %v5826_v18 = vsel %vm4092_vm13, %v5806_v20, 0 }
 0x6d4   : > { %5860 = vmatpush.bf16.msra.mxu1 %v5826_v18  ;;  %v4815_v50 = vsel %vm1445_vm8, %v9471_v62, %v4745_v45  ;;  %v4157_v45 = vpop.f32.mrf.mxu3 }
 0x6d7   : > { %v5673_v57 = vpop.permute.xlu1 %5672  ;;  %6172 = vmatmul.msk.bf16.vlgmr.msra.gmra.mxu1 %vm4088_vm14, %v9812_v49 }
 0x6d8   : > { %v5229_v17 = vpop.permute.xlu2 %5228  ;;  %v5743_v52 = vsel %vm1445_vm8, %v9482_v60, %v5673_v57 }
 0x6d9   : > { %v5745_v54 = vsel %vm1449_vm9, %v5743_v52, %v5678_v15  ;;  %v4144_v15 = vpop.f32.mrf.mxu2  ;;  %v4133_v52 = vpop.f32.mrf.mxu1 }
 0x6da   : > { %v4120_v23 = vpop.f32.mrf.mxu0 }
 0x6db   : > { %v5224_v41 = vpop.permute.xlu0 %5223 }
 0x6dc   : > { %v5286_v20 = vsel %vm1445_vm8, %v9510_v12, %v5224_v41 }
 0x6dd   : > { %v5288_v57 = vsel %vm1449_vm9, %v5286_v20, %v5229_v17 }
 0x6df   : > { %v5219_v33 = vpop.permute.xlu1 %5218 }
 0x6e0   : > { %v5688_v9 = vpop.permute.xlu2 %5687  ;;  %v5283_v14 = vsel %vm1452_vm10, %v5281_v6, %v5219_v33 }
 0x6e1   : > { %v5769_v32 = vrot.slane %v5283_v14, 6  ;;  %v5750_v18 = vsel %vm1445_vm8, %v9600_v61, %v5688_v9  ;;  %v4159_v9 = vpop.f32.mrf.mxu3 }
 0x6e3   : > { %v5184_v0 = vpop.permute.xlu0 %5183 }
 0x6e4   : > { %v5267_v7 = vsel %vm1449_vm9, %v5265_v16, %v5184_v0 }
 0x6e7   : > { %v4750_v56 = vpop.permute.xlu1 %4749 }
 0x6e8   : > { %v4760_v34 = vpop.permute.xlu2 %4759  ;;  %v4817_v27 = vsel %vm1449_vm9, %v4815_v50, %v4750_v56 }
 0x6e9   : > { %v4822_v6 = vsel %vm1445_vm8, %v9658_v48, %v4760_v34  ;;  %v4183_v48 = vpop.f32.mrf.mxu1 }
 0x6eb   : > { %v5683_v37 = vpop.permute.xlu0 %5682 }
 0x6ec   : > { %v5747_v30 = vsel %vm1452_vm10, %v5745_v54, %v5683_v37 }
 0x6ed   : > { %v5785_v1 = vrot.slane %v5747_v30, 4 }
 0x6ef   : > { %v5643_v22 = vpop.permute.xlu1 %5642 }
 0x6f0   : > { %v5234_v10 = vpop.permute.xlu2 %5233  ;;  %v5729_v8 = vsel %vm1445_vm8, %v9624_v35, %v5643_v22  ;;  %v4146_v22 = vpop.f32.mrf.mxu2 }
 0x6f1   : > { %v5290_v0 = vsel %vm1452_vm10, %v5288_v57, %v5234_v10 }
 0x6f2   : > { %v5770_v12 = vrot.slane %v5290_v0, 6 }
 0x6f3   : > { %v4755_v40 = vpop.permute.xlu0 %4754 }
 0x6f4   : > { %v4819_v60 = vsel %vm1452_vm10, %v4817_v27, %v4755_v40  ;;  %v4170_v27 = vpop.f32.mrf.mxu0  ;;  %v4209_v40 = vpop.f32.mrf.mxu3 }
 0x6f5   : > { %v5800_v43 = vsel %vm2480_vm11, %v4819_v60, %v5769_v32 }
 0x6f6   : > { %v5816_v36 = vsel %vm2497_vm12, %v5800_v43, %v5785_v1 }
 0x6f7   : > { %v5836_v24 = vsel %vm4092_vm13, %v5816_v36, 0  ;;  %v4715_v21 = vpop.permute.xlu1 %4714  ;;  %v4185_v36 = vpop.f32.mrf.mxu1 }
 0x6f8   : > { %5925 = vmatpush.bf16.msrb.mxu2 %v5836_v24  ;;  %v4720_v55 = vpop.permute.xlu2 %4719  ;;  %v4801_v3 = vsel %vm1445_vm8, %v9673_v31, %v4715_v21  ;;  %v4196_v34 = vpop.f32.mrf.mxu2 }
 0x6f9   : > { %v4803_v29 = vsel %vm1449_vm9, %v4801_v3, %v4720_v55 }
 0x6fb   : > { %v9838_v5 = vpop.permute.xlu0 %5193  ;;  %6177 = vmatmul.msk.bf16.vlgmr.msrb.gmra.mxu2 %vm4088_vm14, %v9812_v49 }
 0x6fc   : > { %v4172_v43 = vpop.f32.mrf.mxu0  ;;  %v5272_v24 = vsel %vm1445_vm8, %v9646_v2, %v9838_v5  ;;  %v4211_v3 = vpop.f32.mrf.mxu3 }
 0x6ff   : > { %v5189_v62 = vpop.permute.xlu1 %5188 }
 0x700   : > { %v5653_v19 = vpop.permute.xlu2 %5652  ;;  %v5269_v11 = vsel %vm1452_vm10, %v5267_v7, %v5189_v62  ;;  %v4198_v55 = vpop.f32.mrf.mxu2 }
 0x701   : > { %v5767_v44 = vrot.slane %v5269_v11, 6 }
 0x703   : > { %v5693_v4 = vpop.permute.xlu0 %5692 }
 0x704   : > { %v5752_v56 = vsel %vm1449_vm9, %v5750_v18, %v5693_v4 }
 0x707   : > { %v5648_v58 = vpop.permute.xlu1 %5647 }
 0x708   : > { %v5731_v63 = vsel %vm1449_vm9, %v5729_v8, %v5648_v58  ;;  %v4725_v26 = vpop.permute.xlu2 %4724 }
 0x709   : > { %v5733_v47 = vsel %vm1452_vm10, %v5731_v63, %v5653_v19  ;;  %v4805_v59 = vsel %vm1452_vm10, %v4803_v29, %v4725_v26  ;;  %v4254_v63 = vpop.f32.mrf.mxu1 }
 0x70a   : > { %v5783_v38 = vrot.slane %v5733_v47, 4  ;;  %v5796_v42 = vsel %vm2480_vm11, %v4805_v59, %v5767_v44  ;;  %v4241_v44 = vpop.f32.mrf.mxu0  ;;  %v4255_v59 = vadd.f32 %v4254_v63, %v4131_v53 }
 0x70b   : > { %v5199_v31 = vpop.permute.xlu0 %5198  ;;  %v4242_v47 = vadd.f32 %v4241_v44, %v4118_v51 }
 0x70c   : > { %v5812_v28 = vsel %vm2497_vm12, %v5796_v42, %v5783_v38  ;;  %v5274_v62 = vsel %vm1449_vm9, %v5272_v24, %v5199_v31  ;;  %v4280_v31 = vpop.f32.mrf.mxu3 }
 0x70d   : > { %v5832_v46 = vsel %vm4092_vm13, %v5812_v28, 0  ;;  %v4281_v28 = vadd.f32 %v4280_v31, %v4157_v45 }
 0x70e   : > { %5899 = vmatpush.bf16.msrb.mxu0 %v5832_v46 }
 0x70f   : > { %v4765_v35 = vpop.permute.xlu1 %4764 }
 0x710   : > { %v4824_v41 = vsel %vm1449_vm9, %v4822_v6, %v4765_v35  ;;  %v5204_v32 = vpop.permute.xlu2 %5203 }
 0x711   : > { %6175 = vmatmul.msk.bf16.vlgmr.msrb.gmra.mxu0 %vm4088_vm14, %v9812_v49  ;;  %v5276_v16 = vsel %vm1452_vm10, %v5274_v62, %v5204_v32  ;;  %v4256_v35 = vpop.f32.mrf.mxu1 }
 0x712   : > { %v5768_v11 = vrot.slane %v5276_v16, 6  ;;  %v4243_v46 = vpop.f32.mrf.mxu0 }
 0x713   : > { %v5698_v39 = vpop.permute.xlu0 %5697 }
 0x714   : > { %v5754_v37 = vsel %vm1452_vm10, %v5752_v56, %v5698_v39  ;;  %v4282_v20 = vpop.f32.mrf.mxu3 }
 0x715   : > { %v5786_v61 = vrot.slane %v5754_v37, 4 }
 0x717   : > { %v5658_v33 = vpop.permute.xlu1 %5657 }
 0x718   : > { %v5736_v60 = vsel %vm1445_vm8, %v9741_v13, %v5658_v33  ;;  %v5668_v19 = vpop.permute.xlu2 %5667 }
 0x719   : > { %v4306_v57 = vpop.f32.mrf.mxu1 }
 0x71a   : > { %v4293_v18 = vpop.f32.mrf.mxu0  ;;  %v4307_v0 = vadd.f32 %v4306_v57, %v4183_v48 }
 0x71b   : > { %v4770_v14 = vpop.permute.xlu0 %4769  ;;  %v4294_v33 = vadd.f32 %v4293_v18, %v4170_v27 }
 0x71c   : > { %v4826_v17 = vsel %vm1452_vm10, %v4824_v41, %v4770_v14  ;;  %v4332_v56 = vpop.f32.mrf.mxu3 }
 0x71d   : > { %v5802_v54 = vsel %vm2480_vm11, %v4826_v17, %v5770_v12  ;;  %v4333_v37 = vadd.f32 %v4332_v56, %v4209_v40 }
 0x71e   : > { %v5818_v10 = vsel %vm2497_vm12, %v5802_v54, %v5786_v61 }
 0x71f   : > { %v5838_v30 = vsel %vm4092_vm13, %v5818_v10, 0  ;;  %v4730_v50 = vpop.permute.xlu1 %4729 }
 0x720   : > { %5938 = vmatpush.bf16.msrb.mxu3 %v5838_v30  ;;  %v4808_v4 = vsel %vm1445_vm8, %v9728_v25, %v4730_v50  ;;  %v4267_v25 = vpop.f32.mrf.mxu2 }
 0x721   : > { %v4268_v42 = vadd.f32 %v4267_v25, %v4144_v15  ;;  %v4308_v15 = vpop.f32.mrf.mxu1 }
 0x722   : > { %v4295_v23 = vpop.f32.mrf.mxu0 }
 0x723   : > { %6178 = vmatmul.msk.bf16.vlgmr.msrb.gmra.mxu3 %vm4088_vm14, %v9812_v49  ;;  %v4735_v7 = vpop.permute.xlu0 %4734 }
 0x724   : > { %v4810_v8 = vsel %vm1449_vm9, %v4808_v4, %v4735_v7  ;;  %v4334_v6 = vpop.f32.mrf.mxu3 }
 0x727   : > { %v5663_v1 = vpop.permute.xlu1 %5662 }
 0x728   : > { %v5738_v21 = vsel %vm1449_vm9, %v5736_v60, %v5663_v1  ;;  %v4269_v39 = vpop.f32.mrf.mxu2 }
 0x729   : > { %v5740_v13 = vsel %vm1452_vm10, %v5738_v21, %v5668_v19 }
 0x72a   : > { %v5784_v2 = vrot.slane %v5740_v13, 4 }
 0x72e   : > { %v5849_v45 = vpop.f32.mrf.mxu0 }
 0x72f   : > { %v4740_v58 = vpop.permute.xlu1 %4739  ;;  %v5944_v22 = vadd.f32 %v5849_v45, %v4242_v47 }
 0x730   : > { %v4812_v5 = vsel %vm1452_vm10, %v4810_v8, %v4740_v58  ;;  %v4319_v51 = vpop.f32.mrf.mxu2 }
 0x731   : > { %v5798_v29 = vsel %vm2480_vm11, %v4812_v5, %v5768_v11  ;;  %v4320_v53 = vadd.f32 %v4319_v51, %v4196_v34  ;;  %v6406_v51 = vmov 0  }
 0x732   : > { %v5814_v26 = vsel %vm2497_vm12, %v5798_v29, %v5784_v2  ;;  %6257 = vset.pattern.permute.xlu1 %v6406_v51 }
 0x733   : > { %v5834_v38 = vsel %vm4092_vm13, %v5814_v26, 0 }
 0x734   : > { %5912 = vmatpush.bf16.msrb.mxu1 %v5834_v38 }
 0x736   : > { %v5851_v9 = vpop.f32.mrf.mxu0 }
 0x737   : > { %6176 = vmatmul.msk.bf16.vlgmr.msrb.gmra.mxu1 %vm4088_vm14, %v9812_v49 }
 0x738   : > { %v4321_v52 = vpop.f32.mrf.mxu2 }
 0x740   : > { %v5875_v41 = vpop.f32.mrf.mxu2 }
 0x741   : > { %v5946_v61 = vadd.f32 %v5875_v41, %v4268_v42 }
 0x746   : > { %v5888_v14 = vpop.f32.mrf.mxu3 }
 0x747   : > { %v5947_v17 = vadd.f32 %v5888_v14, %v4281_v28 }
 0x748   : > { %v5877_v10 = vpop.f32.mrf.mxu2 }
 0x74e   : > { %v5890_v30 = vpop.f32.mrf.mxu3 }
 0x754   : > { %v5862_v12 = vpop.f32.mrf.mxu1 }
 0x755   : > { %v5945_v49 = vadd.f32 %v5862_v12, %v4255_v59 }
 0x757   : > { %v5952_v40 = vadd.f32 %v5945_v49, %v5944_v22 }
 0x759   : > { %v5953_v60 = vadd.f32 %v5952_v40, %v5946_v61 }
 0x75b   : > { %v5954_v36 = vadd.f32 %v5953_v60, %v5947_v17 }
 0x75c   : > { %v5864_v54 = vpop.f32.mrf.mxu1 }
 0x77e   : > { %v5927_v50 = vpop.f32.mrf.mxu2 }
 0x77f   : > { %v5950_v62 = vadd.f32 %v5927_v50, %v4320_v53  ;;  %v6407_v53 = vmov 1  }
 0x780   : > { %6259 = vset.pattern.permute.xlu0 %v6407_v53 }
 0x786   : > { %v5929_v32 = vpop.f32.mrf.mxu2 }
 0x78e   : > { %v5901_v27 = vpop.f32.mrf.mxu0 }
 0x78f   : > { %v5948_v43 = vadd.f32 %v5901_v27, %v4294_v33 }
 0x791   : > { %v5955_v21 = vadd.f32 %v5954_v36, %v5948_v43 }
 0x796   : > { %v5903_v48 = vpop.f32.mrf.mxu0 }
 0x7a6   : > { %v5940_v34 = vpop.f32.mrf.mxu3 }
 0x7a7   : > { %v5951_v16 = vadd.f32 %v5940_v34, %v4333_v37 }
 0x7ae   : > { %v5942_v1 = vpop.f32.mrf.mxu3 }
 0x7b4   : > { %v5914_v24 = vpop.f32.mrf.mxu1 }
 0x7b5   : > { %v5949_v55 = vadd.f32 %v5914_v24, %v4307_v0 }
 0x7b7   : > { %v5956_v19 = vadd.f32 %v5955_v21, %v5949_v55 }
 0x7b9   : > { %v5957_v4 = vadd.f32 %v5956_v19, %v5950_v62 }
 0x7bb   : > { %v5958_v7 = vadd.f32 %v5957_v4, %v5951_v16 }
 0x7bc   : > { %v5916_v3 = vpop.f32.mrf.mxu1 }
 0x7bd   : > { %5959 = vadd.xlane.f32.xlu0 %v5958_v7 }
 0x830   : > { %v5960_v13 = vpop.xlane.xlu0 %5959 }
 0x831   : > { %v5961_v11 = vmul.f32 0.0009765625, %v5960_v13 }
 0x833   : > { %v5962_v8 = vsub.f32 %v5944_v22, %v5961_v11  ;;  %v5963_v58 = vsub.f32 %v5945_v49, %v5961_v11  ;;  %v5964_v2 = vsub.f32 %v5946_v61, %v5961_v11  ;;  %v5965_v5 = vsub.f32 %v5947_v17, %v5961_v11  ;;  %v5988_v49 = vld [vmem:[%s9934_s2] sm:$0xff] }
 0x834   : > { %v5966_v63 = vsub.f32 %v5948_v43, %v5961_v11  ;;  %v5967_v59 = vsub.f32 %v5949_v55, %v5961_v11  ;;  %v5968_v42 = vsub.f32 %v5950_v62, %v5961_v11  ;;  %v5969_v46 = vsub.f32 %v5951_v16, %v5961_v11 }
 0x835   : > { %v5970_v29 = vmul.f32 %v5962_v8, %v5962_v8  ;;  %v5971_v44 = vmul.f32 %v5963_v58, %v5963_v58  ;;  %v5972_v26 = vmul.f32 %v5964_v2, %v5964_v2  ;;  %v5973_v25 = vmul.f32 %v5965_v5, %v5965_v5 }
 0x836   : > { %v5974_v31 = vmul.f32 %v5966_v63, %v5966_v63  ;;  %v5975_v35 = vmul.f32 %v5967_v59, %v5967_v59  ;;  %v5976_v20 = vmul.f32 %v5968_v42, %v5968_v42  ;;  %v5977_v57 = vmul.f32 %v5969_v46, %v5969_v46 }
 0x837   : > { %v5978_v47 = vadd.f32 %v5971_v44, %v5970_v29 }
 0x839   : > { %v5979_v38 = vadd.f32 %v5978_v47, %v5972_v26 }
 0x83b   : > { %v5980_v28 = vadd.f32 %v5979_v38, %v5973_v25 }
 0x83d   : > { %v5981_v39 = vadd.f32 %v5980_v28, %v5974_v31 }
 0x83f   : > { %v5982_v18 = vadd.f32 %v5981_v39, %v5975_v35 }
 0x841   : > { %v5983_v33 = vadd.f32 %v5982_v18, %v5976_v20 }
 0x843   : > { %v5984_v0 = vadd.f32 %v5983_v33, %v5977_v57 }
 0x845   : > { %5985 = vadd.xlane.f32.xlu2 %v5984_v0 }
 0x8b8   : > { %v5986_v56 = vpop.xlane.xlu2 %5985 }
 0x8b9   : > { %v5987_v37 = vmul.f32 0.0009765625, %v5986_v56 }
 0x8bb   : > { %v5989_v23 = vadd.f32 1e-05, %v5987_v37 }
 0x8bd   : > { %6260 = vrsqrt.f32 %v5989_v23  ;;  %vm5996_vm0 = vweird.f32 %v5989_v23 }
 0x8c3   : > { %v6261_v15 = vpop.eup %6260 }
 0x8c4   : > { %v5991_v52 = vmul.f32 %v6261_v15, %v5989_v23  ;;  %vm5997_vm15 = vweird.f32 %v6261_v15 }
 0x8c5   : > { %vm5998_vm1 = vmor %vm5996_vm0, %vm5997_vm15 }
 0x8c6   : > { %v5992_v6 = vmul.f32 %v6261_v15, %v5991_v52 }
 0x8c8   : > { %v5993_v45 = vmul.f32 0.5, %v5992_v6 }
 0x8ca   : > { %v5994_v22 = vsub.f32 1.5, %v5993_v45 }
 0x8cc   : > { %v5995_v12 = vmul.f32 %v6261_v15, %v5994_v22 }
 0x8ce   : > { %v5999_v41 = vsel %vm5998_vm1, %v6261_v15, %v5995_v12 }
 0x8cf   : > { %v6000_v14 = vmul.f32 %v5999_v41, %v5988_v49 }
 0x8d1   : > { %6003 = vperm.xlu1 %6257, %v6000_v14  }
 0x8d9   : > { %6258 = vset.pattern.permute.xlu1 %v6407_v53 }
 0x8da   : > { %6016 = vperm.xlu1 %6258, %v5988_v49  }
 0x943   : > { %v6004_v61 = vpop.permute.xlu1 %6003 }
 0x944   : > { %v6006_v17 = vmul.f32 %v6004_v61, %v5962_v8  ;;  %v6007_v9 = vmul.f32 %v6004_v61, %v5963_v58  ;;  %v6008_v54 = vmul.f32 %v6004_v61, %v5964_v2  ;;  %v6009_v10 = vmul.f32 %v6004_v61, %v5965_v5 }
 0x945   : > { %v6010_v30 = vmul.f32 %v6004_v61, %v5966_v63  ;;  %v6011_v50 = vmul.f32 %v6004_v61, %v5967_v59  ;;  %v6012_v32 = vmul.f32 %v6004_v61, %v5968_v42  ;;  %v6013_v60 = vmul.f32 %v6004_v61, %v5969_v46 }
 0x94c   : > { %v6017_v27 = vpop.permute.xlu1 %6016 }
 0x94d   : > { %v6019_v48 = vadd.f32 %v6017_v27, %v6006_v17  ;;  %v6020_v34 = vadd.f32 %v6017_v27, %v6007_v9  ;;  %v6021_v40 = vadd.f32 %v6017_v27, %v6008_v54  ;;  %v6022_v1 = vadd.f32 %v6017_v27, %v6009_v10 }
 0x94e   : > { %v6023_v43 = vadd.f32 %v6017_v27, %v6010_v30  ;;  %v6024_v36 = vadd.f32 %v6017_v27, %v6011_v50  ;;  %v6025_v24 = vadd.f32 %v6017_v27, %v6012_v32  ;;  %v6026_v19 = vadd.f32 %v6017_v27, %v6013_v60 }
 0x94f   : > { %v6027_v21 = vmax.f32 %v6019_v48, 0.0  ;;  %v6028_v55 = vmax.f32 %v6020_v34, 0.0  ;;  %v6029_v62 = vmax.f32 %v6021_v40, 0.0  ;;  %v6030_v16 = vmax.f32 %v6022_v1, 0.0 }
 0x950   : > { %v6031_v4 = vmax.f32 %v6023_v43, 0.0  ;;  %v6032_v7 = vmax.f32 %v6024_v36, 0.0  ;;  %v6033_v3 = vmax.f32 %v6025_v24, 0.0  ;;  %v6034_v13 = vmax.f32 %v6026_v19, 0.0 }
 0x951   : > { %6035 = vst [vmem:[%s207_s8] sm:$0xff] %v6027_v21 }
 0x952   : > { %6036 = vst [vmem:[%s207_s8 + $0x8] sm:$0xff] %v6028_v55 }
 0x953   : > { %6037 = vst [vmem:[%s207_s8 + $0x10] sm:$0xff] %v6029_v62 }
 0x954   : > { %6038 = vst [vmem:[%s207_s8 + $0x18] sm:$0xff] %v6030_v16 }
 0x955   : > { %6039 = vst [vmem:[%s207_s8 + $0x20] sm:$0xff] %v6031_v4 }
 0x956   : > { %6040 = vst [vmem:[%s207_s8 + $0x28] sm:$0xff] %v6032_v7 }
 0x957   : > { %6041 = vst [vmem:[%s207_s8 + $0x30] sm:$0xff] %v6033_v3 }
 0x958   : > { %6042 = vst [vmem:[%s207_s8 + $0x38] sm:$0xff] %v6034_v13 }
 0x959   : > { %6349 = shalt.err (!%p6346_p10)
}
 0x95a   : > { %6192 = dma.vmem_to_hbm [thread:$0]  (%p6495_p7), %s6058_s16, 1024, %s6060_s6, %s6044_s9  }
 0x95b PF: > { %s6071_s10 = sand.u32 1, %s6380_s12   ;;  %p10374_p12 = scmp.ge.s32.totalorder %s6392_s15, 2 }
 0x95c   : > { %s6072_s22 = scalar_lea.sflag [#allocation4], %s6071_s10 }
 0x95d   : > { %p6203_p13 = pnand %p10374_p12, %p6463_p6 }
 0x95f   : > { %p6204_p0 = pneg %p6203_p13 }
 0x961   : > { %6375 = dma.done.wait (%p6204_p0), %s6072_s22, 1024  }
 0x962   : > { %6377 = vsyncadd (%p6204_p0), %s6072_s22, 4294966272  ;;  %p17_p3 = scmp.ge.s32.totalorder %s6481_s26, 4   ;;  %s10375_s12 = smov %s6384_s13 }
 0x963   : > { %s10376_s13 = smov %s6388_s14  ;;  %s10377_s14 = smov %s6491_s4 }
 0x964   : > { %s10378_s15 = smov %s6481_s26  ;;  %19 = sbr.rel (!%p17_p3) target bundleno = 6 (0x6), region = 97 }
 0x969   :  { %6078 = vsyncpa [#allocation3], 1 }
 0x96a   :  { %6080 = vsyncpa [#allocation3 + $0x1], 1 }
 0x96b   :  { %6081 = vsyncpa [#allocation6], 1 }
 0x96c   :  { %6082 = vsyncpa [#allocation4], 1 }
 0x96d   :  { %6084 = vsyncpa [#allocation4 + $0x1], 1 }

</bundles_post_ra>
